<compile_context>
chip_gen: v5e
topology: v5e:2x2
jax: 0.10.0
libtpu: 0.0.40
codegen_flags: <defaults>
</compile_context>

<pallas_src>
import functools

import jax
import jax.numpy as jnp
from jax.experimental import pallas as pl
from jax.experimental.pallas import tpu as pltpu

EMB = 256                 # resnet101(num_classes=256) embedding size
STEM_C = 16               # true simplified stem width
C_PAD = 128               # lane-dense padded stem width
K7, STRIDE, PAD = 7, 2, 3
K_TRUE = 3 * K7 * K7      # 147 contraction dim (NOT padded)
RESIZE = 112
OUT_HW = (RESIZE + 2 * PAD - K7) // STRIDE + 1    # 56
SPATIAL = OUT_HW * OUT_HW                          # 3136


# --------------------------------------------------------------------------
# Kernel 1: conv-as-matmul + ReLU with the global-sum pool fused in.
# grid = (n_images,): one whole image per step, batch axis "parallel"
# (megacore-sharded on v7x).  Output per image is the (1, 128) column sum of
# the ReLU activations -> no accumulator, no init, no RMW.
# --------------------------------------------------------------------------
def _stem_pool_kernel(p_ref, w_ref, o_ref):
    h = jnp.maximum(
        jnp.dot(p_ref[0], w_ref[...], preferred_element_type=jnp.float32),
        0.0)                                              # (3136, 128) f32
    o_ref[...] = jnp.sum(h, axis=0, keepdims=True)[None]  # (1, 1, 128)


def stem_pool(patches, w):
    n_imgs, spatial, k = patches.shape
    assert spatial == SPATIAL and k == K_TRUE
    return pl.pallas_call(
        _stem_pool_kernel,
        out_shape=jax.ShapeDtypeStruct((n_imgs, 1, C_PAD), jnp.float32),
        grid=(n_imgs,),
        in_specs=[
            # (1, 3136, 147): 3136 % 8 == 0, last dim == full array dim.
            pl.BlockSpec((1, SPATIAL, K_TRUE), lambda b: (b, 0, 0)),
            pl.BlockSpec((K_TRUE, C_PAD), lambda b: (0, 0)),
        ],
        out_specs=pl.BlockSpec((1, 1, C_PAD), lambda b: (b, 0, 0)),
        compiler_params=pltpu.CompilerParams(
            dimension_semantics=("parallel",)),
    )(patches, w)


# --------------------------------------------------------------------------
# Kernel 2: epilogue — FC(256) in f32 (mean-pool scale folded into fc_w),
# L2 normalize via rsqrt, per-row inner product of source/target halves,
# L1 loss vs ones.  Single-step kernel; all operands fit one VMEM block.
# --------------------------------------------------------------------------
def _head_loss_kernel(pool_ref, w_ref, b_ref, loss_ref):
    pooled = pool_ref[...][:, 0, :]                     # (2B, 128) f32
    z = jnp.dot(pooled, w_ref[...],
                preferred_element_type=jnp.float32) + b_ref[...]   # (2B, 256)
    # F.normalize: x / max(||x||_2, 1e-12)  ==  x * rsqrt(max(sumsq, 1e-24))
    sumsq = jnp.sum(z * z, axis=-1, keepdims=True)
    z = z * jax.lax.rsqrt(jnp.maximum(sumsq, 1e-24))
    half = z.shape[0] // 2
    z_src = z[:half]     # z_id (source); .detach() does not change fwd value
    z_tgt = z[half:]     # output_z_id (target)
    # torch.bmm(zx.unsqueeze(1), zy.unsqueeze(2)).squeeze() -> per-row dot
    ip = jnp.sum(z_src * z_tgt, axis=-1, keepdims=True)            # (B, 1)
    # nn.L1Loss()(ones_like(ip), ip) -> mean |1 - ip|
    loss_ref[...] = jnp.mean(jnp.abs(1.0 - ip), axis=0, keepdims=True)


def head_loss(pooled, w, b):
    n2 = pooled.shape[0]
    out = pl.pallas_call(
        _head_loss_kernel,
        out_shape=jax.ShapeDtypeStruct((1, 1), jnp.float32),
        grid=(1,),
        in_specs=[
            pl.BlockSpec((n2, 1, C_PAD), lambda i: (0, 0, 0)),
            pl.BlockSpec((C_PAD, EMB), lambda i: (0, 0)),
            pl.BlockSpec((1, EMB), lambda i: (0, 0)),
        ],
        out_specs=pl.BlockSpec((1, 1), lambda i: (0, 0)),
    )(pooled, w, b)
    return out[0, 0]


# --------------------------------------------------------------------------
# Glue (plain JAX): resize, output-major patch extraction, parameters
# --------------------------------------------------------------------------
def extract_patches(x_nchw_bf16):
    # (N, 3, 112, 112) bf16 -> (N, 3136, 147) bf16, output-major layout:
    # k = (i*7 + j)*3 + c.  No transpose of the expanded tensor, no K padding.
    N, C, H, W = x_nchw_bf16.shape
    x = jnp.transpose(x_nchw_bf16, (0, 2, 3, 1))                  # NHWC (tiny)
    xp = jnp.pad(x, ((0, 0), (PAD, PAD), (PAD, PAD), (0, 0)))
    Ho = (H + 2 * PAD - K7) // STRIDE + 1
    Wo = (W + 2 * PAD - K7) // STRIDE + 1
    slabs = []
    for i in range(K7):
        for j in range(K7):
            slabs.append(
                xp[:, i:i + STRIDE * Ho:STRIDE, j:j + STRIDE * Wo:STRIDE, :])
    p = jnp.concatenate(slabs, axis=-1)            # (N, Ho, Wo, 49*C)
    return p.reshape(N, Ho * Wo, K7 * K7 * C)      # (N, 3136, 147) bf16


def make_params():
    key = jax.random.PRNGKey(42)
    k1, k2, k3 = jax.random.split(key, 3)
    stem_w = jnp.zeros((K_TRUE, C_PAD), jnp.float32)
    stem_w = stem_w.at[:, :STEM_C].set(
        jax.random.normal(k1, (K_TRUE, STEM_C), jnp.float32) * 0.05)
    fc_w = jnp.zeros((C_PAD, EMB), jnp.float32)
    fc_w = fc_w.at[:STEM_C, :].set(
        jax.random.normal(k2, (STEM_C, EMB), jnp.float32) * 0.05)
    fc_b = jax.random.normal(k3, (1, EMB), jnp.float32) * 0.01
    return {
        "stem_w": stem_w.astype(jnp.bfloat16),   # (147, 128) bf16, lane-dense
        "fc_w": fc_w / SPATIAL,                  # fold mean-pool scale, keep f32
        "fc_b": fc_b,                            # (1, 256) f32
    }


def id_loss_forward(target_img, source_img, params):
    # TODO(synk): weight_map / SVGL.ada_piexls branch not implemented
    # (default weight_map=None path only).
    # One embedding pass over [source; target] (batch 2B).
    imgs = jnp.concatenate([source_img, target_img], axis=0)    # (2B, 3, H, W)
    n2, c = imgs.shape[0], imgs.shape[1]
    # F.interpolate(..., size=112, mode='bilinear') has antialias=False
    x = jax.image.resize(imgs, (n2, c, RESIZE, RESIZE),
                         method="bilinear", antialias=False)     # f32 resize
    x = x.astype(jnp.bfloat16)                   # value-identical to casting
    patches = extract_patches(x)                 # the patches; halves traffic
    pooled = stem_pool(patches, params["stem_w"])                # (2B, 1, 128)
    return head_loss(pooled, params["fc_w"], params["fc_b"])    # scalar


# --------------------------------------------------------------------------
if __name__ == "__main__":
    key = jax.random.PRNGKey(0)
    kt, ks = jax.random.split(key)
    target_img = jax.random.normal(kt, (2, 3, 16, 16), jnp.float32)
    source_img = jax.random.normal(ks, (2, 3, 16, 16), jnp.float32)

    params = make_params()
    fwd = jax.jit(functools.partial(id_loss_forward, params=params))
    loss = fwd(target_img, source_img)
    jax.block_until_ready(loss)
    assert loss.shape == () and loss.dtype == jnp.float32
    assert bool(jnp.isfinite(loss))
    print("KERNEL_OK")
</pallas_src>

<mosaic_0001>
module attributes {stable_mosaic.version = 11 : i64} {
  func.func @_stem_pool_kernel(%arg0: i32, %arg1: memref<1x3136x147xbf16, #tpu.memory_space<vmem>>, %arg2: memref<147x128xbf16, #tpu.memory_space<vmem>>, %arg3: memref<1x1x128xf32, #tpu.memory_space<vmem>>) attributes {dimension_semantics = [#tpu.dimension_semantics<parallel>], iteration_bounds = array<i64: 4>, scalar_prefetch = 0 : i64, scratch_operands = 0 : i64, tpu.core_type = #tpu.core_type<tc>, window_params = [{transform_indices = @transform_0, window_bounds = array<i64: 1, 3136, 147>}, {pipeline_mode = #tpu.pipeline_mode<synchronous>, transform_indices = @transform_1, window_bounds = array<i64: 147, 128>}, {transform_indices = @transform_2, window_bounds = array<i64: 1, 1, 128>}]} {
    %c0 = arith.constant 0 : index
    %c0_0 = arith.constant 0 : index
    %c0_1 = arith.constant 0 : index
    %0 = vector.load %arg1[%c0, %c0_0, %c0_1] : memref<1x3136x147xbf16, #tpu.memory_space<vmem>>, vector<1x3136x147xbf16>
    %1 = vector.shape_cast %0 : vector<1x3136x147xbf16> to vector<3136x147xbf16>
    %c0_2 = arith.constant 0 : index
    %c0_3 = arith.constant 0 : index
    %2 = vector.load %arg2[%c0_2, %c0_3] : memref<147x128xbf16, #tpu.memory_space<vmem>>, vector<147x128xbf16>
    %cst = arith.constant dense<0.000000e+00> : vector<3136x128xf32>
    %3 = tpu.matmul %1, %2, %cst {dimension_numbers = #tpu.dot_dimension_numbers<[1], [0], [0], [1], [0, 0, 1, 1], [], []>} : vector<3136x147xbf16>, vector<147x128xbf16>, vector<3136x128xf32> -> vector<3136x128xf32>
    %cst_4 = arith.constant 0.000000e+00 : f32
    %4 = vector.broadcast %cst_4 : f32 to vector<3136x128xf32>
    %5 = arith.maximumf %3, %4 : vector<3136x128xf32>
    %cst_5 = arith.constant dense<0.000000e+00> : vector<128xf32>
    %6 = vector.multi_reduction <add>, %5, %cst_5 [0] : vector<3136x128xf32> to vector<128xf32>
    %7 = vector.shape_cast %6 : vector<128xf32> to vector<1x128xf32>
    %8 = vector.shape_cast %7 : vector<1x128xf32> to vector<1x1x128xf32>
    %c0_6 = arith.constant 0 : index
    %c0_7 = arith.constant 0 : index
    %c0_8 = arith.constant 0 : index
    %9 = vector.load %arg3[%c0_6, %c0_7, %c0_8] : memref<1x1x128xf32, #tpu.memory_space<vmem>>, vector<1x1x128xf32>
    tpu.vector_store %arg3[%c0_6, %c0_7, %c0_8], %8 {strides = array<i32>} : memref<1x1x128xf32, #tpu.memory_space<vmem>>, vector<1x1x128xf32>,
    return
  }
  func.func @transform_0(%arg0: i32) -> (i32, i32, i32) {
    %c0_i32 = arith.constant 0 : i32
    %c0_i32_0 = arith.constant 0 : i32
    %c0_i32_1 = arith.constant 0 : i32
    return %arg0, %c0_i32, %c0_i32_0 : i32, i32, i32
  }
  func.func @transform_1(%arg0: i32) -> (i32, i32) {
    %c0_i32 = arith.constant 0 : i32
    %c0_i32_0 = arith.constant 0 : i32
    %c0_i32_1 = arith.constant 0 : i32
    return %c0_i32, %c0_i32_0 : i32, i32
  }
  func.func @transform_2(%arg0: i32) -> (i32, i32, i32) {
    %c0_i32 = arith.constant 0 : i32
    %c0_i32_0 = arith.constant 0 : i32
    %c0_i32_1 = arith.constant 0 : i32
    return %arg0, %c0_i32, %c0_i32_0 : i32, i32, i32
  }
}

module attributes {stable_mosaic.version = 11 : i64} {
  func.func @_head_loss_kernel(%arg0: i32, %arg1: memref<4x1x128xf32, #tpu.memory_space<vmem>>, %arg2: memref<128x256xf32, #tpu.memory_space<vmem>>, %arg3: memref<1x256xf32, #tpu.memory_space<vmem>>, %arg4: memref<1x1xf32, #tpu.memory_space<vmem>>) attributes {dimension_semantics = [#tpu.dimension_semantics<arbitrary>], iteration_bounds = array<i64: 1>, scalar_prefetch = 0 : i64, scratch_operands = 0 : i64, tpu.core_type = #tpu.core_type<tc>, window_params = [{pipeline_mode = #tpu.pipeline_mode<synchronous>, transform_indices = @transform_0, window_bounds = array<i64: 4, 1, 128>}, {pipeline_mode = #tpu.pipeline_mode<synchronous>, transform_indices = @transform_1, window_bounds = array<i64: 128, 256>}, {pipeline_mode = #tpu.pipeline_mode<synchronous>, transform_indices = @transform_2, window_bounds = array<i64: 1, 256>}, {pipeline_mode = #tpu.pipeline_mode<synchronous>, transform_indices = @transform_3, window_bounds = array<i64: 1, 1>}]} {
    %c0 = arith.constant 0 : index
    %c0_0 = arith.constant 0 : index
    %c0_1 = arith.constant 0 : index
    %0 = vector.load %arg1[%c0, %c0_0, %c0_1] : memref<4x1x128xf32, #tpu.memory_space<vmem>>, vector<4x1x128xf32>
    %1 = vector.shape_cast %0 : vector<4x1x128xf32> to vector<4x128xf32>
    %c0_2 = arith.constant 0 : index
    %c0_3 = arith.constant 0 : index
    %2 = vector.load %arg2[%c0_2, %c0_3] : memref<128x256xf32, #tpu.memory_space<vmem>>, vector<128x256xf32>
    %cst = arith.constant dense<0.000000e+00> : vector<4x256xf32>
    %3 = tpu.matmul %1, %2, %cst {dimension_numbers = #tpu.dot_dimension_numbers<[1], [0], [0], [1], [0, 0, 1, 1], [], []>} : vector<4x128xf32>, vector<128x256xf32>, vector<4x256xf32> -> vector<4x256xf32>
    %c0_4 = arith.constant 0 : index
    %c0_5 = arith.constant 0 : index
    %4 = vector.load %arg3[%c0_4, %c0_5] : memref<1x256xf32, #tpu.memory_space<vmem>>, vector<1x256xf32>
    %5 = vector.broadcast %4 : vector<1x256xf32> to vector<4x256xf32>
    %6 = arith.addf %3, %5 : vector<4x256xf32>
    %7 = arith.mulf %6, %6 : vector<4x256xf32>
    %cst_6 = arith.constant dense<0.000000e+00> : vector<4xf32>
    %8 = vector.multi_reduction <add>, %7, %cst_6 [1] : vector<4x256xf32> to vector<4xf32>
    %9 = vector.shape_cast %8 : vector<4xf32> to vector<4x1xf32>
    %cst_7 = arith.constant 1.000000e-24 : f32
    %10 = vector.broadcast %cst_7 : f32 to vector<4x1xf32>
    %11 = arith.maximumf %9, %10 : vector<4x1xf32>
    %12 = math.rsqrt %11 : vector<4x1xf32>
    %13 = vector.broadcast %12 : vector<4x1xf32> to vector<4x256xf32>
    %14 = arith.mulf %6, %13 : vector<4x256xf32>
    %15 = vector.extract_strided_slice %14 {offsets = [0, 0], sizes = [2, 256], strides = [1, 1]} : vector<4x256xf32> to vector<2x256xf32>
    %16 = vector.extract_strided_slice %14 {offsets = [2, 0], sizes = [2, 256], strides = [1, 1]} : vector<4x256xf32> to vector<2x256xf32>
    %17 = arith.mulf %15, %16 : vector<2x256xf32>
    %cst_8 = arith.constant dense<0.000000e+00> : vector<2xf32>
    %18 = vector.multi_reduction <add>, %17, %cst_8 [1] : vector<2x256xf32> to vector<2xf32>
    %19 = vector.shape_cast %18 : vector<2xf32> to vector<2x1xf32>
    %cst_9 = arith.constant 1.000000e+00 : f32
    %20 = vector.broadcast %cst_9 : f32 to vector<2x1xf32>
    %21 = arith.subf %20, %19 : vector<2x1xf32>
    %22 = math.absf %21 : vector<2x1xf32>
    %cst_10 = arith.constant dense<0.000000e+00> : vector<1xf32>
    %23 = vector.multi_reduction <add>, %22, %cst_10 [0] : vector<2x1xf32> to vector<1xf32>
    %24 = vector.shape_cast %23 : vector<1xf32> to vector<1x1xf32>
    %cst_11 = arith.constant 2.000000e+00 : f32
    %25 = vector.broadcast %cst_11 : f32 to vector<1x1xf32>
    %26 = arith.divf %24, %25 : vector<1x1xf32>
    %c0_12 = arith.constant 0 : index
    %c0_13 = arith.constant 0 : index
    %27 = vector.load %arg4[%c0_12, %c0_13] : memref<1x1xf32, #tpu.memory_space<vmem>>, vector<1x1xf32>
    tpu.vector_store %arg4[%c0_12, %c0_13], %26 {strides = array<i32>} : memref<1x1xf32, #tpu.memory_space<vmem>>, vector<1x1xf32>,
    return
  }
  func.func @transform_0(%arg0: i32) -> (i32, i32, i32) {
    %c0_i32 = arith.constant 0 : i32
    %c0_i32_0 = arith.constant 0 : i32
    %c0_i32_1 = arith.constant 0 : i32
    %c0_i32_2 = arith.constant 0 : i32
    return %c0_i32, %c0_i32_0, %c0_i32_1 : i32, i32, i32
  }
  func.func @transform_1(%arg0: i32) -> (i32, i32) {
    %c0_i32 = arith.constant 0 : i32
    %c0_i32_0 = arith.constant 0 : i32
    %c0_i32_1 = arith.constant 0 : i32
    return %c0_i32, %c0_i32_0 : i32, i32
  }
  func.func @transform_2(%arg0: i32) -> (i32, i32) {
    %c0_i32 = arith.constant 0 : i32
    %c0_i32_0 = arith.constant 0 : i32
    %c0_i32_1 = arith.constant 0 : i32
    return %c0_i32, %c0_i32_0 : i32, i32
  }
  func.func @transform_3(%arg0: i32) -> (i32, i32) {
    %c0_i32 = arith.constant 0 : i32
    %c0_i32_0 = arith.constant 0 : i32
    %c0_i32_1 = arith.constant 0 : i32
    return %c0_i32, %c0_i32_0 : i32, i32
  }
}

</mosaic_0001>

<bundles_post_ra>
// kernel: id_loss_forward.2
= control target key start
LH: loop header
LB: loop body
LE: loop exit
PB: predicated region body
PF: predicated region fallthrough
CT: control target
= control target key end

     0   :  { %s8037_s9 = smov 0   ;;  %s9664_s0 = inlined_call_operand.vmem [shape: bf16[4,3136,147], index: 0, kind: input, shape index: {}]   ;;  %s9665_s1 = inlined_call_operand.vmem [shape: bf16[147,128], index: 1, kind: input, shape index: {}]   ;;  %s9666_s2 = inlined_call_operand.vmem [shape: f32[4,1,128], index: 2, kind: output, shape index: {}]  }
   0x1 LB: > { %s5784_s10 = sadd.s32 4294967295, %s8019_s9   ;;  %p5788_p0 = scmp.ge.s32.totalorder %s8019_s9, 1  ;;  %s8019_s9 = sphi %s8037_s9, %s12_s9  }
   0x2   : > { %p112_p1 = scmp.lt.s32.totalorder %s8019_s9, 5 }
   0x4   : > { %p113_p2 = pnand %p5788_p0, %p112_p1 }
   0x6   : > { %116 = sbr.rel (%p113_p2) target bundleno = 2140 (0x85c), region = 28 }
   0xb   : > { %v7991_v0 = vld [vmem:[%s9665_s1 + $0x38] sm:$0xff]  ;;  %v551_v1 = vld [vmem:[%s9665_s1 + $0x48] sm:$0x3]  ;;  %vm2962_vm0 = vcmask 1040384   ;;  %vm2963_vm1 = vcmask 1041408   ;;  %p132_p3 = scmp.lt.s32.totalorder %s5784_s10, 3 }
   0xc   : > { %v2353_v2 = vunpack.c.l.b16 %v551_v1  ;;  %2969 = vmatpush.bf16.msra.mxu0 %v7991_v0  ;;  %v7990_v3 = vld [vmem:[%s9665_s1 + $0x30] sm:$0xff]  ;;  %v8021_v4 = vmov 65535   ;;  %7993 = vmatpush.bf16.msra.mxu2 %v7991_v0  ;;  %v7989_v9 = vld [vmem:[%s9665_s1 + $0x28] sm:$0xff]  ;;  %v7992_v10 = vld [vmem:[%s9665_s1 + $0x40] sm:$0xff]  ;;  %vm2373_vm2 = vcmask 154624  }
   0xd   : > { %v2964_v5 = vsel %vm2962_vm0, 4294967295, %v8021_v4  ;;  %s9906_s10 = smov (!%p132_p3, %s5784_s10), 3  ;;  %v7988_v14 = vld [vmem:[%s9665_s1 + $0x20] sm:$0xff]  ;;  %v7987_v15 = vld [vmem:[%s9665_s1 + $0x18] sm:$0xff]  ;;  %v7986_v16 = vld [vmem:[%s9665_s1 + $0x10] sm:$0xff] }
   0xe   : > { %v2363_v6 = vpack.c.b16 %v2353_v2, %v2353_v2  ;;  %v2965_v7 = vsel %vm2963_vm1, %v2964_v5, 0  ;;  %s8003_s17 = smul.u32 3136, %s9906_s10  ;;  %v7985_v17 = vld [vmem:[%s9665_s1 + $0x8] sm:$0xff]  ;;  %v7984_v21 = vld [vmem:[%s9665_s1] sm:$0xff]  ;;  %s139_s11 = scalar_lea.vmem %s9666_s2, %s9906_s10 }
  0x10   : > { %v2967_v8 = vand.u32 %v2965_v7, %v2363_v6  ;;  %2970 = vmatpush.bf16.msra.mxu0 %v7990_v3  ;;  %7994 = vmatpush.bf16.msra.mxu2 %v7990_v3  ;;  %s8066_s24 = scalar_lea.vmem %s9664_s0, %s8003_s17 }
  0x11   : > { %v7592_v11 = vld [vmem:[%s8066_s24 + $0x4] sm:$0xf]  ;;  %v5794_v12 = vld [vmem:[%s8066_s24 + $0x8] sm:$0xf0]  ;;  %v7594_v18 = vld [vmem:[%s8066_s24 + $0x14] sm:$0xf] }
  0x12   : > { %3964 = vmatpush.bf16.msra.mxu1 %v2967_v8  ;;  %8001 = vmatpush.bf16.msra.mxu3 %v2967_v8  ;;  %v5797_v13 = vor.u32 %v7592_v11, %v5794_v12  ;;  %v5802_v19 = vld [vmem:[%s8066_s24 + $0x18] sm:$0xf0]  ;;  %v5792_v22 = vld [vmem:[%s8066_s24] sm:$0xf]  ;;  %v7593_v23 = vld [vmem:[%s8066_s24 + $0x4] sm:$0xf0] }
  0x13   : > { %v5805_v20 = vor.u32 %v7594_v18, %v5802_v19  ;;  %v5793_v24 = vor.u32 %v7593_v23, %v5792_v22  ;;  %v7596_v25 = vld [vmem:[%s8066_s24 + $0x24] sm:$0xf]  ;;  %v5810_v26 = vld [vmem:[%s8066_s24 + $0x28] sm:$0xf0]  ;;  %v5800_v28 = vld [vmem:[%s8066_s24 + $0x10] sm:$0xf] }
  0x14   : > { %2971 = vmatpush.bf16.msra.mxu0 %v7989_v9  ;;  %7995 = vmatpush.bf16.msra.mxu2 %v7989_v9  ;;  %v5813_v27 = vor.u32 %v7596_v25, %v5810_v26  ;;  %v7595_v29 = vld [vmem:[%s8066_s24 + $0x14] sm:$0xf0]  ;;  %v7598_v31 = vld [vmem:[%s8066_s24 + $0x34] sm:$0xf]  ;;  %v5818_v32 = vld [vmem:[%s8066_s24 + $0x38] sm:$0xf0] }
  0x15   : > { %v5801_v30 = vor.u32 %v7595_v29, %v5800_v28  ;;  %v5821_v33 = vor.u32 %v7598_v31, %v5818_v32  ;;  %v5808_v34 = vld [vmem:[%s8066_s24 + $0x20] sm:$0xf]  ;;  %v7597_v35 = vld [vmem:[%s8066_s24 + $0x24] sm:$0xf0]  ;;  %v7600_v37 = vld [vmem:[%s8066_s24 + $0x44] sm:$0xf] }
  0x16   : > { %3965 = vmatpush.bf16.msra.mxu1 %v7992_v10  ;;  %8002 = vmatpush.bf16.msra.mxu3 %v7992_v10  ;;  %v5809_v36 = vor.u32 %v7597_v35, %v5808_v34  ;;  %v5826_v38 = vld [vmem:[%s8066_s24 + $0x48] sm:$0xf0]  ;;  %v5816_v40 = vld [vmem:[%s8066_s24 + $0x30] sm:$0xf]  ;;  %v7599_v41 = vld [vmem:[%s8066_s24 + $0x34] sm:$0xf0] }
  0x17   : > { %v5829_v39 = vor.u32 %v7600_v37, %v5826_v38  ;;  %v5817_v42 = vor.u32 %v7599_v41, %v5816_v40  ;;  %v7602_v43 = vld [vmem:[%s8066_s24 + $0x54] sm:$0xf]  ;;  %v5834_v44 = vld [vmem:[%s8066_s24 + $0x58] sm:$0xf0]  ;;  %v5824_v46 = vld [vmem:[%s8066_s24 + $0x40] sm:$0xf] }
  0x18   : > { %2972 = vmatpush.bf16.msra.mxu0 %v7988_v14  ;;  %7996 = vmatpush.bf16.msra.mxu2 %v7988_v14  ;;  %v5837_v45 = vor.u32 %v7602_v43, %v5834_v44  ;;  %v7601_v47 = vld [vmem:[%s8066_s24 + $0x44] sm:$0xf0]  ;;  %v7604_v49 = vld [vmem:[%s8066_s24 + $0x64] sm:$0xf]  ;;  %v5842_v50 = vld [vmem:[%s8066_s24 + $0x68] sm:$0xf0] }
  0x19   : > { %7394 = vmatmul.msk.bf16.vlgmr.msra.gmra.mxu1 %vm2373_vm2, %v5797_v13  ;;  %v5825_v48 = vor.u32 %v7601_v47, %v5824_v46  ;;  %v5845_v51 = vor.u32 %v7604_v49, %v5842_v50  ;;  %v5832_v52 = vld [vmem:[%s8066_s24 + $0x50] sm:$0xf]  ;;  %v7603_v53 = vld [vmem:[%s8066_s24 + $0x54] sm:$0xf0]  ;;  %v7606_v55 = vld [vmem:[%s8066_s24 + $0x74] sm:$0xf] }
  0x1a   : > { %v5833_v54 = vor.u32 %v7603_v53, %v5832_v52  ;;  %v5850_v56 = vld [vmem:[%s8066_s24 + $0x78] sm:$0xf0]  ;;  %v5840_v58 = vld [vmem:[%s8066_s24 + $0x60] sm:$0xf]  ;;  %v7605_v59 = vld [vmem:[%s8066_s24 + $0x64] sm:$0xf0] }
  0x1b   : > { %v5853_v57 = vor.u32 %v7606_v55, %v5850_v56  ;;  %v5841_v60 = vor.u32 %v7605_v59, %v5840_v58  ;;  %v7608_v61 = vld [vmem:[%s8066_s24 + $0x84] sm:$0xf]  ;;  %v5858_v62 = vld [vmem:[%s8066_s24 + $0x88] sm:$0xf0]  ;;  %v5848_v0 = vld [vmem:[%s8066_s24 + $0x70] sm:$0xf] }
  0x1c   : > { %2973 = vmatpush.bf16.msra.mxu0 %v7987_v15  ;;  %7997 = vmatpush.bf16.msra.mxu2 %v7987_v15  ;;  %v5861_v63 = vor.u32 %v7608_v61, %v5858_v62  ;;  %v7607_v1 = vld [vmem:[%s8066_s24 + $0x74] sm:$0xf0]  ;;  %v7610_v5 = vld [vmem:[%s8066_s24 + $0x94] sm:$0xf]  ;;  %v5866_v6 = vld [vmem:[%s8066_s24 + $0x98] sm:$0xf0] }
  0x1d   : > { %v5849_v3 = vor.u32 %v7607_v1, %v5848_v0  ;;  %v5869_v7 = vor.u32 %v7610_v5, %v5866_v6  ;;  %v5856_v8 = vld [vmem:[%s8066_s24 + $0x80] sm:$0xf]  ;;  %v7609_v9 = vld [vmem:[%s8066_s24 + $0x84] sm:$0xf0]  ;;  %v5874_v18 = vld [vmem:[%s8066_s24 + $0xa8] sm:$0xf0] }
  0x1e   : > { %v5857_v11 = vor.u32 %v7609_v9, %v5856_v8  ;;  %v5864_v22 = vld [vmem:[%s8066_s24 + $0x90] sm:$0xf]  ;;  %v7611_v23 = vld [vmem:[%s8066_s24 + $0x94] sm:$0xf0]  ;;  %v7614_v34 = vld [vmem:[%s8066_s24 + $0xb4] sm:$0xf] }
  0x1f   : > { %v5865_v26 = vor.u32 %v7611_v23, %v5864_v22  ;;  %v5882_v35 = vld [vmem:[%s8066_s24 + $0xb8] sm:$0xf0]  ;;  %v5872_v38 = vld [vmem:[%s8066_s24 + $0xa0] sm:$0xf]  ;;  %v7616_v50 = vld [vmem:[%s8066_s24 + $0xc4] sm:$0xf] }
  0x20   : > { %2974 = vmatpush.bf16.msra.mxu0 %v7986_v16  ;;  %7998 = vmatpush.bf16.msra.mxu2 %v7986_v16  ;;  %v5885_v37 = vor.u32 %v7614_v34, %v5882_v35  ;;  %v7615_v55 = vld [vmem:[%s8066_s24 + $0xb4] sm:$0xf0]  ;;  %v5888_v6 = vld [vmem:[%s8066_s24 + $0xc0] sm:$0xf]  ;;  %v5896_v22 = vld [vmem:[%s8066_s24 + $0xd0] sm:$0xf] }
  0x21   : > { %v7619_v23 = vld [vmem:[%s8066_s24 + $0xd4] sm:$0xf0]  ;;  %v7622_v34 = vld [vmem:[%s8066_s24 + $0xf4] sm:$0xf]  ;;  %v5914_v35 = vld [vmem:[%s8066_s24 + $0xf8] sm:$0xf0] }
  0x24   : > { %2975 = vmatpush.bf16.msra.mxu0 %v7985_v17  ;;  %7999 = vmatpush.bf16.msra.mxu2 %v7985_v17  ;;  %v7612_v17 = vld [vmem:[%s8066_s24 + $0xa4] sm:$0xf] }
  0x28   : > { %2976 = vmatpush.bf16.msra.mxu0 %v7984_v21  ;;  %8000 = vmatpush.bf16.msra.mxu2 %v7984_v21  ;;  %v5877_v21 = vor.u32 %v7612_v17, %v5874_v18  ;;  %v7620_v18 = vld [vmem:[%s8066_s24 + $0xe4] sm:$0xf] }
  0x29   : > { %7395 = vmatmul.msk.bf16.gmra.mxu1 %vm2373_vm2, %v5805_v20 }
  0x2b   : > { %2977 = vmatmul.bf16.vlgmr.msra.gmra.mxu0 %v5793_v24 }
  0x39   : > { %7396 = vmatmul.msk.bf16.gmra.mxu1 %vm2373_vm2, %v5813_v27 }
  0x3b   : > { %2982 = vmatmul.bf16.gmra.mxu0 %v5801_v30 }
  0x49   : > { %7397 = vmatmul.msk.bf16.gmra.mxu1 %vm2373_vm2, %v5821_v33 }
  0x4b   : > { %2987 = vmatmul.bf16.gmra.mxu0 %v5809_v36 }
  0x59   : > { %7398 = vmatmul.msk.bf16.gmra.mxu1 %vm2373_vm2, %v5829_v39  ;;  %v7613_v39 = vld [vmem:[%s8066_s24 + $0xa4] sm:$0xf0] }
  0x5b   : > { %2992 = vmatmul.bf16.gmra.mxu0 %v5817_v42  ;;  %v5873_v42 = vor.u32 %v7613_v39, %v5872_v38  ;;  %v5904_v38 = vld [vmem:[%s8066_s24 + $0xe0] sm:$0xf]  ;;  %v7621_v39 = vld [vmem:[%s8066_s24 + $0xe4] sm:$0xf0] }
  0x69   : > { %7399 = vmatmul.msk.bf16.gmra.mxu1 %vm2373_vm2, %v5837_v45 }
  0x6b   : > { %2997 = vmatmul.bf16.gmra.mxu0 %v5825_v48 }
  0x79   : > { %7400 = vmatmul.msk.bf16.gmra.mxu1 %vm2373_vm2, %v5845_v51  ;;  %v5890_v51 = vld [vmem:[%s8066_s24 + $0xc8] sm:$0xf0] }
  0x7a   : > { %v5893_v53 = vor.u32 %v7616_v50, %v5890_v51  ;;  %v7624_v50 = vld [vmem:[%s8066_s24 + $0x104] sm:$0xf]  ;;  %v5922_v51 = vld [vmem:[%s8066_s24 + $0x108] sm:$0xf0] }
  0x7b   : > { %3002 = vmatmul.bf16.gmra.mxu0 %v5833_v54  ;;  %v5880_v54 = vld [vmem:[%s8066_s24 + $0xb0] sm:$0xf] }
  0x7c   : > { %v5881_v58 = vor.u32 %v7615_v55, %v5880_v54  ;;  %v5912_v54 = vld [vmem:[%s8066_s24 + $0xf0] sm:$0xf]  ;;  %v7623_v55 = vld [vmem:[%s8066_s24 + $0xf4] sm:$0xf0] }
  0x89   : > { %7401 = vmatmul.msk.bf16.gmra.mxu1 %vm2373_vm2, %v5853_v57 }
  0x8b   : > { %3007 = vmatmul.bf16.gmra.mxu0 %v5841_v60 }
  0x96   : > { %v3967_v2 = vpop.f32.mrf.mxu1 }
  0x99   : > { %7402 = vmatmul.msk.bf16.gmra.mxu1 %vm2373_vm2, %v5861_v63 }
  0x9b   : > { %3012 = vmatmul.bf16.gmra.mxu0 %v5849_v3  ;;  %v5898_v3 = vld [vmem:[%s8066_s24 + $0xd8] sm:$0xf0] }
  0x9e   : > { %v3969_v4 = vpop.f32.mrf.mxu1 }
  0xa6   : > { %v3972_v10 = vpop.f32.mrf.mxu1 }
  0xa8   : > { %v2978_v12 = vpop.f32.mrf.mxu0 }
  0xa9   : > { %7403 = vmatmul.msk.bf16.gmra.mxu1 %vm2373_vm2, %v5869_v7  ;;  %v3968_v13 = vadd.f32 %v3967_v2, %v2978_v12  ;;  %v7618_v2 = vld [vmem:[%s8066_s24 + $0xd4] sm:$0xf]  ;;  %v7617_v7 = vld [vmem:[%s8066_s24 + $0xc4] sm:$0xf0] }
  0xaa   : > { %v5901_v5 = vor.u32 %v7618_v2, %v5898_v3  ;;  %v7626_v2 = vld [vmem:[%s8066_s24 + $0x114] sm:$0xf]  ;;  %v5930_v3 = vld [vmem:[%s8066_s24 + $0x118] sm:$0xf0] }
  0xab   : > { %3017 = vmatmul.bf16.gmra.mxu0 %v5857_v11  ;;  %v4947_v19 = vmax.f32 %v3968_v13, 0.0 }
  0xae   : > { %v3974_v14 = vpop.f32.mrf.mxu1 }
  0xb0   : > { %v2980_v15 = vpop.f32.mrf.mxu0 }
  0xb1   : > { %v3970_v16 = vadd.f32 %v3969_v4, %v2980_v15 }
  0xb3   : > { %v4948_v20 = vmax.f32 %v3970_v16, 0.0 }
  0xb5   : > { %v5339_v24 = vadd.f32 %v4948_v20, %v4947_v19  ;;  %v5906_v19 = vld [vmem:[%s8066_s24 + $0xe8] sm:$0xf0] }
  0xb6   : > { %v3977_v25 = vpop.f32.mrf.mxu1 }
  0xb8   : > { %v2983_v27 = vpop.f32.mrf.mxu0 }
  0xb9   : > { %7404 = vmatmul.msk.bf16.gmra.mxu1 %vm2373_vm2, %v5877_v21  ;;  %v3973_v28 = vadd.f32 %v3972_v10, %v2983_v27  ;;  %v5889_v10 = vor.u32 %v7617_v7, %v5888_v6  ;;  %v5909_v21 = vor.u32 %v7620_v18, %v5906_v19  ;;  %v5920_v6 = vld [vmem:[%s8066_s24 + $0x100] sm:$0xf]  ;;  %v7625_v7 = vld [vmem:[%s8066_s24 + $0x104] sm:$0xf0]  ;;  %v7628_v18 = vld [vmem:[%s8066_s24 + $0x124] sm:$0xf] }
  0xba   : > { %v5938_v19 = vld [vmem:[%s8066_s24 + $0x128] sm:$0xf0] }
  0xbb   : > { %v4949_v29 = vmax.f32 %v3973_v28, 0.0  ;;  %3022 = vmatmul.bf16.gmra.mxu0 %v5865_v26  ;;  %v5897_v26 = vor.u32 %v7619_v23, %v5896_v22  ;;  %v5928_v22 = vld [vmem:[%s8066_s24 + $0x110] sm:$0xf]  ;;  %v7627_v23 = vld [vmem:[%s8066_s24 + $0x114] sm:$0xf0] }
  0xbd   : > { %v5340_v30 = vadd.f32 %v5339_v24, %v4949_v29 }
  0xbe   : > { %v3979_v31 = vpop.f32.mrf.mxu1 }
  0xc0   : > { %v2985_v32 = vpop.f32.mrf.mxu0 }
  0xc1   : > { %v3975_v33 = vadd.f32 %v3974_v14, %v2985_v32 }
  0xc3   : > { %v4950_v36 = vmax.f32 %v3975_v33, 0.0 }
  0xc5   : > { %v5341_v40 = vadd.f32 %v5340_v30, %v4950_v36 }
  0xc6   : > { %v3982_v41 = vpop.f32.mrf.mxu1 }
  0xc8   : > { %v2988_v43 = vpop.f32.mrf.mxu0 }
  0xc9   : > { %7405 = vmatmul.msk.bf16.gmra.mxu1 %vm2373_vm2, %v5885_v37  ;;  %v3978_v44 = vadd.f32 %v3977_v25, %v2988_v43  ;;  %v5917_v37 = vor.u32 %v7622_v34, %v5914_v35  ;;  %v7630_v34 = vld [vmem:[%s8066_s24 + $0x134] sm:$0xf]  ;;  %v5946_v35 = vld [vmem:[%s8066_s24 + $0x138] sm:$0xf0] }
  0xcb   : > { %v4951_v45 = vmax.f32 %v3978_v44, 0.0  ;;  %3027 = vmatmul.bf16.gmra.mxu0 %v5873_v42  ;;  %v5905_v42 = vor.u32 %v7621_v39, %v5904_v38  ;;  %v5936_v38 = vld [vmem:[%s8066_s24 + $0x120] sm:$0xf]  ;;  %v7629_v39 = vld [vmem:[%s8066_s24 + $0x124] sm:$0xf0] }
  0xcd   : > { %v5342_v46 = vadd.f32 %v5341_v40, %v4951_v45 }
  0xce   : > { %v3984_v47 = vpop.f32.mrf.mxu1 }
  0xd0   : > { %v2990_v48 = vpop.f32.mrf.mxu0 }
  0xd1   : > { %v3980_v49 = vadd.f32 %v3979_v31, %v2990_v48 }
  0xd3   : > { %v4952_v52 = vmax.f32 %v3980_v49, 0.0 }
  0xd5   : > { %v5343_v56 = vadd.f32 %v5342_v46, %v4952_v52 }
  0xd6   : > { %v3987_v57 = vpop.f32.mrf.mxu1 }
  0xd8   : > { %v2993_v59 = vpop.f32.mrf.mxu0 }
  0xd9   : > { %7406 = vmatmul.msk.bf16.gmra.mxu1 %vm2373_vm2, %v5893_v53  ;;  %v3983_v60 = vadd.f32 %v3982_v41, %v2993_v59  ;;  %v5925_v53 = vor.u32 %v7624_v50, %v5922_v51  ;;  %v7632_v50 = vld [vmem:[%s8066_s24 + $0x144] sm:$0xf]  ;;  %v5954_v51 = vld [vmem:[%s8066_s24 + $0x148] sm:$0xf0] }
  0xdb   : > { %v4953_v61 = vmax.f32 %v3983_v60, 0.0  ;;  %3032 = vmatmul.bf16.gmra.mxu0 %v5881_v58  ;;  %v5913_v58 = vor.u32 %v7623_v55, %v5912_v54  ;;  %v5944_v54 = vld [vmem:[%s8066_s24 + $0x130] sm:$0xf]  ;;  %v7631_v55 = vld [vmem:[%s8066_s24 + $0x134] sm:$0xf0] }
  0xdd   : > { %v5344_v62 = vadd.f32 %v5343_v56, %v4953_v61 }
  0xde   : > { %v3989_v63 = vpop.f32.mrf.mxu1 }
  0xe0   : > { %v2995_v0 = vpop.f32.mrf.mxu0 }
  0xe1   : > { %v3985_v1 = vadd.f32 %v3984_v47, %v2995_v0 }
  0xe3   : > { %v4954_v4 = vmax.f32 %v3985_v1, 0.0 }
  0xe5   : > { %v5345_v8 = vadd.f32 %v5344_v62, %v4954_v4 }
  0xe6   : > { %v3992_v9 = vpop.f32.mrf.mxu1 }
  0xe8   : > { %v2998_v11 = vpop.f32.mrf.mxu0 }
  0xe9   : > { %7407 = vmatmul.msk.bf16.gmra.mxu1 %vm2373_vm2, %v5901_v5  ;;  %v3988_v12 = vadd.f32 %v3987_v57, %v2998_v11  ;;  %v5933_v5 = vor.u32 %v7626_v2, %v5930_v3  ;;  %v7634_v2 = vld [vmem:[%s8066_s24 + $0x154] sm:$0xf]  ;;  %v5962_v3 = vld [vmem:[%s8066_s24 + $0x158] sm:$0xf0] }
  0xeb   : > { %v4955_v13 = vmax.f32 %v3988_v12, 0.0  ;;  %3037 = vmatmul.bf16.gmra.mxu0 %v5889_v10  ;;  %v5921_v10 = vor.u32 %v7625_v7, %v5920_v6  ;;  %v5952_v6 = vld [vmem:[%s8066_s24 + $0x140] sm:$0xf]  ;;  %v7633_v7 = vld [vmem:[%s8066_s24 + $0x144] sm:$0xf0] }
  0xed   : > { %v5346_v14 = vadd.f32 %v5345_v8, %v4955_v13 }
  0xee   : > { %v3994_v15 = vpop.f32.mrf.mxu1 }
  0xf0   : > { %v3000_v16 = vpop.f32.mrf.mxu0 }
  0xf1   : > { %v3990_v17 = vadd.f32 %v3989_v63, %v3000_v16 }
  0xf3   : > { %v4956_v20 = vmax.f32 %v3990_v17, 0.0 }
  0xf5   : > { %v5347_v24 = vadd.f32 %v5346_v14, %v4956_v20 }
  0xf6   : > { %v3997_v25 = vpop.f32.mrf.mxu1 }
  0xf8   : > { %v3003_v27 = vpop.f32.mrf.mxu0 }
  0xf9   : > { %7408 = vmatmul.msk.bf16.gmra.mxu1 %vm2373_vm2, %v5909_v21  ;;  %v3993_v28 = vadd.f32 %v3992_v9, %v3003_v27  ;;  %v5941_v21 = vor.u32 %v7628_v18, %v5938_v19  ;;  %v7636_v18 = vld [vmem:[%s8066_s24 + $0x164] sm:$0xf]  ;;  %v5970_v19 = vld [vmem:[%s8066_s24 + $0x168] sm:$0xf0] }
  0xfb   : > { %v4957_v29 = vmax.f32 %v3993_v28, 0.0  ;;  %3042 = vmatmul.bf16.gmra.mxu0 %v5897_v26  ;;  %v5929_v26 = vor.u32 %v7627_v23, %v5928_v22  ;;  %v5960_v22 = vld [vmem:[%s8066_s24 + $0x150] sm:$0xf]  ;;  %v7635_v23 = vld [vmem:[%s8066_s24 + $0x154] sm:$0xf0] }
  0xfd   : > { %v5348_v30 = vadd.f32 %v5347_v24, %v4957_v29 }
  0xfe   : > { %v3999_v31 = vpop.f32.mrf.mxu1 }
 0x100   : > { %v3005_v32 = vpop.f32.mrf.mxu0 }
 0x101   : > { %v3995_v33 = vadd.f32 %v3994_v15, %v3005_v32 }
 0x103   : > { %v4958_v36 = vmax.f32 %v3995_v33, 0.0 }
 0x105   : > { %v5349_v40 = vadd.f32 %v5348_v30, %v4958_v36 }
 0x106   : > { %v4002_v41 = vpop.f32.mrf.mxu1 }
 0x108   : > { %v3008_v43 = vpop.f32.mrf.mxu0 }
 0x109   : > { %7409 = vmatmul.msk.bf16.gmra.mxu1 %vm2373_vm2, %v5917_v37  ;;  %v3998_v44 = vadd.f32 %v3997_v25, %v3008_v43  ;;  %v5949_v37 = vor.u32 %v7630_v34, %v5946_v35  ;;  %v7638_v34 = vld [vmem:[%s8066_s24 + $0x174] sm:$0xf]  ;;  %v5978_v35 = vld [vmem:[%s8066_s24 + $0x178] sm:$0xf0] }
 0x10b   : > { %v4959_v45 = vmax.f32 %v3998_v44, 0.0  ;;  %3047 = vmatmul.bf16.gmra.mxu0 %v5905_v42  ;;  %v5937_v42 = vor.u32 %v7629_v39, %v5936_v38 }
 0x10d   : > { %v5350_v46 = vadd.f32 %v5349_v40, %v4959_v45 }
 0x10e   : > { %v4004_v47 = vpop.f32.mrf.mxu1 }
 0x110   : > { %v3010_v48 = vpop.f32.mrf.mxu0 }
 0x111   : > { %v4000_v49 = vadd.f32 %v3999_v31, %v3010_v48 }
 0x113   : > { %v4960_v52 = vmax.f32 %v4000_v49, 0.0 }
 0x115   : > { %v5351_v56 = vadd.f32 %v5350_v46, %v4960_v52 }
 0x116   : > { %v4007_v57 = vpop.f32.mrf.mxu1 }
 0x118   : > { %v3013_v59 = vpop.f32.mrf.mxu0 }
 0x119   : > { %7410 = vmatmul.msk.bf16.gmra.mxu1 %vm2373_vm2, %v5925_v53  ;;  %v4003_v60 = vadd.f32 %v4002_v41, %v3013_v59  ;;  %v5957_v53 = vor.u32 %v7632_v50, %v5954_v51 }
 0x11b   : > { %v4961_v61 = vmax.f32 %v4003_v60, 0.0  ;;  %3052 = vmatmul.bf16.gmra.mxu0 %v5913_v58  ;;  %v5945_v58 = vor.u32 %v7631_v55, %v5944_v54  ;;  %v5986_v54 = vld [vmem:[%s8066_s24 + $0x188] sm:$0xf0]  ;;  %v6584_v55 = vld [vmem:[%s8066_s24 + $0x630] sm:$0xf] }
 0x11d   : > { %v5352_v62 = vadd.f32 %v5351_v56, %v4961_v61 }
 0x11e   : > { %v4009_v63 = vpop.f32.mrf.mxu1 }
 0x120   : > { %v3015_v0 = vpop.f32.mrf.mxu0 }
 0x121   : > { %v4005_v1 = vadd.f32 %v4004_v47, %v3015_v0 }
 0x123   : > { %v4962_v4 = vmax.f32 %v4005_v1, 0.0 }
 0x125   : > { %v5353_v8 = vadd.f32 %v5352_v62, %v4962_v4 }
 0x126   : > { %v4012_v9 = vpop.f32.mrf.mxu1 }
 0x128   : > { %v3018_v11 = vpop.f32.mrf.mxu0 }
 0x129   : > { %7411 = vmatmul.msk.bf16.gmra.mxu1 %vm2373_vm2, %v5933_v5  ;;  %v4008_v12 = vadd.f32 %v4007_v57, %v3018_v11  ;;  %v5965_v5 = vor.u32 %v7634_v2, %v5962_v3 }
 0x12b   : > { %v4963_v13 = vmax.f32 %v4008_v12, 0.0  ;;  %3057 = vmatmul.bf16.gmra.mxu0 %v5921_v10  ;;  %v5953_v10 = vor.u32 %v7633_v7, %v5952_v6 }
 0x12d   : > { %v5354_v14 = vadd.f32 %v5353_v8, %v4963_v13 }
 0x12e   : > { %v4014_v15 = vpop.f32.mrf.mxu1 }
 0x130   : > { %v3020_v16 = vpop.f32.mrf.mxu0 }
 0x131   : > { %v4010_v17 = vadd.f32 %v4009_v63, %v3020_v16 }
 0x133   : > { %v4964_v20 = vmax.f32 %v4010_v17, 0.0 }
 0x135   : > { %v5355_v24 = vadd.f32 %v5354_v14, %v4964_v20 }
 0x136   : > { %v4017_v25 = vpop.f32.mrf.mxu1 }
 0x138   : > { %v3023_v27 = vpop.f32.mrf.mxu0 }
 0x139   : > { %7412 = vmatmul.msk.bf16.gmra.mxu1 %vm2373_vm2, %v5941_v21  ;;  %v4013_v28 = vadd.f32 %v4012_v9, %v3023_v27  ;;  %v5973_v21 = vor.u32 %v7636_v18, %v5970_v19  ;;  %v6594_v18 = vld [vmem:[%s8066_s24 + $0x648] sm:$0xf0] }
 0x13b   : > { %v4965_v29 = vmax.f32 %v4013_v28, 0.0  ;;  %3062 = vmatmul.bf16.gmra.mxu0 %v5929_v26  ;;  %v5961_v26 = vor.u32 %v7635_v23, %v5960_v22 }
 0x13d   : > { %v5356_v30 = vadd.f32 %v5355_v24, %v4965_v29 }
 0x13e   : > { %v4019_v31 = vpop.f32.mrf.mxu1 }
 0x140   : > { %v3025_v32 = vpop.f32.mrf.mxu0 }
 0x141   : > { %v4015_v33 = vadd.f32 %v4014_v15, %v3025_v32 }
 0x143   : > { %v4966_v36 = vmax.f32 %v4015_v33, 0.0 }
 0x145   : > { %v5357_v40 = vadd.f32 %v5356_v30, %v4966_v36  ;;  %v6576_v36 = vld [vmem:[%s8066_s24 + $0x620] sm:$0xf] }
 0x146   : > { %v4022_v41 = vpop.f32.mrf.mxu1 }
 0x148   : > { %v3028_v43 = vpop.f32.mrf.mxu0 }
 0x149   : > { %7413 = vmatmul.msk.bf16.gmra.mxu1 %vm2373_vm2, %v5949_v37  ;;  %v4018_v44 = vadd.f32 %v4017_v25, %v3028_v43  ;;  %v7789_v37 = vld [vmem:[%s8066_s24 + $0x624] sm:$0xf0] }
 0x14a   : > { %v6577_v39 = vor.u32 %v7789_v37, %v6576_v36  ;;  %v7795_v36 = vld [vmem:[%s8066_s24 + $0x654] sm:$0xf0]  ;;  %v7794_v37 = vld [vmem:[%s8066_s24 + $0x654] sm:$0xf] }
 0x14b   : > { %v4967_v45 = vmax.f32 %v4018_v44, 0.0  ;;  %3067 = vmatmul.bf16.gmra.mxu0 %v5937_v42  ;;  %v7637_v42 = vld [vmem:[%s8066_s24 + $0x164] sm:$0xf0] }
 0x14c   : > { %3467 = vmatmul.bf16.vlgmr.msra.gmra.mxu2 %v6577_v39 }
 0x14d   : > { %v5358_v46 = vadd.f32 %v5357_v40, %v4967_v45  ;;  %v5981_v40 = vor.u32 %v7638_v34, %v5978_v35  ;;  %v6002_v34 = vld [vmem:[%s8066_s24 + $0x1a8] sm:$0xf0]  ;;  %v6600_v35 = vld [vmem:[%s8066_s24 + $0x650] sm:$0xf] }
 0x14e   : > { %v4024_v47 = vpop.f32.mrf.mxu1  ;;  %v6601_v39 = vor.u32 %v7795_v36, %v6600_v35  ;;  %v7650_v35 = vld [vmem:[%s8066_s24 + $0x1d4] sm:$0xf]  ;;  %v6026_v36 = vld [vmem:[%s8066_s24 + $0x1d8] sm:$0xf0] }
 0x150   : > { %v3030_v48 = vpop.f32.mrf.mxu0 }
 0x151   : > { %v4020_v49 = vadd.f32 %v4019_v31, %v3030_v48 }
 0x153   : > { %v4968_v52 = vmax.f32 %v4020_v49, 0.0 }
 0x155   : > { %v5359_v56 = vadd.f32 %v5358_v46, %v4968_v52 }
 0x156   : > { %v4027_v57 = vpop.f32.mrf.mxu1 }
 0x158   : > { %v3033_v59 = vpop.f32.mrf.mxu0 }
 0x159   : > { %7414 = vmatmul.msk.bf16.gmra.mxu1 %vm2373_vm2, %v5957_v53  ;;  %v4023_v60 = vadd.f32 %v4022_v41, %v3033_v59  ;;  %v5968_v41 = vld [vmem:[%s8066_s24 + $0x160] sm:$0xf]  ;;  %v7640_v53 = vld [vmem:[%s8066_s24 + $0x184] sm:$0xf] }
 0x15a   : > { %v5969_v45 = vor.u32 %v7637_v42, %v5968_v41  ;;  %v5992_v42 = vld [vmem:[%s8066_s24 + $0x190] sm:$0xf] }
 0x15b   : > { %v4969_v61 = vmax.f32 %v4023_v60, 0.0  ;;  %3072 = vmatmul.bf16.gmra.mxu0 %v5945_v58  ;;  %v6586_v60 = vld [vmem:[%s8066_s24 + $0x638] sm:$0xf0] }
 0x15d   : > { %v5360_v62 = vadd.f32 %v5359_v56, %v4969_v61  ;;  %v7791_v56 = vld [vmem:[%s8066_s24 + $0x634] sm:$0xf0]  ;;  %v5989_v61 = vor.u32 %v7640_v53, %v5986_v54 }
 0x15e   : > { %v4029_v63 = vpop.f32.mrf.mxu1  ;;  %v6585_v59 = vor.u32 %v7791_v56, %v6584_v55  ;;  %v7646_v55 = vld [vmem:[%s8066_s24 + $0x1b4] sm:$0xf]  ;;  %v6010_v56 = vld [vmem:[%s8066_s24 + $0x1b8] sm:$0xf0] }
 0x160   : > { %v3035_v0 = vpop.f32.mrf.mxu0  ;;  %3472 = vmatmul.bf16.gmra.mxu2 %v6585_v59  ;;  %v7796_v59 = vld [vmem:[%s8066_s24 + $0x664] sm:$0xf] }
 0x161   : > { %v4025_v1 = vadd.f32 %v4024_v47, %v3035_v0 }
 0x163   : > { %v4970_v4 = vmax.f32 %v4025_v1, 0.0 }
 0x165   : > { %v5361_v8 = vadd.f32 %v5360_v62, %v4970_v4  ;;  %v5976_v62 = vld [vmem:[%s8066_s24 + $0x170] sm:$0xf] }
 0x166   : > { %v4032_v9 = vpop.f32.mrf.mxu1 }
 0x168   : > { %v3038_v11 = vpop.f32.mrf.mxu0 }
 0x169   : > { %7415 = vmatmul.msk.bf16.gmra.mxu1 %vm2373_vm2, %v5965_v5  ;;  %v4028_v12 = vadd.f32 %v4027_v57, %v3038_v11  ;;  %v7790_v57 = vld [vmem:[%s8066_s24 + $0x634] sm:$0xf] }
 0x16a   : > { %v6589_v0 = vor.u32 %v7790_v57, %v6586_v60  ;;  %v7642_v11 = vld [vmem:[%s8066_s24 + $0x194] sm:$0xf]  ;;  %v6608_v57 = vld [vmem:[%s8066_s24 + $0x660] sm:$0xf] }
 0x16b   : > { %v4971_v13 = vmax.f32 %v4028_v12, 0.0  ;;  %3077 = vmatmul.bf16.gmra.mxu0 %v5953_v10  ;;  %v5994_v12 = vld [vmem:[%s8066_s24 + $0x198] sm:$0xf0] }
 0x16c   : > { %7493 = vmatmul.msk.bf16.vlgmr.msra.gmra.mxu3 %vm2373_vm2, %v6589_v0  ;;  %v5997_v19 = vor.u32 %v7642_v11, %v5994_v12  ;;  %v6000_v0 = vld [vmem:[%s8066_s24 + $0x1a0] sm:$0xf] }
 0x16d   : > { %v5362_v14 = vadd.f32 %v5361_v8, %v4971_v13  ;;  %v6592_v13 = vld [vmem:[%s8066_s24 + $0x640] sm:$0xf] }
 0x16e   : > { %v4034_v15 = vpop.f32.mrf.mxu1 }
 0x170   : > { %v3040_v16 = vpop.f32.mrf.mxu0 }
 0x171   : > { %v4030_v17 = vadd.f32 %v4029_v63, %v3040_v16  ;;  %v7639_v63 = vld [vmem:[%s8066_s24 + $0x174] sm:$0xf0] }
 0x172   : > { %v5977_v3 = vor.u32 %v7639_v63, %v5976_v62  ;;  %v6610_v62 = vld [vmem:[%s8066_s24 + $0x668] sm:$0xf0]  ;;  %v6013_v63 = vor.u32 %v7646_v55, %v6010_v56 }
 0x173   : > { %v4972_v20 = vmax.f32 %v4030_v17, 0.0 }
 0x175   : > { %v5363_v24 = vadd.f32 %v5362_v14, %v4972_v20  ;;  %v7793_v14 = vld [vmem:[%s8066_s24 + $0x644] sm:$0xf0]  ;;  %v5984_v20 = vld [vmem:[%s8066_s24 + $0x180] sm:$0xf] }
 0x176   : > { %v4037_v25 = vpop.f32.mrf.mxu1  ;;  %v6593_v17 = vor.u32 %v7793_v14, %v6592_v13  ;;  %v7648_v13 = vld [vmem:[%s8066_s24 + $0x1c4] sm:$0xf]  ;;  %v6018_v14 = vld [vmem:[%s8066_s24 + $0x1c8] sm:$0xf0] }
 0x178   : > { %v3043_v27 = vpop.f32.mrf.mxu0  ;;  %3477 = vmatmul.bf16.gmra.mxu2 %v6593_v17  ;;  %v7798_v17 = vld [vmem:[%s8066_s24 + $0x674] sm:$0xf] }
 0x179   : > { %7416 = vmatmul.msk.bf16.gmra.mxu1 %vm2373_vm2, %v5973_v21  ;;  %v4033_v28 = vadd.f32 %v4032_v9, %v3043_v27  ;;  %v7641_v21 = vld [vmem:[%s8066_s24 + $0x184] sm:$0xf0] }
 0x17b   : > { %v4973_v29 = vmax.f32 %v4033_v28, 0.0  ;;  %3082 = vmatmul.bf16.gmra.mxu0 %v5961_v26 }
 0x17d   : > { %v5364_v30 = vadd.f32 %v5363_v24, %v4973_v29 }
 0x17e   : > { %v4039_v31 = vpop.f32.mrf.mxu1 }
 0x180   : > { %v3045_v32 = vpop.f32.mrf.mxu0 }
 0x181   : > { %v4035_v33 = vadd.f32 %v4034_v15, %v3045_v32  ;;  %v7792_v15 = vld [vmem:[%s8066_s24 + $0x644] sm:$0xf] }
 0x182   : > { %v6597_v22 = vor.u32 %v7792_v15, %v6594_v18  ;;  %v6616_v15 = vld [vmem:[%s8066_s24 + $0x670] sm:$0xf] }
 0x183   : > { %v4974_v38 = vmax.f32 %v4035_v33, 0.0  ;;  %v7644_v33 = vld [vmem:[%s8066_s24 + $0x1a4] sm:$0xf] }
 0x184   : > { %7494 = vmatmul.msk.bf16.gmra.mxu3 %vm2373_vm2, %v6597_v22  ;;  %v6005_v41 = vor.u32 %v7644_v33, %v6002_v34  ;;  %v6008_v22 = vld [vmem:[%s8066_s24 + $0x1b0] sm:$0xf] }
 0x185   : > { %v5365_v43 = vadd.f32 %v5364_v30, %v4974_v38 }
 0x186   : > { %v4042_v44 = vpop.f32.mrf.mxu1 }
 0x188   : > { %v3048_v46 = vpop.f32.mrf.mxu0  ;;  %3482 = vmatmul.bf16.gmra.mxu2 %v6601_v39  ;;  %v7800_v39 = vld [vmem:[%s8066_s24 + $0x684] sm:$0xf] }
 0x189   : > { %7417 = vmatmul.msk.bf16.gmra.mxu1 %vm2373_vm2, %v5981_v40  ;;  %v4038_v47 = vadd.f32 %v4037_v25, %v3048_v46  ;;  %v5985_v25 = vor.u32 %v7641_v21, %v5984_v20  ;;  %v6602_v40 = vld [vmem:[%s8066_s24 + $0x658] sm:$0xf0]  ;;  %v6021_v21 = vor.u32 %v7648_v13, %v6018_v14 }
 0x18a   : > { %v6618_v20 = vld [vmem:[%s8066_s24 + $0x678] sm:$0xf0] }
 0x18b   : > { %v4975_v48 = vmax.f32 %v4038_v47, 0.0  ;;  %3087 = vmatmul.bf16.gmra.mxu0 %v5969_v45 }
 0x18d   : > { %v5366_v49 = vadd.f32 %v5365_v43, %v4975_v48  ;;  %v7643_v43 = vld [vmem:[%s8066_s24 + $0x194] sm:$0xf0] }
 0x18e   : > { %v4044_v50 = vpop.f32.mrf.mxu1  ;;  %v5993_v47 = vor.u32 %v7643_v43, %v5992_v42  ;;  %v6626_v42 = vld [vmem:[%s8066_s24 + $0x688] sm:$0xf0]  ;;  %v6029_v43 = vor.u32 %v7650_v35, %v6026_v36 }
 0x190   : > { %v3050_v51 = vpop.f32.mrf.mxu0 }
 0x191   : > { %v4040_v52 = vadd.f32 %v4039_v31, %v3050_v51 }
 0x193   : > { %v4976_v58 = vmax.f32 %v4040_v52, 0.0 }
 0x195   : > { %v5367_v1 = vadd.f32 %v5366_v49, %v4976_v58  ;;  %v7797_v58 = vld [vmem:[%s8066_s24 + $0x664] sm:$0xf0] }
 0x196   : > { %v4047_v2 = vpop.f32.mrf.mxu1 }
 0x198   : > { %v3053_v4 = vpop.f32.mrf.mxu0 }
 0x199   : > { %7418 = vmatmul.msk.bf16.gmra.mxu1 %vm2373_vm2, %v5989_v61  ;;  %v4043_v5 = vadd.f32 %v4042_v44, %v3053_v4  ;;  %v6605_v44 = vor.u32 %v7794_v37, %v6602_v40  ;;  %v6609_v61 = vor.u32 %v7797_v58, %v6608_v57  ;;  %v6624_v37 = vld [vmem:[%s8066_s24 + $0x680] sm:$0xf]  ;;  %v7652_v57 = vld [vmem:[%s8066_s24 + $0x1e4] sm:$0xf]  ;;  %v6034_v58 = vld [vmem:[%s8066_s24 + $0x1e8] sm:$0xf0] }
 0x19b   : > { %v4977_v6 = vmax.f32 %v4043_v5, 0.0  ;;  %3092 = vmatmul.bf16.gmra.mxu0 %v5977_v3  ;;  %7495 = vmatmul.msk.bf16.gmra.mxu3 %vm2373_vm2, %v6605_v44  ;;  %v6016_v44 = vld [vmem:[%s8066_s24 + $0x1c0] sm:$0xf] }
 0x19c   : > { %3487 = vmatmul.bf16.gmra.mxu2 %v6609_v61  ;;  %v7802_v61 = vld [vmem:[%s8066_s24 + $0x694] sm:$0xf] }
 0x19d   : > { %v5368_v7 = vadd.f32 %v5367_v1, %v4977_v6  ;;  %v7645_v1 = vld [vmem:[%s8066_s24 + $0x1a4] sm:$0xf0] }
 0x19e   : > { %v4049_v8 = vpop.f32.mrf.mxu1  ;;  %v6001_v5 = vor.u32 %v7645_v1, %v6000_v0  ;;  %v6634_v0 = vld [vmem:[%s8066_s24 + $0x698] sm:$0xf0]  ;;  %v6037_v1 = vor.u32 %v7652_v57, %v6034_v58 }
 0x1a0   : > { %v3055_v9 = vpop.f32.mrf.mxu0 }
 0x1a1   : > { %v4045_v10 = vadd.f32 %v4044_v50, %v3055_v9 }
 0x1a3   : > { %v4978_v16 = vmax.f32 %v4045_v10, 0.0 }
 0x1a5   : > { %v5369_v23 = vadd.f32 %v5368_v7, %v4978_v16  ;;  %v7799_v16 = vld [vmem:[%s8066_s24 + $0x674] sm:$0xf0] }
 0x1a6   : > { %v4052_v24 = vpop.f32.mrf.mxu1 }
 0x1a8   : > { %v3058_v26 = vpop.f32.mrf.mxu0 }
 0x1a9   : > { %7419 = vmatmul.msk.bf16.gmra.mxu1 %vm2373_vm2, %v5997_v19  ;;  %v4048_v27 = vadd.f32 %v4047_v2, %v3058_v26  ;;  %v6613_v2 = vor.u32 %v7796_v59, %v6610_v62  ;;  %v6617_v19 = vor.u32 %v7799_v16, %v6616_v15  ;;  %v6632_v59 = vld [vmem:[%s8066_s24 + $0x690] sm:$0xf]  ;;  %v7654_v15 = vld [vmem:[%s8066_s24 + $0x1f4] sm:$0xf]  ;;  %v6042_v16 = vld [vmem:[%s8066_s24 + $0x1f8] sm:$0xf0] }
 0x1ab   : > { %v4979_v28 = vmax.f32 %v4048_v27, 0.0  ;;  %3097 = vmatmul.bf16.gmra.mxu0 %v5985_v25  ;;  %7496 = vmatmul.msk.bf16.gmra.mxu3 %vm2373_vm2, %v6613_v2  ;;  %v6024_v2 = vld [vmem:[%s8066_s24 + $0x1d0] sm:$0xf] }
 0x1ac   : > { %3492 = vmatmul.bf16.gmra.mxu2 %v6617_v19  ;;  %v7804_v19 = vld [vmem:[%s8066_s24 + $0x6a4] sm:$0xf] }
 0x1ad   : > { %v5370_v29 = vadd.f32 %v5369_v23, %v4979_v28  ;;  %v7647_v23 = vld [vmem:[%s8066_s24 + $0x1b4] sm:$0xf0] }
 0x1ae   : > { %v4054_v30 = vpop.f32.mrf.mxu1  ;;  %v6009_v27 = vor.u32 %v7647_v23, %v6008_v22  ;;  %v6642_v22 = vld [vmem:[%s8066_s24 + $0x6a8] sm:$0xf0]  ;;  %v6045_v23 = vor.u32 %v7654_v15, %v6042_v16 }
 0x1b0   : > { %v3060_v31 = vpop.f32.mrf.mxu0 }
 0x1b1   : > { %v4050_v32 = vadd.f32 %v4049_v8, %v3060_v31 }
 0x1b3   : > { %v4980_v38 = vmax.f32 %v4050_v32, 0.0 }
 0x1b5   : > { %v5371_v45 = vadd.f32 %v5370_v29, %v4980_v38  ;;  %v7801_v38 = vld [vmem:[%s8066_s24 + $0x684] sm:$0xf0] }
 0x1b6   : > { %v4057_v46 = vpop.f32.mrf.mxu1 }
 0x1b8   : > { %v3063_v48 = vpop.f32.mrf.mxu0 }
 0x1b9   : > { %7420 = vmatmul.msk.bf16.gmra.mxu1 %vm2373_vm2, %v6005_v41  ;;  %v4053_v49 = vadd.f32 %v4052_v24, %v3063_v48  ;;  %v6621_v24 = vor.u32 %v7798_v17, %v6618_v20  ;;  %v6625_v41 = vor.u32 %v7801_v38, %v6624_v37  ;;  %v6640_v17 = vld [vmem:[%s8066_s24 + $0x6a0] sm:$0xf] }
 0x1bb   : > { %v4981_v50 = vmax.f32 %v4053_v49, 0.0  ;;  %3102 = vmatmul.bf16.gmra.mxu0 %v5993_v47  ;;  %7497 = vmatmul.msk.bf16.gmra.mxu3 %vm2373_vm2, %v6621_v24  ;;  %v6032_v24 = vld [vmem:[%s8066_s24 + $0x1e0] sm:$0xf] }
 0x1bc   : > { %3497 = vmatmul.bf16.gmra.mxu2 %v6625_v41  ;;  %v6648_v41 = vld [vmem:[%s8066_s24 + $0x6b0] sm:$0xf] }
 0x1bd   : > { %v5372_v51 = vadd.f32 %v5371_v45, %v4981_v50  ;;  %v7649_v45 = vld [vmem:[%s8066_s24 + $0x1c4] sm:$0xf0] }
 0x1be   : > { %v4059_v52 = vpop.f32.mrf.mxu1  ;;  %v6017_v49 = vor.u32 %v7649_v45, %v6016_v44 }
 0x1c0   : > { %v3065_v53 = vpop.f32.mrf.mxu0 }
 0x1c1   : > { %v4055_v54 = vadd.f32 %v4054_v30, %v3065_v53 }
 0x1c3   : > { %v4982_v60 = vmax.f32 %v4055_v54, 0.0 }
 0x1c5   : > { %v5373_v3 = vadd.f32 %v5372_v51, %v4982_v60  ;;  %v7803_v60 = vld [vmem:[%s8066_s24 + $0x694] sm:$0xf0] }
 0x1c6   : > { %v4062_v4 = vpop.f32.mrf.mxu1 }
 0x1c8   : > { %v3068_v6 = vpop.f32.mrf.mxu0 }
 0x1c9   : > { %7421 = vmatmul.msk.bf16.gmra.mxu1 %vm2373_vm2, %v6013_v63  ;;  %v4058_v7 = vadd.f32 %v4057_v46, %v3068_v6  ;;  %v6629_v46 = vor.u32 %v7800_v39, %v6626_v42  ;;  %v6633_v63 = vor.u32 %v7803_v60, %v6632_v59  ;;  %v7656_v39 = vld [vmem:[%s8066_s24 + $0x204] sm:$0xf]  ;;  %v7807_v42 = vld [vmem:[%s8066_s24 + $0x6b4] sm:$0xf0] }
 0x1ca   : > { %v6649_v45 = vor.u32 %v7807_v42, %v6648_v41  ;;  %v6056_v42 = vld [vmem:[%s8066_s24 + $0x210] sm:$0xf] }
 0x1cb   : > { %v4983_v8 = vmax.f32 %v4058_v7, 0.0  ;;  %3107 = vmatmul.bf16.gmra.mxu0 %v6001_v5  ;;  %7498 = vmatmul.msk.bf16.gmra.mxu3 %vm2373_vm2, %v6629_v46  ;;  %v6650_v46 = vld [vmem:[%s8066_s24 + $0x6b8] sm:$0xf0] }
 0x1cc   : > { %3502 = vmatmul.bf16.gmra.mxu2 %v6633_v63 }
 0x1cd   : > { %v5374_v9 = vadd.f32 %v5373_v3, %v4983_v8  ;;  %v7651_v3 = vld [vmem:[%s8066_s24 + $0x1d4] sm:$0xf0] }
 0x1ce   : > { %v4064_v10 = vpop.f32.mrf.mxu1  ;;  %v6025_v7 = vor.u32 %v7651_v3, %v6024_v2  ;;  %v6058_v2 = vld [vmem:[%s8066_s24 + $0x218] sm:$0xf0] }
 0x1d0   : > { %v3070_v11 = vpop.f32.mrf.mxu0 }
 0x1d1   : > { %v4060_v12 = vadd.f32 %v4059_v52, %v3070_v11 }
 0x1d3   : > { %v4984_v18 = vmax.f32 %v4060_v12, 0.0 }
 0x1d5   : > { %v5375_v25 = vadd.f32 %v5374_v9, %v4984_v18  ;;  %v7805_v18 = vld [vmem:[%s8066_s24 + $0x6a4] sm:$0xf0] }
 0x1d6   : > { %v4067_v26 = vpop.f32.mrf.mxu1 }
 0x1d8   : > { %v3073_v28 = vpop.f32.mrf.mxu0 }
 0x1d9   : > { %7422 = vmatmul.msk.bf16.gmra.mxu1 %vm2373_vm2, %v6021_v21  ;;  %v4063_v29 = vadd.f32 %v4062_v4, %v3073_v28  ;;  %v6637_v4 = vor.u32 %v7802_v61, %v6634_v0  ;;  %v6641_v21 = vor.u32 %v7805_v18, %v6640_v17 }
 0x1db   : > { %v4985_v30 = vmax.f32 %v4063_v29, 0.0  ;;  %3112 = vmatmul.bf16.gmra.mxu0 %v6009_v27  ;;  %7499 = vmatmul.msk.bf16.gmra.mxu3 %vm2373_vm2, %v6637_v4 }
 0x1dc   : > { %3507 = vmatmul.bf16.gmra.mxu2 %v6641_v21 }
 0x1dd   : > { %v5376_v31 = vadd.f32 %v5375_v25, %v4985_v30  ;;  %v7653_v25 = vld [vmem:[%s8066_s24 + $0x1e4] sm:$0xf0] }
 0x1de   : > { %v4069_v32 = vpop.f32.mrf.mxu1  ;;  %v6033_v29 = vor.u32 %v7653_v25, %v6032_v24 }
 0x1e0   : > { %v3075_v33 = vpop.f32.mrf.mxu0 }
 0x1e1   : > { %v4065_v34 = vadd.f32 %v4064_v10, %v3075_v33 }
 0x1e3   : > { %v4986_v40 = vmax.f32 %v4065_v34, 0.0 }
 0x1e5   : > { %v5377_v47 = vadd.f32 %v5376_v31, %v4986_v40  ;;  %v8283_v31 = vpop.f32.mrf.mxu2  ;;  %v6050_v40 = vld [vmem:[%s8066_s24 + $0x208] sm:$0xf0] }
 0x1e6   : > { %v4072_v48 = vpop.f32.mrf.mxu1 }
 0x1e8   : > { %v3078_v50 = vpop.f32.mrf.mxu0 }
 0x1e9   : > { %7423 = vmatmul.msk.bf16.gmra.mxu1 %vm2373_vm2, %v6029_v43  ;;  %v4068_v51 = vadd.f32 %v4067_v26, %v3078_v50  ;;  %v6645_v26 = vor.u32 %v7804_v19, %v6642_v22  ;;  %v7806_v43 = vld [vmem:[%s8066_s24 + $0x6b4] sm:$0xf] }
 0x1ea   : > { %v6653_v50 = vor.u32 %v7806_v43, %v6650_v46  ;;  %v7659_v43 = vld [vmem:[%s8066_s24 + $0x214] sm:$0xf0] }
 0x1eb   : > { %v4987_v52 = vmax.f32 %v4068_v51, 0.0  ;;  %3117 = vmatmul.bf16.gmra.mxu0 %v6017_v49  ;;  %7500 = vmatmul.msk.bf16.gmra.mxu3 %vm2373_vm2, %v6645_v26  ;;  %v7655_v49 = vld [vmem:[%s8066_s24 + $0x1f4] sm:$0xf0] }
 0x1ec   : > { %3512 = vmatmul.bf16.gmra.mxu2 %v6649_v45 }
 0x1ed   : > { %v5378_v53 = vadd.f32 %v5377_v47, %v4987_v52  ;;  %v8285_v37 = vpop.f32.mrf.mxu2  ;;  %v6053_v47 = vor.u32 %v7656_v39, %v6050_v40  ;;  %v6666_v40 = vld [vmem:[%s8066_s24 + $0x6d8] sm:$0xf0] }
 0x1ee   : > { %v4074_v54 = vpop.f32.mrf.mxu1 }
 0x1ef   : > { %v4462_v57 = vpop.f32.mrf.mxu3 }
 0x1f0   : > { %v3080_v55 = vpop.f32.mrf.mxu0 }
 0x1f1   : > { %v4070_v56 = vadd.f32 %v4069_v32, %v3080_v55 }
 0x1f3   : > { %v4988_v62 = vmax.f32 %v4070_v56, 0.0 }
 0x1f5   : > { %v5379_v5 = vadd.f32 %v5378_v53, %v4988_v62  ;;  %v3473_v55 = vpop.f32.mrf.mxu2 }
 0x1f6   : > { %v4077_v6 = vpop.f32.mrf.mxu1  ;;  %v8297_v61 = vadd.f32 %v4462_v57, %v3473_v55 }
 0x1f7   : > { %v4464_v3 = vpop.f32.mrf.mxu3 }
 0x1f8   : > { %v3083_v8 = vpop.f32.mrf.mxu0 }
 0x1f9   : > { %7424 = vmatmul.msk.bf16.gmra.mxu1 %vm2373_vm2, %v6037_v1  ;;  %v4073_v9 = vadd.f32 %v4072_v48, %v3083_v8  ;;  %v6040_v48 = vld [vmem:[%s8066_s24 + $0x1f0] sm:$0xf]  ;;  %v7658_v1 = vld [vmem:[%s8066_s24 + $0x214] sm:$0xf] }
 0x1fa   : > { %v6041_v53 = vor.u32 %v7655_v49, %v6040_v48 }
 0x1fb   : > { %v4989_v10 = vmax.f32 %v4073_v9, 0.0  ;;  %3122 = vmatmul.bf16.gmra.mxu0 %v6025_v7  ;;  %7501 = vmatmul.msk.bf16.gmra.mxu3 %vm2373_vm2, %v6653_v50  ;;  %v7808_v7 = vld [vmem:[%s8066_s24 + $0x6c4] sm:$0xf] }
 0x1fd   : > { %v5380_v11 = vadd.f32 %v5379_v5, %v4989_v10  ;;  %v3475_v63 = vpop.f32.mrf.mxu2  ;;  %v6656_v5 = vld [vmem:[%s8066_s24 + $0x6c0] sm:$0xf]  ;;  %v6658_v10 = vld [vmem:[%s8066_s24 + $0x6c8] sm:$0xf0] }
 0x1fe   : > { %v4079_v12 = vpop.f32.mrf.mxu1  ;;  %v8301_v4 = vadd.f32 %v4464_v3, %v3475_v63 }
 0x200   : > { %v3085_v13 = vpop.f32.mrf.mxu0 }
 0x201   : > { %v4075_v14 = vadd.f32 %v4074_v54, %v3085_v13  ;;  %v7657_v13 = vld [vmem:[%s8066_s24 + $0x204] sm:$0xf0] }
 0x203   : > { %v4990_v20 = vmax.f32 %v4075_v14, 0.0  ;;  %v6661_v14 = vor.u32 %v7808_v7, %v6658_v10 }
 0x205   : > { %v5381_v27 = vadd.f32 %v5380_v11, %v4990_v20  ;;  %v6061_v11 = vor.u32 %v7658_v1, %v6058_v2  ;;  %v3478_v19 = vpop.f32.mrf.mxu2  ;;  %v7813_v1 = vld [vmem:[%s8066_s24 + $0x6e4] sm:$0xf0]  ;;  %v7812_v2 = vld [vmem:[%s8066_s24 + $0x6e4] sm:$0xf] }
 0x206   : > { %v4082_v28 = vpop.f32.mrf.mxu1 }
 0x207   : > { %v4467_v21 = vpop.f32.mrf.mxu3 }
 0x208   : > { %v3088_v30 = vpop.f32.mrf.mxu0  ;;  %v8311_v25 = vadd.f32 %v4467_v21, %v3478_v19 }
 0x209   : > { %7425 = vmatmul.msk.bf16.gmra.mxu1 %vm2373_vm2, %v6045_v23  ;;  %v4078_v32 = vadd.f32 %v4077_v6, %v3088_v30  ;;  %v7809_v6 = vld [vmem:[%s8066_s24 + $0x6c4] sm:$0xf0]  ;;  %v6066_v30 = vld [vmem:[%s8066_s24 + $0x228] sm:$0xf0] }
 0x20a   : > { %v6657_v9 = vor.u32 %v7809_v6, %v6656_v5  ;;  %v6674_v6 = vld [vmem:[%s8066_s24 + $0x6e8] sm:$0xf0] }
 0x20b   : > { %v4991_v33 = vmax.f32 %v4078_v32, 0.0  ;;  %3127 = vmatmul.bf16.gmra.mxu0 %v6033_v29  ;;  %7502 = vmatmul.msk.bf16.gmra.mxu3 %vm2373_vm2, %v6661_v14  ;;  %v7660_v29 = vld [vmem:[%s8066_s24 + $0x224] sm:$0xf]  ;;  %v6677_v10 = vor.u32 %v7812_v2, %v6674_v6  ;;  %v6690_v6 = vld [vmem:[%s8066_s24 + $0x708] sm:$0xf0] }
 0x20c   : > { %3517 = vmatmul.bf16.gmra.mxu2 %v6657_v9  ;;  %v6069_v41 = vor.u32 %v7660_v29, %v6066_v30  ;;  %v7661_v9 = vld [vmem:[%s8066_s24 + $0x224] sm:$0xf0]  ;;  %v6680_v30 = vld [vmem:[%s8066_s24 + $0x6f0] sm:$0xf]  ;;  %v7816_v2 = vld [vmem:[%s8066_s24 + $0x704] sm:$0xf] }
 0x20d   : > { %v5382_v34 = vadd.f32 %v5381_v27, %v4991_v33  ;;  %v3480_v27 = vpop.f32.mrf.mxu2 }
 0x20e   : > { %v4084_v35 = vpop.f32.mrf.mxu1 }
 0x20f   : > { %v4469_v32 = vpop.f32.mrf.mxu3 }
 0x210   : > { %v3090_v36 = vpop.f32.mrf.mxu0  ;;  %v8315_v33 = vadd.f32 %v4469_v32, %v3480_v27  ;;  %v6082_v27 = vld [vmem:[%s8066_s24 + $0x248] sm:$0xf0]  ;;  %v7815_v32 = vld [vmem:[%s8066_s24 + $0x6f4] sm:$0xf0] }
 0x211   : > { %v4080_v38 = vadd.f32 %v4079_v12, %v3090_v36  ;;  %v6048_v12 = vld [vmem:[%s8066_s24 + $0x200] sm:$0xf]  ;;  %v7810_v36 = vld [vmem:[%s8066_s24 + $0x6d4] sm:$0xf] }
 0x212   : > { %v6049_v17 = vor.u32 %v7657_v13, %v6048_v12 }
 0x213   : > { %v4992_v44 = vmax.f32 %v4080_v38, 0.0 }
 0x215   : > { %v5383_v51 = vadd.f32 %v5382_v34, %v4992_v44  ;;  %v6664_v34 = vld [vmem:[%s8066_s24 + $0x6d0] sm:$0xf]  ;;  %v6669_v44 = vor.u32 %v7810_v36, %v6666_v40  ;;  %v3483_v49 = vpop.f32.mrf.mxu2  ;;  %v6681_v36 = vor.u32 %v7815_v32, %v6680_v30 }
 0x216   : > { %v4087_v52 = vpop.f32.mrf.mxu1  ;;  %v6072_v40 = vld [vmem:[%s8066_s24 + $0x230] sm:$0xf] }
 0x218   : > { %v3093_v54 = vpop.f32.mrf.mxu0 }
 0x219   : > { %7426 = vmatmul.msk.bf16.gmra.mxu1 %vm2373_vm2, %v6053_v47  ;;  %v4083_v56 = vadd.f32 %v4082_v28, %v3093_v54  ;;  %v6057_v47 = vor.u32 %v7659_v43, %v6056_v42 }
 0x21b   : > { %v4993_v58 = vmax.f32 %v4083_v56, 0.0  ;;  %3132 = vmatmul.bf16.gmra.mxu0 %v6041_v53  ;;  %7503 = vmatmul.msk.bf16.gmra.mxu3 %vm2373_vm2, %v6669_v44 }
 0x21d   : > { %v5384_v59 = vadd.f32 %v5383_v51, %v4993_v58  ;;  %v3485_v57 = vpop.f32.mrf.mxu2 }
 0x21e   : > { %v4089_v60 = vpop.f32.mrf.mxu1  ;;  %v4472_v51 = vpop.f32.mrf.mxu3 }
 0x21f   : > { %v8325_v55 = vadd.f32 %v4472_v51, %v3483_v49 }
 0x220   : > { %v3095_v62 = vpop.f32.mrf.mxu0 }
 0x221   : > { %v4085_v0 = vadd.f32 %v4084_v35, %v3095_v62  ;;  %v7811_v35 = vld [vmem:[%s8066_s24 + $0x6d4] sm:$0xf0] }
 0x222   : > { %v6665_v39 = vor.u32 %v7811_v35, %v6664_v34  ;;  %v7814_v34 = vld [vmem:[%s8066_s24 + $0x6f4] sm:$0xf] }
 0x223   : > { %v4994_v8 = vmax.f32 %v4085_v0, 0.0  ;;  %v6672_v0 = vld [vmem:[%s8066_s24 + $0x6e0] sm:$0xf] }
 0x224   : > { %3522 = vmatmul.bf16.gmra.mxu2 %v6665_v39  ;;  %v6673_v5 = vor.u32 %v7813_v1, %v6672_v0  ;;  %v6688_v0 = vld [vmem:[%s8066_s24 + $0x700] sm:$0xf]  ;;  %v7817_v1 = vld [vmem:[%s8066_s24 + $0x704] sm:$0xf0] }
 0x225   : > { %v5385_v15 = vadd.f32 %v5384_v59, %v4994_v8  ;;  %v7662_v59 = vld [vmem:[%s8066_s24 + $0x234] sm:$0xf]  ;;  %v6064_v8 = vld [vmem:[%s8066_s24 + $0x220] sm:$0xf] }
 0x226   : > { %v4092_v16 = vpop.f32.mrf.mxu1  ;;  %v4474_v62 = vpop.f32.mrf.mxu3  ;;  %v6065_v13 = vor.u32 %v7661_v9, %v6064_v8  ;;  %v6080_v8 = vld [vmem:[%s8066_s24 + $0x240] sm:$0xf]  ;;  %v7665_v9 = vld [vmem:[%s8066_s24 + $0x244] sm:$0xf0] }
 0x227   : > { %v8329_v63 = vadd.f32 %v4474_v62, %v3485_v57 }
 0x228   : > { %v3098_v18 = vpop.f32.mrf.mxu0 }
 0x229   : > { %7427 = vmatmul.msk.bf16.gmra.mxu1 %vm2373_vm2, %v6061_v11  ;;  %v4088_v20 = vadd.f32 %v4087_v52, %v3098_v18 }
 0x22b   : > { %v4995_v22 = vmax.f32 %v4088_v20, 0.0  ;;  %3137 = vmatmul.bf16.gmra.mxu0 %v6049_v17  ;;  %7504 = vmatmul.msk.bf16.gmra.mxu3 %vm2373_vm2, %v6677_v10  ;;  %v6693_v10 = vor.u32 %v7816_v2, %v6690_v6  ;;  %v7821_v6 = vld [vmem:[%s8066_s24 + $0x724] sm:$0xf0] }
 0x22d   : > { %v5386_v23 = vadd.f32 %v5385_v15, %v4995_v22  ;;  %v3488_v15 = vpop.f32.mrf.mxu2 }
 0x22e   : > { %v4094_v24 = vpop.f32.mrf.mxu1  ;;  %v4477_v17 = vpop.f32.mrf.mxu3 }
 0x22f   : > { %v8339_v21 = vadd.f32 %v4477_v17, %v3488_v15 }
 0x230   : > { %v3100_v26 = vpop.f32.mrf.mxu0 }
 0x231   : > { %v4090_v28 = vadd.f32 %v4089_v60, %v3100_v26  ;;  %v6074_v60 = vld [vmem:[%s8066_s24 + $0x238] sm:$0xf0]  ;;  %v7664_v26 = vld [vmem:[%s8066_s24 + $0x244] sm:$0xf] }
 0x232   : > { %v6077_v7 = vor.u32 %v7662_v59, %v6074_v60  ;;  %v6085_v39 = vor.u32 %v7664_v26, %v6082_v27  ;;  %v6090_v59 = vld [vmem:[%s8066_s24 + $0x258] sm:$0xf0]  ;;  %v7668_v27 = vld [vmem:[%s8066_s24 + $0x264] sm:$0xf] }
 0x233   : > { %v4996_v38 = vmax.f32 %v4090_v28, 0.0 }
 0x234   : > { %3527 = vmatmul.bf16.gmra.mxu2 %v6673_v5  ;;  %v6689_v5 = vor.u32 %v7817_v1, %v6688_v0  ;;  %v7670_v0 = vld [vmem:[%s8066_s24 + $0x274] sm:$0xf]  ;;  %v6106_v1 = vld [vmem:[%s8066_s24 + $0x278] sm:$0xf0] }
 0x235   : > { %v5387_v45 = vadd.f32 %v5386_v23, %v4996_v38  ;;  %v3490_v23 = vpop.f32.mrf.mxu2  ;;  %v6682_v38 = vld [vmem:[%s8066_s24 + $0x6f8] sm:$0xf0] }
 0x236   : > { %v4097_v46 = vpop.f32.mrf.mxu1  ;;  %v4479_v28 = vpop.f32.mrf.mxu3  ;;  %v6685_v42 = vor.u32 %v7814_v34, %v6682_v38  ;;  %v6696_v34 = vld [vmem:[%s8066_s24 + $0x710] sm:$0xf] }
 0x237   : > { %v8343_v29 = vadd.f32 %v4479_v28, %v3490_v23  ;;  %v6098_v28 = vld [vmem:[%s8066_s24 + $0x268] sm:$0xf0] }
 0x238   : > { %v3103_v48 = vpop.f32.mrf.mxu0 }
 0x239   : > { %7428 = vmatmul.msk.bf16.gmra.mxu1 %vm2373_vm2, %v6069_v41  ;;  %v4093_v50 = vadd.f32 %v4092_v16, %v3103_v48  ;;  %v7663_v41 = vld [vmem:[%s8066_s24 + $0x234] sm:$0xf0] }
 0x23b   : > { %v4997_v52 = vmax.f32 %v4093_v50, 0.0  ;;  %3142 = vmatmul.bf16.gmra.mxu0 %v6057_v47  ;;  %7505 = vmatmul.msk.bf16.gmra.mxu3 %vm2373_vm2, %v6685_v42  ;;  %v6088_v42 = vld [vmem:[%s8066_s24 + $0x250] sm:$0xf] }
 0x23d   : > { %v5388_v53 = vadd.f32 %v5387_v45, %v4997_v52  ;;  %v6073_v45 = vor.u32 %v7663_v41, %v6072_v40  ;;  %v3493_v47 = vpop.f32.mrf.mxu2  ;;  %v6698_v40 = vld [vmem:[%s8066_s24 + $0x718] sm:$0xf0]  ;;  %v6101_v41 = vor.u32 %v7668_v27, %v6098_v28 }
 0x23e   : > { %v4099_v54 = vpop.f32.mrf.mxu1  ;;  %v4482_v49 = vpop.f32.mrf.mxu3 }
 0x240   : > { %v3105_v56 = vpop.f32.mrf.mxu0 }
 0x241   : > { %v4095_v58 = vadd.f32 %v4094_v24, %v3105_v56 }
 0x243   : > { %v4998_v3 = vmax.f32 %v4095_v58, 0.0  ;;  %v7666_v58 = vld [vmem:[%s8066_s24 + $0x254] sm:$0xf] }
 0x244   : > { %3532 = vmatmul.bf16.gmra.mxu2 %v6681_v36  ;;  %v7818_v36 = vld [vmem:[%s8066_s24 + $0x714] sm:$0xf] }
 0x245   : > { %v5389_v11 = vadd.f32 %v5388_v53, %v4998_v3  ;;  %v8353_v53 = vadd.f32 %v4482_v49, %v3493_v47  ;;  %v3495_v56 = vpop.f32.mrf.mxu2 }
 0x246   : > { %v4102_v12 = vpop.f32.mrf.mxu1  ;;  %v4484_v60 = vpop.f32.mrf.mxu3 }
 0x247   : > { %v8357_v62 = vadd.f32 %v4484_v60, %v3495_v56 }
 0x248   : > { %v3108_v14 = vpop.f32.mrf.mxu0 }
 0x249   : > { %7429 = vmatmul.msk.bf16.gmra.mxu1 %vm2373_vm2, %v6077_v7  ;;  %v4098_v16 = vadd.f32 %v4097_v46, %v3108_v14  ;;  %v6093_v7 = vor.u32 %v7666_v58, %v6090_v59 }
 0x24b   : > { %v4999_v18 = vmax.f32 %v4098_v16, 0.0  ;;  %3147 = vmatmul.bf16.gmra.mxu0 %v6065_v13  ;;  %7506 = vmatmul.msk.bf16.gmra.mxu3 %vm2373_vm2, %v6693_v10  ;;  %v6081_v13 = vor.u32 %v7665_v9, %v6080_v8  ;;  %v6706_v10 = vld [vmem:[%s8066_s24 + $0x728] sm:$0xf0] }
 0x24d   : > { %v5390_v19 = vadd.f32 %v5389_v11, %v4999_v18  ;;  %v3498_v15 = vpop.f32.mrf.mxu2 }
 0x24e   : > { %v4104_v20 = vpop.f32.mrf.mxu1  ;;  %v4487_v17 = vpop.f32.mrf.mxu3 }
 0x250   : > { %v3110_v22 = vpop.f32.mrf.mxu0 }
 0x251   : > { %v4100_v24 = vadd.f32 %v4099_v54, %v3110_v22  ;;  %v8367_v22 = vadd.f32 %v4487_v17, %v3498_v15 }
 0x253   : > { %v5000_v35 = vmax.f32 %v4100_v24, 0.0 }
 0x254   : > { %3537 = vmatmul.bf16.gmra.mxu2 %v6689_v5  ;;  %v6704_v5 = vld [vmem:[%s8066_s24 + $0x720] sm:$0xf] }
 0x255   : > { %v5391_v43 = vadd.f32 %v5390_v19, %v5000_v35  ;;  %v3500_v24 = vpop.f32.mrf.mxu2  ;;  %v7819_v35 = vld [vmem:[%s8066_s24 + $0x714] sm:$0xf0]  ;;  %v6705_v9 = vor.u32 %v7821_v6, %v6704_v5 }
 0x256   : > { %v4107_v44 = vpop.f32.mrf.mxu1  ;;  %v4489_v30 = vpop.f32.mrf.mxu3 }
 0x257   : > { %v8371_v32 = vadd.f32 %v4489_v30, %v3500_v24 }
 0x258   : > { %v3113_v46 = vpop.f32.mrf.mxu0 }
 0x259   : > { %7430 = vmatmul.msk.bf16.gmra.mxu1 %vm2373_vm2, %v6085_v39  ;;  %v4103_v48 = vadd.f32 %v4102_v12, %v3113_v46  ;;  %v6697_v39 = vor.u32 %v7819_v35, %v6696_v34 }
 0x25b   : > { %v5001_v50 = vmax.f32 %v4103_v48, 0.0  ;;  %3152 = vmatmul.bf16.gmra.mxu0 %v6073_v45 }
 0x25d   : > { %v5392_v51 = vadd.f32 %v5391_v43, %v5001_v50  ;;  %v7667_v43 = vld [vmem:[%s8066_s24 + $0x254] sm:$0xf0]  ;;  %v3503_v49 = vpop.f32.mrf.mxu2 }
 0x25e   : > { %v4109_v52 = vpop.f32.mrf.mxu1  ;;  %v6089_v47 = vor.u32 %v7667_v43, %v6088_v42  ;;  %v7823_v42 = vld [vmem:[%s8066_s24 + $0x734] sm:$0xf0]  ;;  %v7822_v43 = vld [vmem:[%s8066_s24 + $0x734] sm:$0xf] }
 0x260   : > { %v3115_v54 = vpop.f32.mrf.mxu0 }
 0x261   : > { %v4105_v57 = vadd.f32 %v4104_v20, %v3115_v54 }
 0x263   : > { %v5002_v3 = vmax.f32 %v4105_v57, 0.0 }
 0x264   : > { %3542 = vmatmul.bf16.gmra.mxu2 %v6697_v39 }
 0x265   : > { %v5393_v11 = vadd.f32 %v5392_v51, %v5002_v3  ;;  %v4492_v51 = vpop.f32.mrf.mxu3  ;;  %v3505_v59 = vpop.f32.mrf.mxu2 }
 0x266   : > { %v4112_v12 = vpop.f32.mrf.mxu1  ;;  %v8381_v57 = vadd.f32 %v4492_v51, %v3503_v49  ;;  %v7671_v49 = vld [vmem:[%s8066_s24 + $0x274] sm:$0xf0] }
 0x268   : > { %v3118_v14 = vpop.f32.mrf.mxu0 }
 0x269   : > { %7431 = vmatmul.msk.bf16.gmra.mxu1 %vm2373_vm2, %v6093_v7  ;;  %v4108_v16 = vadd.f32 %v4107_v44, %v3118_v14  ;;  %v6701_v44 = vor.u32 %v7818_v36, %v6698_v40  ;;  %v7820_v7 = vld [vmem:[%s8066_s24 + $0x724] sm:$0xf] }
 0x26a   : > { %v6709_v14 = vor.u32 %v7820_v7, %v6706_v10  ;;  %v7672_v36 = vld [vmem:[%s8066_s24 + $0x284] sm:$0xf]  ;;  %v6122_v10 = vld [vmem:[%s8066_s24 + $0x298] sm:$0xf0] }
 0x26b   : > { %v5003_v18 = vmax.f32 %v4108_v16, 0.0  ;;  %3157 = vmatmul.bf16.gmra.mxu0 %v6081_v13  ;;  %7507 = vmatmul.msk.bf16.gmra.mxu3 %vm2373_vm2, %v6701_v44  ;;  %v7669_v13 = vld [vmem:[%s8066_s24 + $0x264] sm:$0xf0] }
 0x26d   : > { %v5394_v19 = vadd.f32 %v5393_v11, %v5003_v18  ;;  %v4494_v2 = vpop.f32.mrf.mxu3  ;;  %v6109_v11 = vor.u32 %v7670_v0, %v6106_v1 }
 0x26e   : > { %v4114_v20 = vpop.f32.mrf.mxu1  ;;  %v8385_v3 = vadd.f32 %v4494_v2, %v3505_v59 }
 0x270   : > { %v3120_v23 = vpop.f32.mrf.mxu0 }
 0x271   : > { %v4110_v26 = vadd.f32 %v4109_v52, %v3120_v23 }
 0x273   : > { %v5004_v38 = vmax.f32 %v4110_v26, 0.0 }
 0x274   : > { %3547 = vmatmul.bf16.gmra.mxu2 %v6705_v9  ;;  %v7674_v9 = vld [vmem:[%s8066_s24 + $0x294] sm:$0xf] }
 0x275   : > { %v5395_v45 = vadd.f32 %v5394_v19, %v5004_v38  ;;  %v3508_v19 = vpop.f32.mrf.mxu2  ;;  %v4497_v23 = vpop.f32.mrf.mxu3  ;;  %v6114_v38 = vld [vmem:[%s8066_s24 + $0x288] sm:$0xf0] }
 0x276   : > { %v4117_v46 = vpop.f32.mrf.mxu1  ;;  %v8395_v28 = vadd.f32 %v4497_v23, %v3508_v19  ;;  %v6125_v19 = vor.u32 %v7674_v9, %v6122_v10  ;;  %v7673_v23 = vld [vmem:[%s8066_s24 + $0x284] sm:$0xf0] }
 0x278   : > { %v3123_v48 = vpop.f32.mrf.mxu0 }
 0x279   : > { %7432 = vmatmul.msk.bf16.gmra.mxu1 %vm2373_vm2, %v6101_v41  ;;  %v4113_v50 = vadd.f32 %v4112_v12, %v3123_v48  ;;  %v6096_v12 = vld [vmem:[%s8066_s24 + $0x260] sm:$0xf]  ;;  %v6712_v41 = vld [vmem:[%s8066_s24 + $0x730] sm:$0xf] }
 0x27a   : > { %v6097_v17 = vor.u32 %v7669_v13, %v6096_v12  ;;  %v6104_v48 = vld [vmem:[%s8066_s24 + $0x270] sm:$0xf]  ;;  %v6720_v13 = vld [vmem:[%s8066_s24 + $0x740] sm:$0xf] }
 0x27b   : > { %v5005_v52 = vmax.f32 %v4113_v50, 0.0  ;;  %3162 = vmatmul.bf16.gmra.mxu0 %v6089_v47  ;;  %7508 = vmatmul.msk.bf16.gmra.mxu3 %vm2373_vm2, %v6709_v14  ;;  %v6117_v47 = vor.u32 %v7672_v36, %v6114_v38  ;;  %v7825_v14 = vld [vmem:[%s8066_s24 + $0x744] sm:$0xf0] }
 0x27d   : > { %v5396_v54 = vadd.f32 %v5395_v45, %v5005_v52  ;;  %v3510_v34 = vpop.f32.mrf.mxu2  ;;  %v4499_v39 = vpop.f32.mrf.mxu3  ;;  %v6713_v45 = vor.u32 %v7823_v42, %v6712_v41 }
 0x27e   : > { %v4119_v56 = vpop.f32.mrf.mxu1  ;;  %v8399_v40 = vadd.f32 %v4499_v39, %v3510_v34 }
 0x280   : > { %v3125_v58 = vpop.f32.mrf.mxu0 }
 0x281   : > { %v4115_v60 = vadd.f32 %v4114_v20, %v3125_v58 }
 0x283   : > { %v5006_v8 = vmax.f32 %v4115_v60, 0.0 }
 0x284   : > { %3552 = vmatmul.bf16.gmra.mxu2 %v6713_v45 }
 0x285   : > { %v5397_v15 = vadd.f32 %v5396_v54, %v5006_v8  ;;  %v6105_v54 = vor.u32 %v7671_v49, %v6104_v48  ;;  %v3513_v58 = vpop.f32.mrf.mxu2  ;;  %v4502_v60 = vpop.f32.mrf.mxu3  ;;  %v6130_v48 = vld [vmem:[%s8066_s24 + $0x2a8] sm:$0xf0] }
 0x286   : > { %v4122_v16 = vpop.f32.mrf.mxu1  ;;  %v8409_v5 = vadd.f32 %v4502_v60, %v3513_v58 }
 0x288   : > { %v3128_v18 = vpop.f32.mrf.mxu0 }
 0x289   : > { %7433 = vmatmul.msk.bf16.gmra.mxu1 %vm2373_vm2, %v6109_v11  ;;  %v4118_v20 = vadd.f32 %v4117_v46, %v3128_v18  ;;  %v6714_v46 = vld [vmem:[%s8066_s24 + $0x738] sm:$0xf0]  ;;  %v6722_v18 = vld [vmem:[%s8066_s24 + $0x748] sm:$0xf0] }
 0x28a   : > { %v6717_v50 = vor.u32 %v7822_v43, %v6714_v46 }
 0x28b   : > { %v5007_v24 = vmax.f32 %v4118_v20, 0.0  ;;  %3167 = vmatmul.bf16.gmra.mxu0 %v6097_v17  ;;  %v6721_v17 = vor.u32 %v7825_v14, %v6720_v13  ;;  %v6112_v20 = vld [vmem:[%s8066_s24 + $0x280] sm:$0xf] }
 0x28c   : > { %7509 = vmatmul.msk.bf16.gmra.mxu3 %vm2373_vm2, %v6717_v50 }
 0x28d   : > { %v5398_v26 = vadd.f32 %v5397_v15, %v5007_v24  ;;  %v3515_v7 = vpop.f32.mrf.mxu2  ;;  %v4504_v11 = vpop.f32.mrf.mxu3  ;;  %v7824_v15 = vld [vmem:[%s8066_s24 + $0x744] sm:$0xf] }
 0x28e   : > { %v4124_v27 = vpop.f32.mrf.mxu1  ;;  %v8413_v12 = vadd.f32 %v4504_v11, %v3515_v7  ;;  %v6725_v24 = vor.u32 %v7824_v15, %v6722_v18 }
 0x290   : > { %v3130_v30 = vpop.f32.mrf.mxu0 }
 0x291   : > { %v4120_v35 = vadd.f32 %v4119_v56, %v3130_v30 }
 0x293   : > { %v5008_v44 = vmax.f32 %v4120_v35, 0.0 }
 0x294   : > { %3557 = vmatmul.bf16.gmra.mxu2 %v6721_v17 }
 0x295   : > { %v5399_v51 = vadd.f32 %v5398_v26, %v5008_v44  ;;  %v3518_v35 = vpop.f32.mrf.mxu2  ;;  %v4507_v38 = vpop.f32.mrf.mxu3 }
 0x296   : > { %v4127_v52 = vpop.f32.mrf.mxu1  ;;  %v8423_v43 = vadd.f32 %v4507_v38, %v3518_v35  ;;  %v7828_v35 = vld [vmem:[%s8066_s24 + $0x764] sm:$0xf] }
 0x298   : > { %v3133_v56 = vpop.f32.mrf.mxu0 }
 0x299   : > { %7434 = vmatmul.msk.bf16.gmra.mxu1 %vm2373_vm2, %v6117_v47  ;;  %v4123_v59 = vadd.f32 %v4122_v16, %v3133_v56  ;;  %v7676_v47 = vld [vmem:[%s8066_s24 + $0x2a4] sm:$0xf] }
 0x29a   : > { %v6133_v60 = vor.u32 %v7676_v47, %v6130_v48 }
 0x29b   : > { %v5009_v0 = vmax.f32 %v4123_v59, 0.0  ;;  %3172 = vmatmul.bf16.gmra.mxu0 %v6105_v54  ;;  %v7826_v54 = vld [vmem:[%s8066_s24 + $0x754] sm:$0xf]  ;;  %v6730_v59 = vld [vmem:[%s8066_s24 + $0x758] sm:$0xf0] }
 0x29c   : > { %7510 = vmatmul.msk.bf16.gmra.mxu3 %vm2373_vm2, %v6725_v24  ;;  %v6138_v24 = vld [vmem:[%s8066_s24 + $0x2b8] sm:$0xf0] }
 0x29d   : > { %v5400_v1 = vadd.f32 %v5399_v51, %v5009_v0  ;;  %v3520_v45 = vpop.f32.mrf.mxu2  ;;  %v4509_v49 = vpop.f32.mrf.mxu3  ;;  %v6728_v51 = vld [vmem:[%s8066_s24 + $0x750] sm:$0xf] }
 0x29e   : > { %v4129_v2 = vpop.f32.mrf.mxu1  ;;  %v8427_v50 = vadd.f32 %v4509_v49, %v3520_v45  ;;  %v6120_v0 = vld [vmem:[%s8066_s24 + $0x290] sm:$0xf]  ;;  %v7677_v45 = vld [vmem:[%s8066_s24 + $0x2a4] sm:$0xf0] }
 0x2a0   : > { %v3135_v6 = vpop.f32.mrf.mxu0 }
 0x2a1   : > { %v4125_v8 = vadd.f32 %v4124_v27, %v3135_v6  ;;  %v6113_v27 = vor.u32 %v7673_v23, %v6112_v20  ;;  %v6733_v6 = vor.u32 %v7826_v54, %v6730_v59  ;;  %v7678_v23 = vld [vmem:[%s8066_s24 + $0x2b4] sm:$0xf] }
 0x2a3   : > { %v5010_v16 = vmax.f32 %v4125_v8, 0.0 }
 0x2a5   : > { %v5401_v26 = vadd.f32 %v5400_v1, %v5010_v16  ;;  %v7675_v1 = vld [vmem:[%s8066_s24 + $0x294] sm:$0xf0]  ;;  %v4512_v13 = vpop.f32.mrf.mxu3 }
 0x2a6   : > { %v4132_v30 = vpop.f32.mrf.mxu1 }
 0x2a7   : > { %v3523_v10 = vpop.f32.mrf.mxu2 }
 0x2a8   : > { %v3138_v34 = vpop.f32.mrf.mxu0  ;;  %v8437_v17 = vadd.f32 %v4512_v13, %v3523_v10  ;;  %v7830_v13 = vld [vmem:[%s8066_s24 + $0x774] sm:$0xf] }
 0x2a9   : > { %7435 = vmatmul.msk.bf16.gmra.mxu1 %vm2373_vm2, %v6125_v19  ;;  %v4128_v36 = vadd.f32 %v4127_v52, %v3138_v34  ;;  %v7827_v52 = vld [vmem:[%s8066_s24 + $0x754] sm:$0xf0]  ;;  %v7829_v34 = vld [vmem:[%s8066_s24 + $0x764] sm:$0xf0] }
 0x2aa   : > { %v6729_v58 = vor.u32 %v7827_v52, %v6728_v51 }
 0x2ab   : > { %v5011_v39 = vmax.f32 %v4128_v36, 0.0  ;;  %3177 = vmatmul.bf16.gmra.mxu0 %v6113_v27 }
 0x2ac   : > { %3562 = vmatmul.bf16.gmra.mxu2 %v6729_v58  ;;  %7511 = vmatmul.msk.bf16.gmra.mxu3 %vm2373_vm2, %v6733_v6 }
 0x2ad   : > { %v5402_v41 = vadd.f32 %v5401_v26, %v5011_v39  ;;  %v4514_v26 = vpop.f32.mrf.mxu3  ;;  %v6738_v39 = vld [vmem:[%s8066_s24 + $0x768] sm:$0xf0] }
 0x2ae   : > { %v4134_v42 = vpop.f32.mrf.mxu1 }
 0x2af   : > { %v3525_v19 = vpop.f32.mrf.mxu2 }
 0x2b0   : > { %v3140_v44 = vpop.f32.mrf.mxu0  ;;  %v8441_v27 = vadd.f32 %v4514_v26, %v3525_v19 }
 0x2b1   : > { %v4130_v46 = vadd.f32 %v4129_v2, %v3140_v44  ;;  %v6121_v2 = vor.u32 %v7675_v1, %v6120_v0  ;;  %v6128_v44 = vld [vmem:[%s8066_s24 + $0x2a0] sm:$0xf] }
 0x2b3   : > { %v5012_v56 = vmax.f32 %v4130_v46, 0.0  ;;  %v6741_v46 = vor.u32 %v7828_v35, %v6738_v39 }
 0x2b5   : > { %v5403_v7 = vadd.f32 %v5402_v41, %v5012_v56  ;;  %v6141_v41 = vor.u32 %v7678_v23, %v6138_v24  ;;  %v4517_v54 = vpop.f32.mrf.mxu3  ;;  %v7679_v23 = vld [vmem:[%s8066_s24 + $0x2b4] sm:$0xf0] }
 0x2b6   : > { %v4137_v8 = vpop.f32.mrf.mxu1 }
 0x2b7   : > { %v3528_v51 = vpop.f32.mrf.mxu2 }
 0x2b8   : > { %v3143_v9 = vpop.f32.mrf.mxu0 }
 0x2b9   : > { %7436 = vmatmul.msk.bf16.gmra.mxu1 %vm2373_vm2, %v6133_v60  ;;  %v4133_v11 = vadd.f32 %v4132_v30, %v3143_v9  ;;  %v6736_v30 = vld [vmem:[%s8066_s24 + $0x760] sm:$0xf]  ;;  %v8451_v60 = vadd.f32 %v4517_v54, %v3528_v51  ;;  %v6154_v51 = vld [vmem:[%s8066_s24 + $0x2d8] sm:$0xf0] }
 0x2ba   : > { %v6737_v38 = vor.u32 %v7829_v34, %v6736_v30 }
 0x2bb   : > { %v5013_v14 = vmax.f32 %v4133_v11, 0.0  ;;  %3182 = vmatmul.bf16.gmra.mxu0 %v6121_v2  ;;  %v6146_v2 = vld [vmem:[%s8066_s24 + $0x2c8] sm:$0xf0]  ;;  %v7831_v11 = vld [vmem:[%s8066_s24 + $0x774] sm:$0xf0] }
 0x2bc   : > { %3567 = vmatmul.bf16.gmra.mxu2 %v6737_v38  ;;  %7512 = vmatmul.msk.bf16.gmra.mxu3 %vm2373_vm2, %v6741_v46 }
 0x2bd   : > { %v5404_v15 = vadd.f32 %v5403_v7, %v5013_v14  ;;  %v7680_v7 = vld [vmem:[%s8066_s24 + $0x2c4] sm:$0xf]  ;;  %v4519_v9 = vpop.f32.mrf.mxu3 }
 0x2be   : > { %v4139_v16 = vpop.f32.mrf.mxu1  ;;  %v6149_v19 = vor.u32 %v7680_v7, %v6146_v2  ;;  %v6144_v2 = vld [vmem:[%s8066_s24 + $0x2c0] sm:$0xf] }
 0x2bf   : > { %v3530_v1 = vpop.f32.mrf.mxu2 }
 0x2c0   : > { %v3145_v18 = vpop.f32.mrf.mxu0  ;;  %v8455_v10 = vadd.f32 %v4519_v9, %v3530_v1  ;;  %v7681_v9 = vld [vmem:[%s8066_s24 + $0x2c4] sm:$0xf0] }
 0x2c1   : > { %v4135_v20 = vadd.f32 %v4134_v42, %v3145_v18  ;;  %v6129_v42 = vor.u32 %v7677_v45, %v6128_v44  ;;  %v6746_v18 = vld [vmem:[%s8066_s24 + $0x778] sm:$0xf0] }
 0x2c2   : > { %v6749_v24 = vor.u32 %v7830_v13, %v6746_v18 }
 0x2c3   : > { %v5014_v36 = vmax.f32 %v4135_v20, 0.0  ;;  %v6136_v20 = vld [vmem:[%s8066_s24 + $0x2b0] sm:$0xf] }
 0x2c5   : > { %v5405_v47 = vadd.f32 %v5404_v15, %v5014_v36  ;;  %v4522_v38 = vpop.f32.mrf.mxu3 }
 0x2c6   : > { %v4142_v48 = vpop.f32.mrf.mxu1 }
 0x2c7   : > { %v3533_v35 = vpop.f32.mrf.mxu2 }
 0x2c8   : > { %v3148_v49 = vpop.f32.mrf.mxu0  ;;  %v8465_v45 = vadd.f32 %v4522_v38, %v3533_v35  ;;  %v6162_v38 = vld [vmem:[%s8066_s24 + $0x2e8] sm:$0xf0] }
 0x2c9   : > { %7437 = vmatmul.msk.bf16.gmra.mxu1 %vm2373_vm2, %v6141_v41  ;;  %v4138_v52 = vadd.f32 %v4137_v8, %v3148_v49  ;;  %v6744_v8 = vld [vmem:[%s8066_s24 + $0x770] sm:$0xf]  ;;  %v7682_v49 = vld [vmem:[%s8066_s24 + $0x2d4] sm:$0xf] }
 0x2ca   : > { %v6745_v15 = vor.u32 %v7831_v11, %v6744_v8  ;;  %v6157_v7 = vor.u32 %v7682_v49, %v6154_v51  ;;  %v6762_v51 = vld [vmem:[%s8066_s24 + $0x798] sm:$0xf0] }
 0x2cb   : > { %v5015_v56 = vmax.f32 %v4138_v52, 0.0  ;;  %3187 = vmatmul.bf16.gmra.mxu0 %v6129_v42 }
 0x2cc   : > { %3572 = vmatmul.bf16.gmra.mxu2 %v6745_v15  ;;  %7513 = vmatmul.msk.bf16.gmra.mxu3 %vm2373_vm2, %v6749_v24 }
 0x2cd   : > { %v5406_v58 = vadd.f32 %v5405_v47, %v5015_v56  ;;  %v4524_v52 = vpop.f32.mrf.mxu3  ;;  %v7833_v56 = vld [vmem:[%s8066_s24 + $0x784] sm:$0xf0] }
 0x2ce   : > { %v4144_v59 = vpop.f32.mrf.mxu1 }
 0x2cf   : > { %v3535_v47 = vpop.f32.mrf.mxu2 }
 0x2d0   : > { %v3150_v0 = vpop.f32.mrf.mxu0  ;;  %v8469_v54 = vadd.f32 %v4524_v52, %v3535_v47  ;;  %v7834_v47 = vld [vmem:[%s8066_s24 + $0x794] sm:$0xf] }
 0x2d1   : > { %v4140_v6 = vadd.f32 %v4139_v16, %v3150_v0  ;;  %v6137_v16 = vor.u32 %v7679_v23, %v6136_v20 }
 0x2d3   : > { %v5016_v14 = vmax.f32 %v4140_v6, 0.0  ;;  %v6754_v6 = vld [vmem:[%s8066_s24 + $0x788] sm:$0xf0] }
 0x2d5   : > { %v5407_v26 = vadd.f32 %v5406_v58, %v5016_v14  ;;  %v7832_v58 = vld [vmem:[%s8066_s24 + $0x784] sm:$0xf] }
 0x2d6   : > { %v4147_v30 = vpop.f32.mrf.mxu1  ;;  %v6757_v8 = vor.u32 %v7832_v58, %v6754_v6  ;;  %v6765_v58 = vor.u32 %v7834_v47, %v6762_v51  ;;  %v6160_v47 = vld [vmem:[%s8066_s24 + $0x2e0] sm:$0xf] }
 0x2d7   : > { %v3538_v15 = vpop.f32.mrf.mxu2 }
 0x2d8   : > { %v3153_v34 = vpop.f32.mrf.mxu0 }
 0x2d9   : > { %7438 = vmatmul.msk.bf16.gmra.mxu1 %vm2373_vm2, %v6149_v19  ;;  %v4143_v36 = vadd.f32 %v4142_v48, %v3153_v34  ;;  %v6752_v48 = vld [vmem:[%s8066_s24 + $0x780] sm:$0xf]  ;;  %v4527_v19 = vpop.f32.mrf.mxu3 }
 0x2da   : > { %v6753_v1 = vor.u32 %v7833_v56, %v6752_v48  ;;  %v6152_v48 = vld [vmem:[%s8066_s24 + $0x2d0] sm:$0xf]  ;;  %v7683_v56 = vld [vmem:[%s8066_s24 + $0x2d4] sm:$0xf0] }
 0x2db   : > { %v5017_v39 = vmax.f32 %v4143_v36, 0.0  ;;  %3192 = vmatmul.bf16.gmra.mxu0 %v6137_v16  ;;  %v7684_v36 = vld [vmem:[%s8066_s24 + $0x2e4] sm:$0xf] }
 0x2dc   : > { %3577 = vmatmul.bf16.gmra.mxu2 %v6753_v1  ;;  %7514 = vmatmul.msk.bf16.gmra.mxu3 %vm2373_vm2, %v6757_v8  ;;  %v6165_v52 = vor.u32 %v7684_v36, %v6162_v38  ;;  %v7836_v36 = vld [vmem:[%s8066_s24 + $0x7a4] sm:$0xf] }
 0x2dd   : > { %v5408_v41 = vadd.f32 %v5407_v26, %v5017_v39  ;;  %v8479_v26 = vadd.f32 %v4527_v19, %v3538_v15 }
 0x2de   : > { %v4149_v44 = vpop.f32.mrf.mxu1 }
 0x2df   : > { %v3540_v34 = vpop.f32.mrf.mxu2 }
 0x2e0   : > { %v3155_v46 = vpop.f32.mrf.mxu0 }
 0x2e1   : > { %v4145_v42 = vadd.f32 %v4144_v59, %v3155_v46  ;;  %v6145_v59 = vor.u32 %v7681_v9, %v6144_v2  ;;  %v4529_v39 = vpop.f32.mrf.mxu3  ;;  %v7835_v46 = vld [vmem:[%s8066_s24 + $0x794] sm:$0xf0] }
 0x2e3   : > { %v5018_v0 = vmax.f32 %v4145_v42, 0.0 }
 0x2e5   : > { %v5409_v11 = vadd.f32 %v5408_v41, %v5018_v0  ;;  %v8483_v41 = vadd.f32 %v4529_v39, %v3540_v34 }
 0x2e6   : > { %v4152_v13 = vpop.f32.mrf.mxu1 }
 0x2e7   : > { %9667 = vst [vmem:[#allocation2_spill] sm:$0xff] %v8483_v41 }
 0x2e8   : > { %v3158_v14 = vpop.f32.mrf.mxu0 }
 0x2e9   : > { %7439 = vmatmul.msk.bf16.gmra.mxu1 %vm2373_vm2, %v6157_v7  ;;  %v4148_v18 = vadd.f32 %v4147_v30, %v3158_v14  ;;  %v6760_v30 = vld [vmem:[%s8066_s24 + $0x790] sm:$0xf]  ;;  %v3543_v7 = vpop.f32.mrf.mxu2 }
 0x2ea   : > { %v6761_v49 = vor.u32 %v7835_v46, %v6760_v30  ;;  %v6770_v30 = vld [vmem:[%s8066_s24 + $0x7a8] sm:$0xf0] }
 0x2eb   : > { %v5019_v20 = vmax.f32 %v4148_v18, 0.0  ;;  %3197 = vmatmul.bf16.gmra.mxu0 %v6145_v59 }
 0x2ec   : > { %3582 = vmatmul.bf16.gmra.mxu2 %v6761_v49  ;;  %7515 = vmatmul.msk.bf16.gmra.mxu3 %vm2373_vm2, %v6765_v58  ;;  %v6773_v49 = vor.u32 %v7836_v36, %v6770_v30  ;;  %v6778_v36 = vld [vmem:[%s8066_s24 + $0x7b8] sm:$0xf0]  ;;  %v7687_v30 = vld [vmem:[%s8066_s24 + $0x2f4] sm:$0xf0] }
 0x2ed   : > { %v5410_v23 = vadd.f32 %v5409_v11, %v5019_v20  ;;  %v7686_v20 = vld [vmem:[%s8066_s24 + $0x2f4] sm:$0xf] }
 0x2ee   : > { %v4154_v24 = vpop.f32.mrf.mxu1  ;;  %v4532_v9 = vpop.f32.mrf.mxu3 }
 0x2ef   : > { %v8493_v14 = vadd.f32 %v4532_v9, %v3543_v7 }
 0x2f0   : > { %v3160_v16 = vpop.f32.mrf.mxu0 }
 0x2f1   : > { %v4150_v35 = vadd.f32 %v4149_v44, %v3160_v16  ;;  %v6153_v44 = vor.u32 %v7683_v56, %v6152_v48  ;;  %9668 = vst [vmem:[#allocation3_spill] sm:$0xff] %v8493_v14  ;;  %v3545_v18 = vpop.f32.mrf.mxu2 }
 0x2f3   : > { %v5020_v42 = vmax.f32 %v4150_v35, 0.0  ;;  %v7837_v35 = vld [vmem:[%s8066_s24 + $0x7a4] sm:$0xf0] }
 0x2f5   : > { %v5411_v0 = vadd.f32 %v5410_v23, %v5020_v42  ;;  %v6170_v23 = vld [vmem:[%s8066_s24 + $0x2f8] sm:$0xf0]  ;;  %v7685_v42 = vld [vmem:[%s8066_s24 + $0x2e4] sm:$0xf0] }
 0x2f6   : > { %v4157_v1 = vpop.f32.mrf.mxu1  ;;  %v4534_v16 = vpop.f32.mrf.mxu3  ;;  %v6173_v46 = vor.u32 %v7686_v20, %v6170_v23  ;;  %v7839_v23 = vld [vmem:[%s8066_s24 + $0x7b4] sm:$0xf0] }
 0x2f7   : > { %v8497_v34 = vadd.f32 %v4534_v16, %v3545_v18  ;;  %v6178_v18 = vld [vmem:[%s8066_s24 + $0x308] sm:$0xf0]  ;;  %v7838_v16 = vld [vmem:[%s8066_s24 + $0x7b4] sm:$0xf] }
 0x2f8   : > { %v3163_v6 = vpop.f32.mrf.mxu0 }
 0x2f9   : > { %7440 = vmatmul.msk.bf16.gmra.mxu1 %vm2373_vm2, %v6165_v52  ;;  %v4153_v2 = vadd.f32 %v4152_v13, %v3163_v6  ;;  %9669 = vst [vmem:[#allocation4_spill] sm:$0xff] %v8497_v34  ;;  %v6768_v13 = vld [vmem:[%s8066_s24 + $0x7a0] sm:$0xf]  ;;  %v3548_v56 = vpop.f32.mrf.mxu2 }
 0x2fa   : > { %v6769_v39 = vor.u32 %v7837_v35, %v6768_v13 }
 0x2fb   : > { %v5021_v8 = vmax.f32 %v4153_v2, 0.0  ;;  %3202 = vmatmul.bf16.gmra.mxu0 %v6153_v44 }
 0x2fc   : > { %3587 = vmatmul.bf16.gmra.mxu2 %v6769_v39  ;;  %7516 = vmatmul.msk.bf16.gmra.mxu3 %vm2373_vm2, %v6773_v49  ;;  %v6168_v39 = vld [vmem:[%s8066_s24 + $0x2f0] sm:$0xf] }
 0x2fd   : > { %v5412_v11 = vadd.f32 %v5411_v0, %v5021_v8 }
 0x2fe   : > { %v4159_v59 = vpop.f32.mrf.mxu1  ;;  %v4537_v0 = vpop.f32.mrf.mxu3 }
 0x2ff   : > { %v8507_v2 = vadd.f32 %v4537_v0, %v3548_v56 }
 0x300   : > { %v3165_v15 = vpop.f32.mrf.mxu0 }
 0x301   : > { %v4155_v19 = vadd.f32 %v4154_v24, %v3165_v15  ;;  %v6161_v24 = vor.u32 %v7685_v42, %v6160_v47  ;;  %9670 = vst [vmem:[#allocation5_spill] sm:$0xff] %v8507_v2  ;;  %v3550_v8 = vpop.f32.mrf.mxu2  ;;  %v7688_v15 = vld [vmem:[%s8066_s24 + $0x304] sm:$0xf] }
 0x303   : > { %v5022_v38 = vmax.f32 %v4155_v19, 0.0 }
 0x305   : > { %v5413_v51 = vadd.f32 %v5412_v11, %v5022_v38  ;;  %v6181_v38 = vor.u32 %v7688_v15, %v6178_v18  ;;  %v6186_v15 = vld [vmem:[%s8066_s24 + $0x318] sm:$0xf0] }
 0x306   : > { %v4162_v52 = vpop.f32.mrf.mxu1  ;;  %v4539_v19 = vpop.f32.mrf.mxu3 }
 0x307   : > { %v8511_v20 = vadd.f32 %v4539_v19, %v3550_v8 }
 0x308   : > { %v3168_v48 = vpop.f32.mrf.mxu0 }
 0x309   : > { %7441 = vmatmul.msk.bf16.gmra.mxu1 %vm2373_vm2, %v6173_v46  ;;  %v4158_v58 = vadd.f32 %v4157_v1, %v3168_v48  ;;  %9671 = vst [vmem:[#allocation6_spill] sm:$0xff] %v8511_v20  ;;  %v6776_v1 = vld [vmem:[%s8066_s24 + $0x7b0] sm:$0xf]  ;;  %v6781_v46 = vor.u32 %v7838_v16, %v6778_v36 }
 0x30a   : > { %v6777_v35 = vor.u32 %v7839_v23, %v6776_v1  ;;  %v7841_v1 = vld [vmem:[%s8066_s24 + $0x7c4] sm:$0xf0]  ;;  %v7840_v23 = vld [vmem:[%s8066_s24 + $0x7c4] sm:$0xf] }
 0x30b   : > { %v5023_v44 = vmax.f32 %v4158_v58, 0.0  ;;  %3207 = vmatmul.bf16.gmra.mxu0 %v6161_v24 }
 0x30c   : > { %3592 = vmatmul.bf16.gmra.mxu2 %v6777_v35  ;;  %7517 = vmatmul.msk.bf16.gmra.mxu3 %vm2373_vm2, %v6781_v46  ;;  %v6786_v35 = vld [vmem:[%s8066_s24 + $0x7c8] sm:$0xf0] }
 0x30d   : > { %v5414_v6 = vadd.f32 %v5413_v51, %v5023_v44  ;;  %v3553_v51 = vpop.f32.mrf.mxu2 }
 0x30e   : > { %v4164_v7 = vpop.f32.mrf.mxu1 }
 0x30f   : > { %v4542_v48 = vpop.f32.mrf.mxu3 }
 0x310   : > { %v3170_v9 = vpop.f32.mrf.mxu0  ;;  %v8521_v44 = vadd.f32 %v4542_v48, %v3553_v51 }
 0x311   : > { %v4160_v11 = vadd.f32 %v4159_v59, %v3170_v9  ;;  %v6169_v59 = vor.u32 %v7687_v30, %v6168_v39  ;;  %v7689_v39 = vld [vmem:[%s8066_s24 + $0x304] sm:$0xf0]  ;;  %v6789_v30 = vor.u32 %v7840_v23, %v6786_v35  ;;  %v7843_v23 = vld [vmem:[%s8066_s24 + $0x7d4] sm:$0xf0] }
 0x312   : > { %9672 = vst [vmem:[#allocation7_spill] sm:$0xff] %v8521_v44  ;;  %v7954_v44 = vld [vmem:[%s8066_s24 + $0xb54] sm:$0xf] }
 0x313   : > { %v5024_v13 = vmax.f32 %v4160_v11, 0.0  ;;  %v7690_v11 = vld [vmem:[%s8066_s24 + $0x314] sm:$0xf] }
 0x314   : > { %v6189_v36 = vor.u32 %v7690_v11, %v6186_v15  ;;  %v7692_v15 = vld [vmem:[%s8066_s24 + $0x324] sm:$0xf] }
 0x315   : > { %v5415_v47 = vadd.f32 %v5414_v6, %v5024_v13  ;;  %v3555_v9 = vpop.f32.mrf.mxu2 }
 0x316   : > { %v4167_v42 = vpop.f32.mrf.mxu1 }
 0x317   : > { %v4544_v18 = vpop.f32.mrf.mxu3 }
 0x318   : > { %v3173_v49 = vpop.f32.mrf.mxu0  ;;  %v8525_v19 = vadd.f32 %v4544_v18, %v3555_v9  ;;  %v6194_v18 = vld [vmem:[%s8066_s24 + $0x328] sm:$0xf0] }
 0x319   : > { %7442 = vmatmul.msk.bf16.gmra.mxu1 %vm2373_vm2, %v6181_v38  ;;  %v4163_v24 = vadd.f32 %v4162_v52, %v3173_v49  ;;  %v6784_v52 = vld [vmem:[%s8066_s24 + $0x7c0] sm:$0xf] }
 0x31a   : > { %9673 = vst [vmem:[#allocation8_spill] sm:$0xff] %v8525_v19  ;;  %v6785_v13 = vor.u32 %v7841_v1, %v6784_v52  ;;  %v6176_v38 = vld [vmem:[%s8066_s24 + $0x300] sm:$0xf]  ;;  %v7955_v19 = vld [vmem:[%s8066_s24 + $0xb54] sm:$0xf0] }
 0x31b   : > { %v5025_v56 = vmax.f32 %v4163_v24, 0.0  ;;  %3212 = vmatmul.bf16.gmra.mxu0 %v6169_v59 }
 0x31c   : > { %3597 = vmatmul.bf16.gmra.mxu2 %v6785_v13  ;;  %7518 = vmatmul.msk.bf16.gmra.mxu3 %vm2373_vm2, %v6789_v30  ;;  %v7691_v30 = vld [vmem:[%s8066_s24 + $0x314] sm:$0xf0] }
 0x31d   : > { %v5416_v58 = vadd.f32 %v5415_v47, %v5025_v56  ;;  %v3558_v49 = vpop.f32.mrf.mxu2 }
 0x31e   : > { %v4169_v0 = vpop.f32.mrf.mxu1 }
 0x31f   : > { %v4547_v24 = vpop.f32.mrf.mxu3 }
 0x320   : > { %v3175_v6 = vpop.f32.mrf.mxu0 }
 0x321   : > { %v4165_v8 = vadd.f32 %v4164_v7, %v3175_v6  ;;  %v6177_v7 = vor.u32 %v7689_v39, %v6176_v38  ;;  %v8535_v6 = vadd.f32 %v4547_v24, %v3558_v49  ;;  %v6197_v38 = vor.u32 %v7692_v15, %v6194_v18  ;;  %v6184_v39 = vld [vmem:[%s8066_s24 + $0x310] sm:$0xf] }
 0x323   : > { %v5026_v16 = vmax.f32 %v4165_v8, 0.0  ;;  %9674 = vst [vmem:[#allocation9_spill] sm:$0xff] %v8535_v6 }
 0x325   : > { %v5417_v46 = vadd.f32 %v5416_v58, %v5026_v16  ;;  %v3560_v8 = vpop.f32.mrf.mxu2  ;;  %v7842_v16 = vld [vmem:[%s8066_s24 + $0x7d4] sm:$0xf] }
 0x326   : > { %v4172_v47 = vpop.f32.mrf.mxu1 }
 0x327   : > { %v4549_v52 = vpop.f32.mrf.mxu3 }
 0x328   : > { %v3178_v59 = vpop.f32.mrf.mxu0  ;;  %v8539_v1 = vadd.f32 %v4549_v52, %v3560_v8 }
 0x329   : > { %7443 = vmatmul.msk.bf16.gmra.mxu1 %vm2373_vm2, %v6189_v36  ;;  %v4168_v51 = vadd.f32 %v4167_v42, %v3178_v59  ;;  %v6792_v42 = vld [vmem:[%s8066_s24 + $0x7d0] sm:$0xf]  ;;  %v6794_v36 = vld [vmem:[%s8066_s24 + $0x7d8] sm:$0xf0] }
 0x32a   : > { %9675 = vst [vmem:[#allocation10_spill] sm:$0xff] %v8539_v1  ;;  %v6793_v35 = vor.u32 %v7843_v23, %v6792_v42  ;;  %v7694_v42 = vld [vmem:[%s8066_s24 + $0x334] sm:$0xf]  ;;  %v6202_v23 = vld [vmem:[%s8066_s24 + $0x338] sm:$0xf0] }
 0x32b   : > { %v5027_v48 = vmax.f32 %v4168_v51, 0.0  ;;  %3217 = vmatmul.bf16.gmra.mxu0 %v6177_v7 }
 0x32c   : > { %3602 = vmatmul.bf16.gmra.mxu2 %v6793_v35  ;;  %v7845_v35 = vld [vmem:[%s8066_s24 + $0x7e4] sm:$0xf0] }
 0x32d   : > { %v5418_v56 = vadd.f32 %v5417_v46, %v5027_v48  ;;  %v6797_v46 = vor.u32 %v7842_v16, %v6794_v36  ;;  %v7844_v36 = vld [vmem:[%s8066_s24 + $0x7e4] sm:$0xf] }
 0x32e   : > { %v4174_v58 = vpop.f32.mrf.mxu1 }
 0x32f   : > { %7519 = vmatmul.msk.bf16.gmra.mxu3 %vm2373_vm2, %v6797_v46  ;;  %v3563_v51 = vpop.f32.mrf.mxu2  ;;  %v4552_v48 = vpop.f32.mrf.mxu3  ;;  %v6205_v46 = vor.u32 %v7694_v42, %v6202_v23 }
 0x330   : > { %v3180_v9 = vpop.f32.mrf.mxu0 }
 0x331   : > { %v4170_v11 = vadd.f32 %v4169_v0, %v3180_v9  ;;  %v6185_v0 = vor.u32 %v7691_v30, %v6184_v39  ;;  %v6802_v30 = vld [vmem:[%s8066_s24 + $0x7e8] sm:$0xf0] }
 0x333   : > { %v5028_v13 = vmax.f32 %v4170_v11, 0.0  ;;  %v8549_v11 = vadd.f32 %v4552_v48, %v3563_v51 }
 0x335   : > { %v5419_v7 = vadd.f32 %v5418_v56, %v5028_v13  ;;  %9676 = vst [vmem:[#allocation11_spill] sm:$0xff] %v8549_v11  ;;  %v7952_v11 = vld [vmem:[%s8066_s24 + $0xb44] sm:$0xf] }
 0x336   : > { %v4177_v59 = vpop.f32.mrf.mxu1 }
 0x337   : > { %v3565_v18 = vpop.f32.mrf.mxu2  ;;  %v4554_v16 = vpop.f32.mrf.mxu3 }
 0x338   : > { %v3183_v49 = vpop.f32.mrf.mxu0  ;;  %v8553_v13 = vadd.f32 %v4554_v16, %v3565_v18 }
 0x339   : > { %7444 = vmatmul.msk.bf16.gmra.mxu1 %vm2373_vm2, %v6197_v38  ;;  %v4173_v24 = vadd.f32 %v4172_v47, %v3183_v49  ;;  %v6800_v47 = vld [vmem:[%s8066_s24 + $0x7e0] sm:$0xf]  ;;  %v6805_v49 = vor.u32 %v7844_v36, %v6802_v30  ;;  %v7696_v36 = vld [vmem:[%s8066_s24 + $0x344] sm:$0xf] }
 0x33a   : > { %9677 = vst [vmem:[#allocation12_spill] sm:$0xff] %v8553_v13  ;;  %v6801_v39 = vor.u32 %v7845_v35, %v6800_v47 }
 0x33b   : > { %v5029_v9 = vmax.f32 %v4173_v24, 0.0  ;;  %3222 = vmatmul.bf16.gmra.mxu0 %v6185_v0  ;;  %v7693_v0 = vld [vmem:[%s8066_s24 + $0x324] sm:$0xf0] }
 0x33c   : > { %3607 = vmatmul.bf16.gmra.mxu2 %v6801_v39 }
 0x33d   : > { %v5420_v56 = vadd.f32 %v5419_v7, %v5029_v9  ;;  %v6192_v7 = vld [vmem:[%s8066_s24 + $0x320] sm:$0xf] }
 0x33e   : > { %v4179_v8 = vpop.f32.mrf.mxu1 }
 0x33f   : > { %7520 = vmatmul.msk.bf16.gmra.mxu3 %vm2373_vm2, %v6805_v49  ;;  %v3568_v9 = vpop.f32.mrf.mxu2  ;;  %v4557_v18 = vpop.f32.mrf.mxu3 }
 0x340   : > { %v3185_v15 = vpop.f32.mrf.mxu0  ;;  %v8563_v23 = vadd.f32 %v4557_v18, %v3568_v9 }
 0x341   : > { %v4175_v52 = vadd.f32 %v4174_v58, %v3185_v15  ;;  %v6193_v58 = vor.u32 %v7693_v0, %v6192_v7  ;;  %v7846_v7 = vld [vmem:[%s8066_s24 + $0x7f4] sm:$0xf] }
 0x342   : > { %9678 = vst [vmem:[#allocation13_spill] sm:$0xff] %v8563_v23 }
 0x343   : > { %v5030_v38 = vmax.f32 %v4175_v52, 0.0 }
 0x345   : > { %v5421_v51 = vadd.f32 %v5420_v56, %v5030_v38  ;;  %v6210_v38 = vld [vmem:[%s8066_s24 + $0x348] sm:$0xf0] }
 0x346   : > { %v4182_v24 = vpop.f32.mrf.mxu1 }
 0x347   : > { %v3570_v47 = vpop.f32.mrf.mxu2  ;;  %v4559_v39 = vpop.f32.mrf.mxu3 }
 0x348   : > { %v3188_v48 = vpop.f32.mrf.mxu0  ;;  %v8567_v30 = vadd.f32 %v4559_v39, %v3570_v47 }
 0x349   : > { %7445 = vmatmul.msk.bf16.gmra.mxu1 %vm2373_vm2, %v6205_v46  ;;  %v4178_v15 = vadd.f32 %v4177_v59, %v3188_v48  ;;  %v6808_v59 = vld [vmem:[%s8066_s24 + $0x7f0] sm:$0xf]  ;;  %v7847_v46 = vld [vmem:[%s8066_s24 + $0x7f4] sm:$0xf0] }
 0x34a   : > { %9679 = vst [vmem:[#allocation14_spill] sm:$0xff] %v8567_v30  ;;  %v6809_v49 = vor.u32 %v7847_v46, %v6808_v59  ;;  %v6200_v48 = vld [vmem:[%s8066_s24 + $0x330] sm:$0xf]  ;;  %v7697_v30 = vld [vmem:[%s8066_s24 + $0x344] sm:$0xf0] }
 0x34b   : > { %v5031_v52 = vmax.f32 %v4178_v15, 0.0  ;;  %3227 = vmatmul.bf16.gmra.mxu0 %v6193_v58  ;;  %v6810_v58 = vld [vmem:[%s8066_s24 + $0x7f8] sm:$0xf0]  ;;  %v7695_v15 = vld [vmem:[%s8066_s24 + $0x334] sm:$0xf0] }
 0x34c   : > { %v6813_v9 = vor.u32 %v7846_v7, %v6810_v58  ;;  %3612 = vmatmul.bf16.gmra.mxu2 %v6809_v49  ;;  %v7698_v49 = vld [vmem:[%s8066_s24 + $0x354] sm:$0xf]  ;;  %v6218_v58 = vld [vmem:[%s8066_s24 + $0x358] sm:$0xf0] }
 0x34d   : > { %v5422_v56 = vadd.f32 %v5421_v51, %v5031_v52  ;;  %v6213_v51 = vor.u32 %v7696_v36, %v6210_v38 }
 0x34e   : > { %v4184_v42 = vpop.f32.mrf.mxu1 }
 0x34f   : > { %7521 = vmatmul.msk.bf16.gmra.mxu3 %vm2373_vm2, %v6813_v9  ;;  %v3573_v47 = vpop.f32.mrf.mxu2  ;;  %v4562_v36 = vpop.f32.mrf.mxu3  ;;  %v7848_v9 = vld [vmem:[%s8066_s24 + $0x804] sm:$0xf] }
 0x350   : > { %v3190_v16 = vpop.f32.mrf.mxu0  ;;  %v8577_v59 = vadd.f32 %v4562_v36, %v3573_v47 }
 0x351   : > { %v4180_v35 = vadd.f32 %v4179_v8, %v3190_v16  ;;  %v6201_v8 = vor.u32 %v7695_v15, %v6200_v48  ;;  %v7849_v15 = vld [vmem:[%s8066_s24 + $0x804] sm:$0xf0] }
 0x352   : > { %9680 = vst [vmem:[#allocation15_spill] sm:$0xff] %v8577_v59 }
 0x353   : > { %v5032_v0 = vmax.f32 %v4180_v35, 0.0 }
 0x355   : > { %v5423_v18 = vadd.f32 %v5422_v56, %v5032_v0 }
 0x356   : > { %v4187_v52 = vpop.f32.mrf.mxu1 }
 0x357   : > { %v3575_v7 = vpop.f32.mrf.mxu2 }
 0x358   : > { %v3193_v16 = vpop.f32.mrf.mxu0 }
 0x359   : > { %7446 = vmatmul.msk.bf16.gmra.mxu1 %vm2373_vm2, %v6213_v51  ;;  %v4183_v35 = vadd.f32 %v4182_v24, %v3193_v16  ;;  %v4564_v51 = vpop.f32.mrf.mxu3  ;;  %v6816_v24 = vld [vmem:[%s8066_s24 + $0x800] sm:$0xf] }
 0x35a   : > { %v8581_v48 = vadd.f32 %v4564_v51, %v3575_v7 }
 0x35b   : > { %v5033_v38 = vmax.f32 %v4183_v35, 0.0  ;;  %3232 = vmatmul.bf16.gmra.mxu0 %v6201_v8  ;;  %v6817_v8 = vor.u32 %v7849_v15, %v6816_v24  ;;  %v6818_v35 = vld [vmem:[%s8066_s24 + $0x808] sm:$0xf0] }
 0x35c   : > { %9681 = vst [vmem:[#allocation16_spill] sm:$0xff] %v8581_v48  ;;  %v6821_v47 = vor.u32 %v7848_v9, %v6818_v35  ;;  %v7699_v48 = vld [vmem:[%s8066_s24 + $0x354] sm:$0xf0] }
 0x35d   : > { %v5424_v56 = vadd.f32 %v5423_v18, %v5033_v38  ;;  %v6221_v18 = vor.u32 %v7698_v49, %v6218_v58  ;;  %v6208_v38 = vld [vmem:[%s8066_s24 + $0x340] sm:$0xf]  ;;  %3617 = vmatmul.bf16.gmra.mxu2 %v6817_v8  ;;  %v6226_v8 = vld [vmem:[%s8066_s24 + $0x368] sm:$0xf0] }
 0x35e   : > { %v4189_v39 = vpop.f32.mrf.mxu1 }
 0x35f   : > { %7522 = vmatmul.msk.bf16.gmra.mxu3 %vm2373_vm2, %v6821_v47  ;;  %v3578_v7 = vpop.f32.mrf.mxu2  ;;  %v7850_v47 = vld [vmem:[%s8066_s24 + $0x814] sm:$0xf] }
 0x360   : > { %v3195_v46 = vpop.f32.mrf.mxu0 }
 0x361   : > { %v4185_v0 = vadd.f32 %v4184_v42, %v3195_v46  ;;  %v6209_v42 = vor.u32 %v7697_v30, %v6208_v38  ;;  %v4567_v49 = vpop.f32.mrf.mxu3  ;;  %v7851_v38 = vld [vmem:[%s8066_s24 + $0x814] sm:$0xf0] }
 0x362   : > { %v8591_v24 = vadd.f32 %v4567_v49, %v3578_v7 }
 0x363   : > { %v5034_v16 = vmax.f32 %v4185_v0, 0.0 }
 0x364   : > { %9682 = vst [vmem:[#allocation17_spill] sm:$0xff] %v8591_v24 }
 0x365   : > { %v5425_v36 = vadd.f32 %v5424_v56, %v5034_v16  ;;  %v7700_v16 = vld [vmem:[%s8066_s24 + $0x364] sm:$0xf] }
 0x366   : > { %v4192_v59 = vpop.f32.mrf.mxu1 }
 0x367   : > { %v3580_v30 = vpop.f32.mrf.mxu2 }
 0x368   : > { %v3198_v46 = vpop.f32.mrf.mxu0 }
 0x369   : > { %7447 = vmatmul.msk.bf16.gmra.mxu1 %vm2373_vm2, %v6221_v18  ;;  %v4188_v0 = vadd.f32 %v4187_v52, %v3198_v46  ;;  %v4569_v35 = vpop.f32.mrf.mxu3  ;;  %v6824_v52 = vld [vmem:[%s8066_s24 + $0x810] sm:$0xf] }
 0x36a   : > { %v8595_v18 = vadd.f32 %v4569_v35, %v3580_v30 }
 0x36b   : > { %v5035_v58 = vmax.f32 %v4188_v0, 0.0  ;;  %3237 = vmatmul.bf16.gmra.mxu0 %v6209_v42  ;;  %v6825_v42 = vor.u32 %v7851_v38, %v6824_v52  ;;  %v6826_v0 = vld [vmem:[%s8066_s24 + $0x818] sm:$0xf0] }
 0x36c   : > { %9683 = vst [vmem:[#allocation18_spill] sm:$0xff] %v8595_v18  ;;  %v6829_v7 = vor.u32 %v7850_v47, %v6826_v0  ;;  %v7701_v18 = vld [vmem:[%s8066_s24 + $0x364] sm:$0xf0] }
 0x36d   : > { %v5426_v56 = vadd.f32 %v5425_v36, %v5035_v58  ;;  %v6229_v36 = vor.u32 %v7700_v16, %v6226_v8  ;;  %v6216_v58 = vld [vmem:[%s8066_s24 + $0x350] sm:$0xf]  ;;  %3622 = vmatmul.bf16.gmra.mxu2 %v6825_v42  ;;  %v6234_v42 = vld [vmem:[%s8066_s24 + $0x378] sm:$0xf0] }
 0x36e   : > { %v4194_v51 = vpop.f32.mrf.mxu1 }
 0x36f   : > { %7523 = vmatmul.msk.bf16.gmra.mxu3 %vm2373_vm2, %v6829_v7  ;;  %v3583_v30 = vpop.f32.mrf.mxu2  ;;  %v7852_v7 = vld [vmem:[%s8066_s24 + $0x824] sm:$0xf] }
 0x370   : > { %v3200_v15 = vpop.f32.mrf.mxu0 }
 0x371   : > { %v4190_v9 = vadd.f32 %v4189_v39, %v3200_v15  ;;  %v6217_v39 = vor.u32 %v7699_v48, %v6216_v58  ;;  %v4572_v16 = vpop.f32.mrf.mxu3  ;;  %v7853_v58 = vld [vmem:[%s8066_s24 + $0x824] sm:$0xf0] }
 0x372   : > { %v8605_v52 = vadd.f32 %v4572_v16, %v3583_v30 }
 0x373   : > { %v5036_v46 = vmax.f32 %v4190_v9, 0.0 }
 0x374   : > { %9684 = vst [vmem:[#allocation19_spill] sm:$0xff] %v8605_v52 }
 0x375   : > { %v5427_v49 = vadd.f32 %v5426_v56, %v5036_v46  ;;  %v7702_v46 = vld [vmem:[%s8066_s24 + $0x374] sm:$0xf] }
 0x376   : > { %v4197_v24 = vpop.f32.mrf.mxu1 }
 0x377   : > { %v3585_v48 = vpop.f32.mrf.mxu2 }
 0x378   : > { %v3203_v15 = vpop.f32.mrf.mxu0 }
 0x379   : > { %7448 = vmatmul.msk.bf16.gmra.mxu1 %vm2373_vm2, %v6229_v36  ;;  %v4193_v9 = vadd.f32 %v4192_v59, %v3203_v15  ;;  %v4574_v0 = vpop.f32.mrf.mxu3  ;;  %v6832_v59 = vld [vmem:[%s8066_s24 + $0x820] sm:$0xf] }
 0x37a   : > { %v8609_v36 = vadd.f32 %v4574_v0, %v3585_v48 }
 0x37b   : > { %v5037_v8 = vmax.f32 %v4193_v9, 0.0  ;;  %3242 = vmatmul.bf16.gmra.mxu0 %v6217_v39  ;;  %v6833_v39 = vor.u32 %v7853_v58, %v6832_v59  ;;  %v6834_v9 = vld [vmem:[%s8066_s24 + $0x828] sm:$0xf0] }
 0x37c   : > { %9685 = vst [vmem:[#allocation20_spill] sm:$0xff] %v8609_v36  ;;  %v6837_v30 = vor.u32 %v7852_v7, %v6834_v9  ;;  %v7703_v36 = vld [vmem:[%s8066_s24 + $0x374] sm:$0xf0] }
 0x37d   : > { %v5428_v56 = vadd.f32 %v5427_v49, %v5037_v8  ;;  %v6237_v49 = vor.u32 %v7702_v46, %v6234_v42  ;;  %v6224_v8 = vld [vmem:[%s8066_s24 + $0x360] sm:$0xf]  ;;  %3627 = vmatmul.bf16.gmra.mxu2 %v6833_v39  ;;  %v6242_v39 = vld [vmem:[%s8066_s24 + $0x388] sm:$0xf0] }
 0x37e   : > { %v4199_v35 = vpop.f32.mrf.mxu1 }
 0x37f   : > { %7524 = vmatmul.msk.bf16.gmra.mxu3 %vm2373_vm2, %v6837_v30  ;;  %v3588_v48 = vpop.f32.mrf.mxu2  ;;  %v7854_v30 = vld [vmem:[%s8066_s24 + $0x834] sm:$0xf] }
 0x380   : > { %v3205_v38 = vpop.f32.mrf.mxu0 }
 0x381   : > { %v4195_v47 = vadd.f32 %v4194_v51, %v3205_v38  ;;  %v6225_v51 = vor.u32 %v7701_v18, %v6224_v8  ;;  %v4577_v46 = vpop.f32.mrf.mxu3  ;;  %v7855_v8 = vld [vmem:[%s8066_s24 + $0x834] sm:$0xf0] }
 0x382   : > { %v8619_v59 = vadd.f32 %v4577_v46, %v3588_v48 }
 0x383   : > { %v5038_v15 = vmax.f32 %v4195_v47, 0.0 }
 0x384   : > { %9686 = vst [vmem:[#allocation21_spill] sm:$0xff] %v8619_v59 }
 0x385   : > { %v5429_v16 = vadd.f32 %v5428_v56, %v5038_v15  ;;  %v7704_v15 = vld [vmem:[%s8066_s24 + $0x384] sm:$0xf] }
 0x386   : > { %v4202_v52 = vpop.f32.mrf.mxu1 }
 0x387   : > { %v3590_v18 = vpop.f32.mrf.mxu2 }
 0x388   : > { %v3208_v38 = vpop.f32.mrf.mxu0 }
 0x389   : > { %7449 = vmatmul.msk.bf16.gmra.mxu1 %vm2373_vm2, %v6237_v49  ;;  %v4198_v47 = vadd.f32 %v4197_v24, %v3208_v38  ;;  %v4579_v9 = vpop.f32.mrf.mxu3  ;;  %v6840_v24 = vld [vmem:[%s8066_s24 + $0x830] sm:$0xf] }
 0x38a   : > { %v8623_v49 = vadd.f32 %v4579_v9, %v3590_v18 }
 0x38b   : > { %v5039_v42 = vmax.f32 %v4198_v47, 0.0  ;;  %3247 = vmatmul.bf16.gmra.mxu0 %v6225_v51  ;;  %v6841_v51 = vor.u32 %v7855_v8, %v6840_v24  ;;  %v6842_v47 = vld [vmem:[%s8066_s24 + $0x838] sm:$0xf0] }
 0x38c   : > { %9687 = vst [vmem:[#allocation22_spill] sm:$0xff] %v8623_v49  ;;  %v6845_v48 = vor.u32 %v7854_v30, %v6842_v47  ;;  %v7705_v49 = vld [vmem:[%s8066_s24 + $0x384] sm:$0xf0] }
 0x38d   : > { %v5430_v56 = vadd.f32 %v5429_v16, %v5039_v42  ;;  %v6245_v16 = vor.u32 %v7704_v15, %v6242_v39  ;;  %v6232_v42 = vld [vmem:[%s8066_s24 + $0x370] sm:$0xf]  ;;  %3632 = vmatmul.bf16.gmra.mxu2 %v6841_v51  ;;  %v6250_v51 = vld [vmem:[%s8066_s24 + $0x398] sm:$0xf0] }
 0x38e   : > { %v4204_v0 = vpop.f32.mrf.mxu1 }
 0x38f   : > { %7525 = vmatmul.msk.bf16.gmra.mxu3 %vm2373_vm2, %v6845_v48  ;;  %v3593_v18 = vpop.f32.mrf.mxu2  ;;  %v7856_v48 = vld [vmem:[%s8066_s24 + $0x844] sm:$0xf] }
 0x390   : > { %v3210_v58 = vpop.f32.mrf.mxu0 }
 0x391   : > { %v4200_v7 = vadd.f32 %v4199_v35, %v3210_v58  ;;  %v6233_v35 = vor.u32 %v7703_v36, %v6232_v42  ;;  %v4582_v15 = vpop.f32.mrf.mxu3  ;;  %v7857_v42 = vld [vmem:[%s8066_s24 + $0x844] sm:$0xf0] }
 0x392   : > { %v8633_v24 = vadd.f32 %v4582_v15, %v3593_v18 }
 0x393   : > { %v5040_v38 = vmax.f32 %v4200_v7, 0.0 }
 0x394   : > { %9688 = vst [vmem:[#allocation23_spill] sm:$0xff] %v8633_v24 }
 0x395   : > { %v5431_v46 = vadd.f32 %v5430_v56, %v5040_v38  ;;  %v7706_v38 = vld [vmem:[%s8066_s24 + $0x394] sm:$0xf] }
 0x396   : > { %v4207_v59 = vpop.f32.mrf.mxu1 }
 0x397   : > { %v3595_v36 = vpop.f32.mrf.mxu2 }
 0x398   : > { %v3213_v58 = vpop.f32.mrf.mxu0 }
 0x399   : > { %7450 = vmatmul.msk.bf16.gmra.mxu1 %vm2373_vm2, %v6245_v16  ;;  %v4203_v7 = vadd.f32 %v4202_v52, %v3213_v58  ;;  %v4584_v47 = vpop.f32.mrf.mxu3  ;;  %v6848_v52 = vld [vmem:[%s8066_s24 + $0x840] sm:$0xf] }
 0x39a   : > { %v8637_v16 = vadd.f32 %v4584_v47, %v3595_v36 }
 0x39b   : > { %v5041_v39 = vmax.f32 %v4203_v7, 0.0  ;;  %3252 = vmatmul.bf16.gmra.mxu0 %v6233_v35  ;;  %v6849_v35 = vor.u32 %v7857_v42, %v6848_v52  ;;  %v6850_v7 = vld [vmem:[%s8066_s24 + $0x848] sm:$0xf0] }
 0x39c   : > { %9689 = vst [vmem:[#allocation24_spill] sm:$0xff] %v8637_v16  ;;  %v6853_v18 = vor.u32 %v7856_v48, %v6850_v7  ;;  %v7707_v16 = vld [vmem:[%s8066_s24 + $0x394] sm:$0xf0] }
 0x39d   : > { %v5432_v56 = vadd.f32 %v5431_v46, %v5041_v39  ;;  %v6253_v46 = vor.u32 %v7706_v38, %v6250_v51  ;;  %v6240_v39 = vld [vmem:[%s8066_s24 + $0x380] sm:$0xf]  ;;  %3637 = vmatmul.bf16.gmra.mxu2 %v6849_v35  ;;  %v6258_v35 = vld [vmem:[%s8066_s24 + $0x3a8] sm:$0xf0] }
 0x39e   : > { %v4209_v9 = vpop.f32.mrf.mxu1 }
 0x39f   : > { %7526 = vmatmul.msk.bf16.gmra.mxu3 %vm2373_vm2, %v6853_v18  ;;  %v3598_v36 = vpop.f32.mrf.mxu2  ;;  %v7858_v18 = vld [vmem:[%s8066_s24 + $0x854] sm:$0xf] }
 0x3a0   : > { %v3215_v8 = vpop.f32.mrf.mxu0 }
 0x3a1   : > { %v4205_v30 = vadd.f32 %v4204_v0, %v3215_v8  ;;  %v6241_v0 = vor.u32 %v7705_v49, %v6240_v39  ;;  %v4587_v38 = vpop.f32.mrf.mxu3  ;;  %v7859_v39 = vld [vmem:[%s8066_s24 + $0x854] sm:$0xf0] }
 0x3a2   : > { %v8647_v52 = vadd.f32 %v4587_v38, %v3598_v36 }
 0x3a3   : > { %v5042_v58 = vmax.f32 %v4205_v30, 0.0 }
 0x3a4   : > { %9690 = vst [vmem:[#allocation25_spill] sm:$0xff] %v8647_v52 }
 0x3a5   : > { %v5433_v15 = vadd.f32 %v5432_v56, %v5042_v58  ;;  %v7708_v58 = vld [vmem:[%s8066_s24 + $0x3a4] sm:$0xf] }
 0x3a6   : > { %v4212_v24 = vpop.f32.mrf.mxu1 }
 0x3a7   : > { %v3600_v49 = vpop.f32.mrf.mxu2 }
 0x3a8   : > { %v3218_v8 = vpop.f32.mrf.mxu0 }
 0x3a9   : > { %7451 = vmatmul.msk.bf16.gmra.mxu1 %vm2373_vm2, %v6253_v46  ;;  %v4208_v30 = vadd.f32 %v4207_v59, %v3218_v8  ;;  %v4589_v7 = vpop.f32.mrf.mxu3  ;;  %v6856_v59 = vld [vmem:[%s8066_s24 + $0x850] sm:$0xf] }
 0x3aa   : > { %v8651_v46 = vadd.f32 %v4589_v7, %v3600_v49 }
 0x3ab   : > { %v5043_v51 = vmax.f32 %v4208_v30, 0.0  ;;  %3257 = vmatmul.bf16.gmra.mxu0 %v6241_v0  ;;  %v6857_v0 = vor.u32 %v7859_v39, %v6856_v59  ;;  %v6858_v30 = vld [vmem:[%s8066_s24 + $0x858] sm:$0xf0] }
 0x3ac   : > { %9691 = vst [vmem:[#allocation26_spill] sm:$0xff] %v8651_v46  ;;  %v6861_v36 = vor.u32 %v7858_v18, %v6858_v30  ;;  %v7709_v46 = vld [vmem:[%s8066_s24 + $0x3a4] sm:$0xf0] }
 0x3ad   : > { %v5434_v56 = vadd.f32 %v5433_v15, %v5043_v51  ;;  %v6261_v15 = vor.u32 %v7708_v58, %v6258_v35  ;;  %v6248_v51 = vld [vmem:[%s8066_s24 + $0x390] sm:$0xf]  ;;  %3642 = vmatmul.bf16.gmra.mxu2 %v6857_v0  ;;  %v6266_v0 = vld [vmem:[%s8066_s24 + $0x3b8] sm:$0xf0] }
 0x3ae   : > { %v4214_v47 = vpop.f32.mrf.mxu1 }
 0x3af   : > { %7527 = vmatmul.msk.bf16.gmra.mxu3 %vm2373_vm2, %v6861_v36  ;;  %v3603_v49 = vpop.f32.mrf.mxu2  ;;  %v7860_v36 = vld [vmem:[%s8066_s24 + $0x864] sm:$0xf] }
 0x3b0   : > { %v3220_v42 = vpop.f32.mrf.mxu0 }
 0x3b1   : > { %v4210_v48 = vadd.f32 %v4209_v9, %v3220_v42  ;;  %v6249_v9 = vor.u32 %v7707_v16, %v6248_v51  ;;  %v7861_v51 = vld [vmem:[%s8066_s24 + $0x864] sm:$0xf0] }
 0x3b2   : > { %v4592_v58 = vpop.f32.mrf.mxu3 }
 0x3b3   : > { %v5044_v8 = vmax.f32 %v4210_v48, 0.0  ;;  %v8661_v59 = vadd.f32 %v4592_v58, %v3603_v49 }
 0x3b5   : > { %v5435_v38 = vadd.f32 %v5434_v56, %v5044_v8  ;;  %9692 = vst [vmem:[#allocation27_spill] sm:$0xff] %v8661_v59  ;;  %v7710_v8 = vld [vmem:[%s8066_s24 + $0x3b4] sm:$0xf] }
 0x3b6   : > { %v4217_v52 = vpop.f32.mrf.mxu1 }
 0x3b7   : > { %v3605_v16 = vpop.f32.mrf.mxu2 }
 0x3b8   : > { %v3223_v42 = vpop.f32.mrf.mxu0 }
 0x3b9   : > { %7452 = vmatmul.msk.bf16.gmra.mxu1 %vm2373_vm2, %v6261_v15  ;;  %v4213_v48 = vadd.f32 %v4212_v24, %v3223_v42  ;;  %v6864_v24 = vld [vmem:[%s8066_s24 + $0x860] sm:$0xf] }
 0x3ba   : > { %v4594_v30 = vpop.f32.mrf.mxu3 }
 0x3bb   : > { %v5045_v35 = vmax.f32 %v4213_v48, 0.0  ;;  %3262 = vmatmul.bf16.gmra.mxu0 %v6249_v9  ;;  %v8665_v15 = vadd.f32 %v4594_v30, %v3605_v16  ;;  %v6865_v9 = vor.u32 %v7861_v51, %v6864_v24  ;;  %v6866_v48 = vld [vmem:[%s8066_s24 + $0x868] sm:$0xf0] }
 0x3bc   : > { %v6869_v49 = vor.u32 %v7860_v36, %v6866_v48 }
 0x3bd   : > { %v5436_v56 = vadd.f32 %v5435_v38, %v5045_v35  ;;  %9693 = vst [vmem:[#allocation28_spill] sm:$0xff] %v8665_v15  ;;  %v6269_v38 = vor.u32 %v7710_v8, %v6266_v0  ;;  %v6256_v35 = vld [vmem:[%s8066_s24 + $0x3a0] sm:$0xf]  ;;  %3647 = vmatmul.bf16.gmra.mxu2 %v6865_v9  ;;  %v6274_v9 = vld [vmem:[%s8066_s24 + $0x3c8] sm:$0xf0] }
 0x3be   : > { %v4219_v7 = vpop.f32.mrf.mxu1  ;;  %v7711_v15 = vld [vmem:[%s8066_s24 + $0x3b4] sm:$0xf0] }
 0x3bf   : > { %7528 = vmatmul.msk.bf16.gmra.mxu3 %vm2373_vm2, %v6869_v49  ;;  %v3608_v16 = vpop.f32.mrf.mxu2  ;;  %v7862_v49 = vld [vmem:[%s8066_s24 + $0x874] sm:$0xf] }
 0x3c0   : > { %v3225_v39 = vpop.f32.mrf.mxu0 }
 0x3c1   : > { %v4215_v18 = vadd.f32 %v4214_v47, %v3225_v39  ;;  %v6257_v47 = vor.u32 %v7709_v46, %v6256_v35  ;;  %v7863_v35 = vld [vmem:[%s8066_s24 + $0x874] sm:$0xf0] }
 0x3c2   : > { %v4597_v8 = vpop.f32.mrf.mxu3 }
 0x3c3   : > { %v5046_v42 = vmax.f32 %v4215_v18, 0.0  ;;  %v8675_v24 = vadd.f32 %v4597_v8, %v3608_v16 }
 0x3c5   : > { %v5437_v58 = vadd.f32 %v5436_v56, %v5046_v42  ;;  %9694 = vst [vmem:[#allocation29_spill] sm:$0xff] %v8675_v24  ;;  %v7712_v42 = vld [vmem:[%s8066_s24 + $0x3c4] sm:$0xf] }
 0x3c6   : > { %v4222_v59 = vpop.f32.mrf.mxu1 }
 0x3c7   : > { %v3610_v46 = vpop.f32.mrf.mxu2 }
 0x3c8   : > { %v3228_v39 = vpop.f32.mrf.mxu0 }
 0x3c9   : > { %7453 = vmatmul.msk.bf16.gmra.mxu1 %vm2373_vm2, %v6269_v38  ;;  %v4218_v18 = vadd.f32 %v4217_v52, %v3228_v39  ;;  %v6872_v52 = vld [vmem:[%s8066_s24 + $0x870] sm:$0xf] }
 0x3ca   : > { %v4599_v48 = vpop.f32.mrf.mxu3 }
 0x3cb   : > { %v5047_v0 = vmax.f32 %v4218_v18, 0.0  ;;  %3267 = vmatmul.bf16.gmra.mxu0 %v6257_v47  ;;  %v8679_v38 = vadd.f32 %v4599_v48, %v3610_v46  ;;  %v6873_v47 = vor.u32 %v7863_v35, %v6872_v52  ;;  %v6874_v18 = vld [vmem:[%s8066_s24 + $0x878] sm:$0xf0] }
 0x3cc   : > { %v6877_v16 = vor.u32 %v7862_v49, %v6874_v18 }
 0x3cd   : > { %v5438_v56 = vadd.f32 %v5437_v58, %v5047_v0  ;;  %9695 = vst [vmem:[#allocation30_spill] sm:$0xff] %v8679_v38  ;;  %v6277_v58 = vor.u32 %v7712_v42, %v6274_v9  ;;  %v6264_v0 = vld [vmem:[%s8066_s24 + $0x3b0] sm:$0xf]  ;;  %3652 = vmatmul.bf16.gmra.mxu2 %v6873_v47  ;;  %v6282_v47 = vld [vmem:[%s8066_s24 + $0x3d8] sm:$0xf0] }
 0x3ce   : > { %v4224_v30 = vpop.f32.mrf.mxu1  ;;  %v7713_v38 = vld [vmem:[%s8066_s24 + $0x3c4] sm:$0xf0] }
 0x3cf   : > { %7529 = vmatmul.msk.bf16.gmra.mxu3 %vm2373_vm2, %v6877_v16  ;;  %v3613_v46 = vpop.f32.mrf.mxu2  ;;  %v7864_v16 = vld [vmem:[%s8066_s24 + $0x884] sm:$0xf] }
 0x3d0   : > { %v3230_v51 = vpop.f32.mrf.mxu0 }
 0x3d1   : > { %v4220_v36 = vadd.f32 %v4219_v7, %v3230_v51  ;;  %v6265_v7 = vor.u32 %v7711_v15, %v6264_v0  ;;  %v7865_v0 = vld [vmem:[%s8066_s24 + $0x884] sm:$0xf0] }
 0x3d2   : > { %v4602_v42 = vpop.f32.mrf.mxu3 }
 0x3d3   : > { %v5048_v39 = vmax.f32 %v4220_v36, 0.0  ;;  %v8689_v52 = vadd.f32 %v4602_v42, %v3613_v46 }
 0x3d5   : > { %v5439_v8 = vadd.f32 %v5438_v56, %v5048_v39  ;;  %9696 = vst [vmem:[#allocation31_spill] sm:$0xff] %v8689_v52  ;;  %v7714_v39 = vld [vmem:[%s8066_s24 + $0x3d4] sm:$0xf] }
 0x3d6   : > { %v4227_v24 = vpop.f32.mrf.mxu1 }
 0x3d7   : > { %v3615_v15 = vpop.f32.mrf.mxu2 }
 0x3d8   : > { %v3233_v51 = vpop.f32.mrf.mxu0 }
 0x3d9   : > { %7454 = vmatmul.msk.bf16.gmra.mxu1 %vm2373_vm2, %v6277_v58  ;;  %v4223_v36 = vadd.f32 %v4222_v59, %v3233_v51  ;;  %v6880_v59 = vld [vmem:[%s8066_s24 + $0x880] sm:$0xf] }
 0x3da   : > { %v4604_v18 = vpop.f32.mrf.mxu3 }
 0x3db   : > { %v5049_v9 = vmax.f32 %v4223_v36, 0.0  ;;  %3272 = vmatmul.bf16.gmra.mxu0 %v6265_v7  ;;  %v8693_v58 = vadd.f32 %v4604_v18, %v3615_v15  ;;  %v6881_v7 = vor.u32 %v7865_v0, %v6880_v59  ;;  %v6882_v36 = vld [vmem:[%s8066_s24 + $0x888] sm:$0xf0] }
 0x3dc   : > { %v6885_v46 = vor.u32 %v7864_v16, %v6882_v36 }
 0x3dd   : > { %v5440_v56 = vadd.f32 %v5439_v8, %v5049_v9  ;;  %9697 = vst [vmem:[#allocation32_spill] sm:$0xff] %v8693_v58  ;;  %v6285_v8 = vor.u32 %v7714_v39, %v6282_v47  ;;  %v6272_v9 = vld [vmem:[%s8066_s24 + $0x3c0] sm:$0xf]  ;;  %3657 = vmatmul.bf16.gmra.mxu2 %v6881_v7  ;;  %v6290_v7 = vld [vmem:[%s8066_s24 + $0x3e8] sm:$0xf0] }
 0x3de   : > { %v4229_v48 = vpop.f32.mrf.mxu1  ;;  %v7715_v58 = vld [vmem:[%s8066_s24 + $0x3d4] sm:$0xf0] }
 0x3df   : > { %7530 = vmatmul.msk.bf16.gmra.mxu3 %vm2373_vm2, %v6885_v46  ;;  %v7866_v46 = vld [vmem:[%s8066_s24 + $0x894] sm:$0xf] }
 0x3e0   : > { %v3235_v35 = vpop.f32.mrf.mxu0  ;;  %v3618_v15 = vpop.f32.mrf.mxu2 }
 0x3e1   : > { %v4225_v49 = vadd.f32 %v4224_v30, %v3235_v35  ;;  %v6273_v30 = vor.u32 %v7713_v38, %v6272_v9  ;;  %v7867_v9 = vld [vmem:[%s8066_s24 + $0x894] sm:$0xf0] }
 0x3e2   : > { %v4607_v39 = vpop.f32.mrf.mxu3 }
 0x3e3   : > { %v5050_v51 = vmax.f32 %v4225_v49, 0.0  ;;  %v8703_v59 = vadd.f32 %v4607_v39, %v3618_v15 }
 0x3e5   : > { %v5441_v42 = vadd.f32 %v5440_v56, %v5050_v51  ;;  %9698 = vst [vmem:[#allocation33_spill] sm:$0xff] %v8703_v59  ;;  %v7716_v51 = vld [vmem:[%s8066_s24 + $0x3e4] sm:$0xf] }
 0x3e6   : > { %v4232_v52 = vpop.f32.mrf.mxu1 }
 0x3e8   : > { %v3238_v35 = vpop.f32.mrf.mxu0  ;;  %v3620_v38 = vpop.f32.mrf.mxu2 }
 0x3e9   : > { %7455 = vmatmul.msk.bf16.gmra.mxu1 %vm2373_vm2, %v6285_v8  ;;  %v4228_v49 = vadd.f32 %v4227_v24, %v3238_v35  ;;  %v6888_v24 = vld [vmem:[%s8066_s24 + $0x890] sm:$0xf] }
 0x3ea   : > { %v4609_v36 = vpop.f32.mrf.mxu3 }
 0x3eb   : > { %v5051_v47 = vmax.f32 %v4228_v49, 0.0  ;;  %3277 = vmatmul.bf16.gmra.mxu0 %v6273_v30  ;;  %v8707_v8 = vadd.f32 %v4609_v36, %v3620_v38  ;;  %v6889_v30 = vor.u32 %v7867_v9, %v6888_v24  ;;  %v6890_v49 = vld [vmem:[%s8066_s24 + $0x898] sm:$0xf0] }
 0x3ec   : > { %v6893_v15 = vor.u32 %v7866_v46, %v6890_v49 }
 0x3ed   : > { %v5442_v56 = vadd.f32 %v5441_v42, %v5051_v47  ;;  %9699 = vst [vmem:[#allocation34_spill] sm:$0xff] %v8707_v8  ;;  %v6293_v42 = vor.u32 %v7716_v51, %v6290_v7  ;;  %v6280_v47 = vld [vmem:[%s8066_s24 + $0x3d0] sm:$0xf]  ;;  %3662 = vmatmul.bf16.gmra.mxu2 %v6889_v30  ;;  %v6298_v30 = vld [vmem:[%s8066_s24 + $0x3f8] sm:$0xf0] }
 0x3ee   : > { %v4234_v18 = vpop.f32.mrf.mxu1  ;;  %v7717_v8 = vld [vmem:[%s8066_s24 + $0x3e4] sm:$0xf0] }
 0x3ef   : > { %7531 = vmatmul.msk.bf16.gmra.mxu3 %vm2373_vm2, %v6893_v15  ;;  %v7868_v15 = vld [vmem:[%s8066_s24 + $0x8a4] sm:$0xf] }
 0x3f0   : > { %v3240_v0 = vpop.f32.mrf.mxu0  ;;  %v3623_v38 = vpop.f32.mrf.mxu2 }
 0x3f1   : > { %v4230_v16 = vadd.f32 %v4229_v48, %v3240_v0  ;;  %v6281_v48 = vor.u32 %v7715_v58, %v6280_v47  ;;  %v7869_v47 = vld [vmem:[%s8066_s24 + $0x8a4] sm:$0xf0] }
 0x3f2   : > { %v4612_v51 = vpop.f32.mrf.mxu3 }
 0x3f3   : > { %v5052_v35 = vmax.f32 %v4230_v16, 0.0  ;;  %v8717_v24 = vadd.f32 %v4612_v51, %v3623_v38 }
 0x3f5   : > { %v5443_v39 = vadd.f32 %v5442_v56, %v5052_v35  ;;  %9700 = vst [vmem:[#allocation35_spill] sm:$0xff] %v8717_v24  ;;  %v7718_v35 = vld [vmem:[%s8066_s24 + $0x3f4] sm:$0xf] }
 0x3f6   : > { %v4237_v59 = vpop.f32.mrf.mxu1 }
 0x3f8   : > { %v3243_v0 = vpop.f32.mrf.mxu0  ;;  %v3625_v58 = vpop.f32.mrf.mxu2 }
 0x3f9   : > { %7456 = vmatmul.msk.bf16.gmra.mxu1 %vm2373_vm2, %v6293_v42  ;;  %v4233_v16 = vadd.f32 %v4232_v52, %v3243_v0  ;;  %v6896_v52 = vld [vmem:[%s8066_s24 + $0x8a0] sm:$0xf] }
 0x3fa   : > { %v4614_v49 = vpop.f32.mrf.mxu3 }
 0x3fb   : > { %v5053_v7 = vmax.f32 %v4233_v16, 0.0  ;;  %3282 = vmatmul.bf16.gmra.mxu0 %v6281_v48  ;;  %v8721_v42 = vadd.f32 %v4614_v49, %v3625_v58  ;;  %v6897_v48 = vor.u32 %v7869_v47, %v6896_v52  ;;  %v6898_v16 = vld [vmem:[%s8066_s24 + $0x8a8] sm:$0xf0] }
 0x3fc   : > { %v6901_v38 = vor.u32 %v7868_v15, %v6898_v16 }
 0x3fd   : > { %v5444_v56 = vadd.f32 %v5443_v39, %v5053_v7  ;;  %9701 = vst [vmem:[#allocation36_spill] sm:$0xff] %v8721_v42  ;;  %v6301_v39 = vor.u32 %v7718_v35, %v6298_v30  ;;  %v6288_v7 = vld [vmem:[%s8066_s24 + $0x3e0] sm:$0xf]  ;;  %3667 = vmatmul.bf16.gmra.mxu2 %v6897_v48  ;;  %v6306_v48 = vld [vmem:[%s8066_s24 + $0x408] sm:$0xf0] }
 0x3fe   : > { %v4239_v36 = vpop.f32.mrf.mxu1  ;;  %v7719_v42 = vld [vmem:[%s8066_s24 + $0x3f4] sm:$0xf0] }
 0x3ff   : > { %7532 = vmatmul.msk.bf16.gmra.mxu3 %vm2373_vm2, %v6901_v38  ;;  %v7870_v38 = vld [vmem:[%s8066_s24 + $0x8b4] sm:$0xf] }
 0x400   : > { %v3245_v9 = vpop.f32.mrf.mxu0  ;;  %v3628_v58 = vpop.f32.mrf.mxu2 }
 0x401   : > { %v4235_v46 = vadd.f32 %v4234_v18, %v3245_v9  ;;  %v6289_v18 = vor.u32 %v7717_v8, %v6288_v7  ;;  %v7871_v7 = vld [vmem:[%s8066_s24 + $0x8b4] sm:$0xf0] }
 0x402   : > { %v4617_v35 = vpop.f32.mrf.mxu3 }
 0x403   : > { %v5054_v0 = vmax.f32 %v4235_v46, 0.0  ;;  %v8731_v52 = vadd.f32 %v4617_v35, %v3628_v58 }
 0x405   : > { %v5445_v51 = vadd.f32 %v5444_v56, %v5054_v0  ;;  %9702 = vst [vmem:[#allocation37_spill] sm:$0xff] %v8731_v52  ;;  %v7720_v0 = vld [vmem:[%s8066_s24 + $0x404] sm:$0xf] }
 0x406   : > { %v4242_v24 = vpop.f32.mrf.mxu1 }
 0x408   : > { %v3248_v9 = vpop.f32.mrf.mxu0  ;;  %v3630_v8 = vpop.f32.mrf.mxu2 }
 0x409   : > { %7457 = vmatmul.msk.bf16.gmra.mxu1 %vm2373_vm2, %v6301_v39  ;;  %v4238_v46 = vadd.f32 %v4237_v59, %v3248_v9  ;;  %v6904_v59 = vld [vmem:[%s8066_s24 + $0x8b0] sm:$0xf] }
 0x40a   : > { %v4619_v16 = vpop.f32.mrf.mxu3 }
 0x40b   : > { %v5055_v30 = vmax.f32 %v4238_v46, 0.0  ;;  %3287 = vmatmul.bf16.gmra.mxu0 %v6289_v18  ;;  %v8735_v39 = vadd.f32 %v4619_v16, %v3630_v8  ;;  %v6905_v18 = vor.u32 %v7871_v7, %v6904_v59  ;;  %v6906_v46 = vld [vmem:[%s8066_s24 + $0x8b8] sm:$0xf0] }
 0x40c   : > { %v6909_v58 = vor.u32 %v7870_v38, %v6906_v46 }
 0x40d   : > { %v5446_v56 = vadd.f32 %v5445_v51, %v5055_v30  ;;  %9703 = vst [vmem:[#allocation38_spill] sm:$0xff] %v8735_v39  ;;  %v6309_v51 = vor.u32 %v7720_v0, %v6306_v48  ;;  %v6296_v30 = vld [vmem:[%s8066_s24 + $0x3f0] sm:$0xf]  ;;  %3672 = vmatmul.bf16.gmra.mxu2 %v6905_v18  ;;  %v6314_v18 = vld [vmem:[%s8066_s24 + $0x418] sm:$0xf0] }
 0x40e   : > { %v4244_v49 = vpop.f32.mrf.mxu1  ;;  %v7721_v39 = vld [vmem:[%s8066_s24 + $0x404] sm:$0xf0] }
 0x40f   : > { %7533 = vmatmul.msk.bf16.gmra.mxu3 %vm2373_vm2, %v6909_v58  ;;  %v7872_v58 = vld [vmem:[%s8066_s24 + $0x8c4] sm:$0xf] }
 0x410   : > { %v3250_v47 = vpop.f32.mrf.mxu0  ;;  %v3633_v8 = vpop.f32.mrf.mxu2 }
 0x411   : > { %v4240_v15 = vadd.f32 %v4239_v36, %v3250_v47  ;;  %v6297_v36 = vor.u32 %v7719_v42, %v6296_v30  ;;  %v7873_v30 = vld [vmem:[%s8066_s24 + $0x8c4] sm:$0xf0] }
 0x412   : > { %v4622_v0 = vpop.f32.mrf.mxu3 }
 0x413   : > { %v5056_v9 = vmax.f32 %v4240_v15, 0.0  ;;  %v8745_v59 = vadd.f32 %v4622_v0, %v3633_v8 }
 0x415   : > { %v5447_v35 = vadd.f32 %v5446_v56, %v5056_v9  ;;  %9704 = vst [vmem:[#allocation39_spill] sm:$0xff] %v8745_v59  ;;  %v7722_v9 = vld [vmem:[%s8066_s24 + $0x414] sm:$0xf] }
 0x416   : > { %v4247_v52 = vpop.f32.mrf.mxu1 }
 0x418   : > { %v3253_v47 = vpop.f32.mrf.mxu0  ;;  %v3635_v42 = vpop.f32.mrf.mxu2 }
 0x419   : > { %7458 = vmatmul.msk.bf16.gmra.mxu1 %vm2373_vm2, %v6309_v51  ;;  %v4243_v15 = vadd.f32 %v4242_v24, %v3253_v47  ;;  %v6912_v24 = vld [vmem:[%s8066_s24 + $0x8c0] sm:$0xf] }
 0x41a   : > { %v4624_v46 = vpop.f32.mrf.mxu3 }
 0x41b   : > { %v5057_v48 = vmax.f32 %v4243_v15, 0.0  ;;  %3292 = vmatmul.bf16.gmra.mxu0 %v6297_v36  ;;  %v8749_v51 = vadd.f32 %v4624_v46, %v3635_v42  ;;  %v6913_v36 = vor.u32 %v7873_v30, %v6912_v24  ;;  %v6914_v15 = vld [vmem:[%s8066_s24 + $0x8c8] sm:$0xf0] }
 0x41c   : > { %v6917_v8 = vor.u32 %v7872_v58, %v6914_v15 }
 0x41d   : > { %v5448_v56 = vadd.f32 %v5447_v35, %v5057_v48  ;;  %9705 = vst [vmem:[#allocation40_spill] sm:$0xff] %v8749_v51  ;;  %v6317_v35 = vor.u32 %v7722_v9, %v6314_v18  ;;  %v6304_v48 = vld [vmem:[%s8066_s24 + $0x400] sm:$0xf]  ;;  %3677 = vmatmul.bf16.gmra.mxu2 %v6913_v36  ;;  %v6322_v36 = vld [vmem:[%s8066_s24 + $0x428] sm:$0xf0] }
 0x41e   : > { %v4249_v16 = vpop.f32.mrf.mxu1  ;;  %v7723_v51 = vld [vmem:[%s8066_s24 + $0x414] sm:$0xf0] }
 0x41f   : > { %7534 = vmatmul.msk.bf16.gmra.mxu3 %vm2373_vm2, %v6917_v8  ;;  %v7874_v8 = vld [vmem:[%s8066_s24 + $0x8d4] sm:$0xf] }
 0x420   : > { %v3255_v7 = vpop.f32.mrf.mxu0  ;;  %v3638_v42 = vpop.f32.mrf.mxu2 }
 0x421   : > { %v4245_v38 = vadd.f32 %v4244_v49, %v3255_v7  ;;  %v6305_v49 = vor.u32 %v7721_v39, %v6304_v48  ;;  %v7875_v48 = vld [vmem:[%s8066_s24 + $0x8d4] sm:$0xf0] }
 0x422   : > { %v4627_v9 = vpop.f32.mrf.mxu3 }
 0x423   : > { %v5058_v47 = vmax.f32 %v4245_v38, 0.0  ;;  %v8759_v24 = vadd.f32 %v4627_v9, %v3638_v42 }
 0x425   : > { %v5449_v0 = vadd.f32 %v5448_v56, %v5058_v47  ;;  %9706 = vst [vmem:[#allocation41_spill] sm:$0xff] %v8759_v24  ;;  %v7724_v47 = vld [vmem:[%s8066_s24 + $0x424] sm:$0xf] }
 0x426   : > { %v4252_v59 = vpop.f32.mrf.mxu1 }
 0x428   : > { %v3258_v7 = vpop.f32.mrf.mxu0  ;;  %v3640_v39 = vpop.f32.mrf.mxu2 }
 0x429   : > { %7459 = vmatmul.msk.bf16.gmra.mxu1 %vm2373_vm2, %v6317_v35  ;;  %v4248_v38 = vadd.f32 %v4247_v52, %v3258_v7  ;;  %v6920_v52 = vld [vmem:[%s8066_s24 + $0x8d0] sm:$0xf] }
 0x42a   : > { %v4629_v15 = vpop.f32.mrf.mxu3 }
 0x42b   : > { %v5059_v18 = vmax.f32 %v4248_v38, 0.0  ;;  %3297 = vmatmul.bf16.gmra.mxu0 %v6305_v49  ;;  %v8763_v35 = vadd.f32 %v4629_v15, %v3640_v39  ;;  %v6921_v49 = vor.u32 %v7875_v48, %v6920_v52  ;;  %v6922_v38 = vld [vmem:[%s8066_s24 + $0x8d8] sm:$0xf0] }
 0x42c   : > { %v6925_v42 = vor.u32 %v7874_v8, %v6922_v38 }
 0x42d   : > { %v5450_v56 = vadd.f32 %v5449_v0, %v5059_v18  ;;  %9707 = vst [vmem:[#allocation42_spill] sm:$0xff] %v8763_v35  ;;  %v6325_v0 = vor.u32 %v7724_v47, %v6322_v36  ;;  %v6312_v18 = vld [vmem:[%s8066_s24 + $0x410] sm:$0xf]  ;;  %3682 = vmatmul.bf16.gmra.mxu2 %v6921_v49  ;;  %v6330_v49 = vld [vmem:[%s8066_s24 + $0x438] sm:$0xf0] }
 0x42e   : > { %v4254_v46 = vpop.f32.mrf.mxu1  ;;  %v7725_v35 = vld [vmem:[%s8066_s24 + $0x424] sm:$0xf0] }
 0x42f   : > { %7535 = vmatmul.msk.bf16.gmra.mxu3 %vm2373_vm2, %v6925_v42  ;;  %v7876_v42 = vld [vmem:[%s8066_s24 + $0x8e4] sm:$0xf] }
 0x430   : > { %v3260_v30 = vpop.f32.mrf.mxu0  ;;  %v3643_v39 = vpop.f32.mrf.mxu2 }
 0x431   : > { %v4250_v58 = vadd.f32 %v4249_v16, %v3260_v30  ;;  %v6313_v16 = vor.u32 %v7723_v51, %v6312_v18  ;;  %v7877_v18 = vld [vmem:[%s8066_s24 + $0x8e4] sm:$0xf0] }
 0x432   : > { %v4632_v47 = vpop.f32.mrf.mxu3 }
 0x433   : > { %v5060_v7 = vmax.f32 %v4250_v58, 0.0  ;;  %v8773_v52 = vadd.f32 %v4632_v47, %v3643_v39 }
 0x435   : > { %v5451_v9 = vadd.f32 %v5450_v56, %v5060_v7  ;;  %9708 = vst [vmem:[#allocation43_spill] sm:$0xff] %v8773_v52  ;;  %v7726_v7 = vld [vmem:[%s8066_s24 + $0x434] sm:$0xf] }
 0x436   : > { %v4257_v24 = vpop.f32.mrf.mxu1 }
 0x438   : > { %v3263_v30 = vpop.f32.mrf.mxu0  ;;  %v3645_v51 = vpop.f32.mrf.mxu2 }
 0x439   : > { %7460 = vmatmul.msk.bf16.gmra.mxu1 %vm2373_vm2, %v6325_v0  ;;  %v4253_v58 = vadd.f32 %v4252_v59, %v3263_v30  ;;  %v6928_v59 = vld [vmem:[%s8066_s24 + $0x8e0] sm:$0xf] }
 0x43a   : > { %v4634_v38 = vpop.f32.mrf.mxu3 }
 0x43b   : > { %v5061_v36 = vmax.f32 %v4253_v58, 0.0  ;;  %3302 = vmatmul.bf16.gmra.mxu0 %v6313_v16  ;;  %v8777_v0 = vadd.f32 %v4634_v38, %v3645_v51  ;;  %v6929_v16 = vor.u32 %v7877_v18, %v6928_v59  ;;  %v6930_v58 = vld [vmem:[%s8066_s24 + $0x8e8] sm:$0xf0] }
 0x43c   : > { %v6933_v39 = vor.u32 %v7876_v42, %v6930_v58 }
 0x43d   : > { %v5452_v56 = vadd.f32 %v5451_v9, %v5061_v36  ;;  %9709 = vst [vmem:[#allocation44_spill] sm:$0xff] %v8777_v0  ;;  %v6333_v9 = vor.u32 %v7726_v7, %v6330_v49  ;;  %v6320_v36 = vld [vmem:[%s8066_s24 + $0x420] sm:$0xf]  ;;  %3687 = vmatmul.bf16.gmra.mxu2 %v6929_v16  ;;  %v6338_v16 = vld [vmem:[%s8066_s24 + $0x448] sm:$0xf0] }
 0x43e   : > { %v4259_v15 = vpop.f32.mrf.mxu1  ;;  %v7727_v0 = vld [vmem:[%s8066_s24 + $0x434] sm:$0xf0] }
 0x43f   : > { %7536 = vmatmul.msk.bf16.gmra.mxu3 %vm2373_vm2, %v6933_v39  ;;  %v7878_v39 = vld [vmem:[%s8066_s24 + $0x8f4] sm:$0xf] }
 0x440   : > { %v3265_v48 = vpop.f32.mrf.mxu0  ;;  %v3648_v51 = vpop.f32.mrf.mxu2 }
 0x441   : > { %v4255_v8 = vadd.f32 %v4254_v46, %v3265_v48  ;;  %v6321_v46 = vor.u32 %v7725_v35, %v6320_v36  ;;  %v7879_v36 = vld [vmem:[%s8066_s24 + $0x8f4] sm:$0xf0] }
 0x442   : > { %v4637_v7 = vpop.f32.mrf.mxu3 }
 0x443   : > { %v5062_v30 = vmax.f32 %v4255_v8, 0.0  ;;  %v8787_v59 = vadd.f32 %v4637_v7, %v3648_v51 }
 0x445   : > { %v5453_v47 = vadd.f32 %v5452_v56, %v5062_v30  ;;  %9710 = vst [vmem:[#allocation45_spill] sm:$0xff] %v8787_v59  ;;  %v7728_v30 = vld [vmem:[%s8066_s24 + $0x444] sm:$0xf] }
 0x446   : > { %v4262_v52 = vpop.f32.mrf.mxu1 }
 0x448   : > { %v3268_v48 = vpop.f32.mrf.mxu0  ;;  %v3650_v35 = vpop.f32.mrf.mxu2 }
 0x449   : > { %7461 = vmatmul.msk.bf16.gmra.mxu1 %vm2373_vm2, %v6333_v9  ;;  %v4258_v8 = vadd.f32 %v4257_v24, %v3268_v48  ;;  %v6936_v24 = vld [vmem:[%s8066_s24 + $0x8f0] sm:$0xf] }
 0x44a   : > { %v4639_v58 = vpop.f32.mrf.mxu3 }
 0x44b   : > { %v5063_v49 = vmax.f32 %v4258_v8, 0.0  ;;  %3307 = vmatmul.bf16.gmra.mxu0 %v6321_v46  ;;  %v8791_v9 = vadd.f32 %v4639_v58, %v3650_v35  ;;  %v6937_v46 = vor.u32 %v7879_v36, %v6936_v24  ;;  %v6938_v8 = vld [vmem:[%s8066_s24 + $0x8f8] sm:$0xf0] }
 0x44c   : > { %v6941_v51 = vor.u32 %v7878_v39, %v6938_v8 }
 0x44d   : > { %v5454_v56 = vadd.f32 %v5453_v47, %v5063_v49  ;;  %9711 = vst [vmem:[#allocation46_spill] sm:$0xff] %v8791_v9  ;;  %v6341_v47 = vor.u32 %v7728_v30, %v6338_v16  ;;  %v6328_v49 = vld [vmem:[%s8066_s24 + $0x430] sm:$0xf]  ;;  %3692 = vmatmul.bf16.gmra.mxu2 %v6937_v46  ;;  %v6346_v46 = vld [vmem:[%s8066_s24 + $0x458] sm:$0xf0] }
 0x44e   : > { %v4264_v38 = vpop.f32.mrf.mxu1  ;;  %v7729_v9 = vld [vmem:[%s8066_s24 + $0x444] sm:$0xf0] }
 0x44f   : > { %7537 = vmatmul.msk.bf16.gmra.mxu3 %vm2373_vm2, %v6941_v51  ;;  %v7880_v51 = vld [vmem:[%s8066_s24 + $0x904] sm:$0xf] }
 0x450   : > { %v3270_v18 = vpop.f32.mrf.mxu0  ;;  %v3653_v35 = vpop.f32.mrf.mxu2 }
 0x451   : > { %v4260_v42 = vadd.f32 %v4259_v15, %v3270_v18  ;;  %v6329_v15 = vor.u32 %v7727_v0, %v6328_v49  ;;  %v7881_v49 = vld [vmem:[%s8066_s24 + $0x904] sm:$0xf0] }
 0x452   : > { %v4642_v30 = vpop.f32.mrf.mxu3 }
 0x453   : > { %v5064_v48 = vmax.f32 %v4260_v42, 0.0  ;;  %v8801_v24 = vadd.f32 %v4642_v30, %v3653_v35 }
 0x455   : > { %v5455_v7 = vadd.f32 %v5454_v56, %v5064_v48  ;;  %9712 = vst [vmem:[#allocation47_spill] sm:$0xff] %v8801_v24  ;;  %v7730_v48 = vld [vmem:[%s8066_s24 + $0x454] sm:$0xf] }
 0x456   : > { %v4267_v59 = vpop.f32.mrf.mxu1 }
 0x458   : > { %v3273_v18 = vpop.f32.mrf.mxu0  ;;  %v3655_v0 = vpop.f32.mrf.mxu2 }
 0x459   : > { %7462 = vmatmul.msk.bf16.gmra.mxu1 %vm2373_vm2, %v6341_v47  ;;  %v4263_v42 = vadd.f32 %v4262_v52, %v3273_v18  ;;  %v6944_v52 = vld [vmem:[%s8066_s24 + $0x900] sm:$0xf] }
 0x45a   : > { %v4644_v8 = vpop.f32.mrf.mxu3 }
 0x45b   : > { %v5065_v16 = vmax.f32 %v4263_v42, 0.0  ;;  %3312 = vmatmul.bf16.gmra.mxu0 %v6329_v15  ;;  %v8805_v47 = vadd.f32 %v4644_v8, %v3655_v0  ;;  %v6945_v15 = vor.u32 %v7881_v49, %v6944_v52  ;;  %v6946_v42 = vld [vmem:[%s8066_s24 + $0x908] sm:$0xf0] }
 0x45c   : > { %v6949_v35 = vor.u32 %v7880_v51, %v6946_v42 }
 0x45d   : > { %v5456_v56 = vadd.f32 %v5455_v7, %v5065_v16  ;;  %9713 = vst [vmem:[#allocation48_spill] sm:$0xff] %v8805_v47  ;;  %v6349_v7 = vor.u32 %v7730_v48, %v6346_v46  ;;  %v6336_v16 = vld [vmem:[%s8066_s24 + $0x440] sm:$0xf]  ;;  %3697 = vmatmul.bf16.gmra.mxu2 %v6945_v15  ;;  %v6354_v15 = vld [vmem:[%s8066_s24 + $0x468] sm:$0xf0] }
 0x45e   : > { %v4269_v58 = vpop.f32.mrf.mxu1  ;;  %v7731_v47 = vld [vmem:[%s8066_s24 + $0x454] sm:$0xf0] }
 0x45f   : > { %7538 = vmatmul.msk.bf16.gmra.mxu3 %vm2373_vm2, %v6949_v35  ;;  %v7882_v35 = vld [vmem:[%s8066_s24 + $0x914] sm:$0xf] }
 0x460   : > { %v3275_v36 = vpop.f32.mrf.mxu0  ;;  %v3658_v0 = vpop.f32.mrf.mxu2 }
 0x461   : > { %v4265_v39 = vadd.f32 %v4264_v38, %v3275_v36  ;;  %v6337_v38 = vor.u32 %v7729_v9, %v6336_v16  ;;  %v7883_v16 = vld [vmem:[%s8066_s24 + $0x914] sm:$0xf0] }
 0x462   : > { %v4647_v48 = vpop.f32.mrf.mxu3 }
 0x463   : > { %v5066_v18 = vmax.f32 %v4265_v39, 0.0  ;;  %v8815_v52 = vadd.f32 %v4647_v48, %v3658_v0 }
 0x465   : > { %v5457_v30 = vadd.f32 %v5456_v56, %v5066_v18  ;;  %9714 = vst [vmem:[#allocation49_spill] sm:$0xff] %v8815_v52  ;;  %v7732_v18 = vld [vmem:[%s8066_s24 + $0x464] sm:$0xf] }
 0x466   : > { %v4272_v24 = vpop.f32.mrf.mxu1 }
 0x468   : > { %v3278_v36 = vpop.f32.mrf.mxu0  ;;  %v3660_v9 = vpop.f32.mrf.mxu2 }
 0x469   : > { %7463 = vmatmul.msk.bf16.gmra.mxu1 %vm2373_vm2, %v6349_v7  ;;  %v4268_v39 = vadd.f32 %v4267_v59, %v3278_v36  ;;  %v6952_v59 = vld [vmem:[%s8066_s24 + $0x910] sm:$0xf] }
 0x46a   : > { %v4649_v42 = vpop.f32.mrf.mxu3 }
 0x46b   : > { %v5067_v46 = vmax.f32 %v4268_v39, 0.0  ;;  %3317 = vmatmul.bf16.gmra.mxu0 %v6337_v38  ;;  %v8819_v7 = vadd.f32 %v4649_v42, %v3660_v9  ;;  %v6953_v38 = vor.u32 %v7883_v16, %v6952_v59  ;;  %v6954_v39 = vld [vmem:[%s8066_s24 + $0x918] sm:$0xf0] }
 0x46c   : > { %v6957_v0 = vor.u32 %v7882_v35, %v6954_v39 }
 0x46d   : > { %v5458_v56 = vadd.f32 %v5457_v30, %v5067_v46  ;;  %9715 = vst [vmem:[#allocation50_spill] sm:$0xff] %v8819_v7  ;;  %v6357_v30 = vor.u32 %v7732_v18, %v6354_v15  ;;  %v6344_v46 = vld [vmem:[%s8066_s24 + $0x450] sm:$0xf]  ;;  %3702 = vmatmul.bf16.gmra.mxu2 %v6953_v38  ;;  %v6362_v38 = vld [vmem:[%s8066_s24 + $0x478] sm:$0xf0] }
 0x46e   : > { %v4274_v8 = vpop.f32.mrf.mxu1  ;;  %v7733_v7 = vld [vmem:[%s8066_s24 + $0x464] sm:$0xf0] }
 0x46f   : > { %7539 = vmatmul.msk.bf16.gmra.mxu3 %vm2373_vm2, %v6957_v0  ;;  %v7884_v0 = vld [vmem:[%s8066_s24 + $0x924] sm:$0xf] }
 0x470   : > { %v3280_v49 = vpop.f32.mrf.mxu0  ;;  %v3663_v9 = vpop.f32.mrf.mxu2 }
 0x471   : > { %v4270_v51 = vadd.f32 %v4269_v58, %v3280_v49  ;;  %v6345_v58 = vor.u32 %v7731_v47, %v6344_v46  ;;  %v7885_v46 = vld [vmem:[%s8066_s24 + $0x924] sm:$0xf0] }
 0x472   : > { %v4652_v18 = vpop.f32.mrf.mxu3 }
 0x473   : > { %v5068_v36 = vmax.f32 %v4270_v51, 0.0  ;;  %v8829_v59 = vadd.f32 %v4652_v18, %v3663_v9 }
 0x475   : > { %v5459_v48 = vadd.f32 %v5458_v56, %v5068_v36  ;;  %9716 = vst [vmem:[#allocation51_spill] sm:$0xff] %v8829_v59  ;;  %v7734_v36 = vld [vmem:[%s8066_s24 + $0x474] sm:$0xf] }
 0x476   : > { %v4277_v52 = vpop.f32.mrf.mxu1 }
 0x478   : > { %v3283_v49 = vpop.f32.mrf.mxu0  ;;  %v3665_v47 = vpop.f32.mrf.mxu2 }
 0x479   : > { %7464 = vmatmul.msk.bf16.gmra.mxu1 %vm2373_vm2, %v6357_v30  ;;  %v4273_v51 = vadd.f32 %v4272_v24, %v3283_v49  ;;  %v6960_v24 = vld [vmem:[%s8066_s24 + $0x920] sm:$0xf] }
 0x47a   : > { %v4654_v39 = vpop.f32.mrf.mxu3 }
 0x47b   : > { %v5069_v15 = vmax.f32 %v4273_v51, 0.0  ;;  %3322 = vmatmul.bf16.gmra.mxu0 %v6345_v58  ;;  %v8833_v30 = vadd.f32 %v4654_v39, %v3665_v47  ;;  %v6961_v58 = vor.u32 %v7885_v46, %v6960_v24  ;;  %v6962_v51 = vld [vmem:[%s8066_s24 + $0x928] sm:$0xf0] }
 0x47c   : > { %v6965_v9 = vor.u32 %v7884_v0, %v6962_v51 }
 0x47d   : > { %v5460_v56 = vadd.f32 %v5459_v48, %v5069_v15  ;;  %9717 = vst [vmem:[#allocation52_spill] sm:$0xff] %v8833_v30  ;;  %v6365_v48 = vor.u32 %v7734_v36, %v6362_v38  ;;  %v6352_v15 = vld [vmem:[%s8066_s24 + $0x460] sm:$0xf]  ;;  %3707 = vmatmul.bf16.gmra.mxu2 %v6961_v58  ;;  %v6370_v58 = vld [vmem:[%s8066_s24 + $0x488] sm:$0xf0] }
 0x47e   : > { %v4279_v42 = vpop.f32.mrf.mxu1  ;;  %v7735_v30 = vld [vmem:[%s8066_s24 + $0x474] sm:$0xf0] }
 0x47f   : > { %7540 = vmatmul.msk.bf16.gmra.mxu3 %vm2373_vm2, %v6965_v9  ;;  %v7886_v9 = vld [vmem:[%s8066_s24 + $0x934] sm:$0xf] }
 0x480   : > { %v3285_v16 = vpop.f32.mrf.mxu0  ;;  %v3668_v47 = vpop.f32.mrf.mxu2 }
 0x481   : > { %v4275_v35 = vadd.f32 %v4274_v8, %v3285_v16  ;;  %v6353_v8 = vor.u32 %v7733_v7, %v6352_v15  ;;  %v7887_v15 = vld [vmem:[%s8066_s24 + $0x934] sm:$0xf0] }
 0x482   : > { %v4657_v36 = vpop.f32.mrf.mxu3 }
 0x483   : > { %v5070_v49 = vmax.f32 %v4275_v35, 0.0  ;;  %v8843_v24 = vadd.f32 %v4657_v36, %v3668_v47 }
 0x485   : > { %v5461_v18 = vadd.f32 %v5460_v56, %v5070_v49  ;;  %9718 = vst [vmem:[#allocation53_spill] sm:$0xff] %v8843_v24  ;;  %v7736_v49 = vld [vmem:[%s8066_s24 + $0x484] sm:$0xf] }
 0x486   : > { %v4282_v59 = vpop.f32.mrf.mxu1 }
 0x488   : > { %v3288_v16 = vpop.f32.mrf.mxu0  ;;  %v3670_v7 = vpop.f32.mrf.mxu2 }
 0x489   : > { %7465 = vmatmul.msk.bf16.gmra.mxu1 %vm2373_vm2, %v6365_v48  ;;  %v4278_v35 = vadd.f32 %v4277_v52, %v3288_v16  ;;  %v6968_v52 = vld [vmem:[%s8066_s24 + $0x930] sm:$0xf] }
 0x48a   : > { %v4659_v51 = vpop.f32.mrf.mxu3 }
 0x48b   : > { %v5071_v38 = vmax.f32 %v4278_v35, 0.0  ;;  %3327 = vmatmul.bf16.gmra.mxu0 %v6353_v8  ;;  %v8847_v48 = vadd.f32 %v4659_v51, %v3670_v7  ;;  %v6969_v8 = vor.u32 %v7887_v15, %v6968_v52  ;;  %v6970_v35 = vld [vmem:[%s8066_s24 + $0x938] sm:$0xf0] }
 0x48c   : > { %v6973_v47 = vor.u32 %v7886_v9, %v6970_v35 }
 0x48d   : > { %v5462_v56 = vadd.f32 %v5461_v18, %v5071_v38  ;;  %9719 = vst [vmem:[#allocation54_spill] sm:$0xff] %v8847_v48  ;;  %v6373_v18 = vor.u32 %v7736_v49, %v6370_v58  ;;  %v6360_v38 = vld [vmem:[%s8066_s24 + $0x470] sm:$0xf]  ;;  %3712 = vmatmul.bf16.gmra.mxu2 %v6969_v8  ;;  %v6378_v8 = vld [vmem:[%s8066_s24 + $0x498] sm:$0xf0] }
 0x48e   : > { %v4284_v39 = vpop.f32.mrf.mxu1  ;;  %v7737_v48 = vld [vmem:[%s8066_s24 + $0x484] sm:$0xf0] }
 0x48f   : > { %7541 = vmatmul.msk.bf16.gmra.mxu3 %vm2373_vm2, %v6973_v47  ;;  %v7888_v47 = vld [vmem:[%s8066_s24 + $0x944] sm:$0xf] }
 0x490   : > { %v3290_v46 = vpop.f32.mrf.mxu0  ;;  %v3673_v7 = vpop.f32.mrf.mxu2 }
 0x491   : > { %v4280_v0 = vadd.f32 %v4279_v42, %v3290_v46  ;;  %v6361_v42 = vor.u32 %v7735_v30, %v6360_v38  ;;  %v7889_v38 = vld [vmem:[%s8066_s24 + $0x944] sm:$0xf0] }
 0x492   : > { %v4662_v49 = vpop.f32.mrf.mxu3 }
 0x493   : > { %v5072_v16 = vmax.f32 %v4280_v0, 0.0  ;;  %v8857_v52 = vadd.f32 %v4662_v49, %v3673_v7 }
 0x495   : > { %v5463_v36 = vadd.f32 %v5462_v56, %v5072_v16  ;;  %9720 = vst [vmem:[#allocation55_spill] sm:$0xff] %v8857_v52  ;;  %v7738_v16 = vld [vmem:[%s8066_s24 + $0x494] sm:$0xf] }
 0x496   : > { %v4287_v24 = vpop.f32.mrf.mxu1 }
 0x498   : > { %v3293_v46 = vpop.f32.mrf.mxu0  ;;  %v3675_v30 = vpop.f32.mrf.mxu2 }
 0x499   : > { %7466 = vmatmul.msk.bf16.gmra.mxu1 %vm2373_vm2, %v6373_v18  ;;  %v4283_v0 = vadd.f32 %v4282_v59, %v3293_v46  ;;  %v6976_v59 = vld [vmem:[%s8066_s24 + $0x940] sm:$0xf] }
 0x49a   : > { %v4664_v35 = vpop.f32.mrf.mxu3 }
 0x49b   : > { %v5073_v58 = vmax.f32 %v4283_v0, 0.0  ;;  %3332 = vmatmul.bf16.gmra.mxu0 %v6361_v42  ;;  %v8861_v18 = vadd.f32 %v4664_v35, %v3675_v30  ;;  %v6977_v42 = vor.u32 %v7889_v38, %v6976_v59  ;;  %v6978_v0 = vld [vmem:[%s8066_s24 + $0x948] sm:$0xf0] }
 0x49c   : > { %v6981_v7 = vor.u32 %v7888_v47, %v6978_v0 }
 0x49d   : > { %v5464_v56 = vadd.f32 %v5463_v36, %v5073_v58  ;;  %9721 = vst [vmem:[#allocation56_spill] sm:$0xff] %v8861_v18  ;;  %v6381_v36 = vor.u32 %v7738_v16, %v6378_v8  ;;  %v6368_v58 = vld [vmem:[%s8066_s24 + $0x480] sm:$0xf]  ;;  %3717 = vmatmul.bf16.gmra.mxu2 %v6977_v42  ;;  %v6386_v42 = vld [vmem:[%s8066_s24 + $0x4a8] sm:$0xf0] }
 0x49e   : > { %v4289_v51 = vpop.f32.mrf.mxu1  ;;  %v7739_v18 = vld [vmem:[%s8066_s24 + $0x494] sm:$0xf0] }
 0x49f   : > { %7542 = vmatmul.msk.bf16.gmra.mxu3 %vm2373_vm2, %v6981_v7  ;;  %v7890_v7 = vld [vmem:[%s8066_s24 + $0x954] sm:$0xf] }
 0x4a0   : > { %v3295_v15 = vpop.f32.mrf.mxu0  ;;  %v3678_v30 = vpop.f32.mrf.mxu2 }
 0x4a1   : > { %v4285_v9 = vadd.f32 %v4284_v39, %v3295_v15  ;;  %v6369_v39 = vor.u32 %v7737_v48, %v6368_v58  ;;  %v7891_v58 = vld [vmem:[%s8066_s24 + $0x954] sm:$0xf0] }
 0x4a2   : > { %v4667_v16 = vpop.f32.mrf.mxu3 }
 0x4a3   : > { %v5074_v46 = vmax.f32 %v4285_v9, 0.0  ;;  %v8871_v59 = vadd.f32 %v4667_v16, %v3678_v30 }
 0x4a5   : > { %v5465_v49 = vadd.f32 %v5464_v56, %v5074_v46  ;;  %9722 = vst [vmem:[#allocation57_spill] sm:$0xff] %v8871_v59  ;;  %v7740_v46 = vld [vmem:[%s8066_s24 + $0x4a4] sm:$0xf] }
 0x4a6   : > { %v4292_v52 = vpop.f32.mrf.mxu1 }
 0x4a8   : > { %v3298_v15 = vpop.f32.mrf.mxu0  ;;  %v3680_v48 = vpop.f32.mrf.mxu2 }
 0x4a9   : > { %7467 = vmatmul.msk.bf16.gmra.mxu1 %vm2373_vm2, %v6381_v36  ;;  %v4288_v9 = vadd.f32 %v4287_v24, %v3298_v15  ;;  %v6984_v24 = vld [vmem:[%s8066_s24 + $0x950] sm:$0xf] }
 0x4aa   : > { %v4669_v0 = vpop.f32.mrf.mxu3 }
 0x4ab   : > { %v5075_v8 = vmax.f32 %v4288_v9, 0.0  ;;  %3337 = vmatmul.bf16.gmra.mxu0 %v6369_v39  ;;  %v8875_v36 = vadd.f32 %v4669_v0, %v3680_v48  ;;  %v6985_v39 = vor.u32 %v7891_v58, %v6984_v24  ;;  %v6986_v9 = vld [vmem:[%s8066_s24 + $0x958] sm:$0xf0] }
 0x4ac   : > { %v6989_v30 = vor.u32 %v7890_v7, %v6986_v9 }
 0x4ad   : > { %v5466_v56 = vadd.f32 %v5465_v49, %v5075_v8  ;;  %9723 = vst [vmem:[#allocation58_spill] sm:$0xff] %v8875_v36  ;;  %v6389_v49 = vor.u32 %v7740_v46, %v6386_v42  ;;  %v6376_v8 = vld [vmem:[%s8066_s24 + $0x490] sm:$0xf]  ;;  %3722 = vmatmul.bf16.gmra.mxu2 %v6985_v39  ;;  %v6394_v39 = vld [vmem:[%s8066_s24 + $0x4b8] sm:$0xf0] }
 0x4ae   : > { %v4294_v35 = vpop.f32.mrf.mxu1  ;;  %v7741_v36 = vld [vmem:[%s8066_s24 + $0x4a4] sm:$0xf0] }
 0x4af   : > { %7543 = vmatmul.msk.bf16.gmra.mxu3 %vm2373_vm2, %v6989_v30  ;;  %v7892_v30 = vld [vmem:[%s8066_s24 + $0x964] sm:$0xf] }
 0x4b0   : > { %v3300_v38 = vpop.f32.mrf.mxu0  ;;  %v3683_v48 = vpop.f32.mrf.mxu2 }
 0x4b1   : > { %v4290_v47 = vadd.f32 %v4289_v51, %v3300_v38  ;;  %v6377_v51 = vor.u32 %v7739_v18, %v6376_v8  ;;  %v7893_v8 = vld [vmem:[%s8066_s24 + $0x964] sm:$0xf0] }
 0x4b2   : > { %v4672_v46 = vpop.f32.mrf.mxu3 }
 0x4b3   : > { %v5076_v15 = vmax.f32 %v4290_v47, 0.0  ;;  %v8885_v24 = vadd.f32 %v4672_v46, %v3683_v48 }
 0x4b5   : > { %v5467_v16 = vadd.f32 %v5466_v56, %v5076_v15  ;;  %9724 = vst [vmem:[#allocation59_spill] sm:$0xff] %v8885_v24  ;;  %v7742_v15 = vld [vmem:[%s8066_s24 + $0x4b4] sm:$0xf] }
 0x4b6   : > { %v4297_v59 = vpop.f32.mrf.mxu1 }
 0x4b8   : > { %v3303_v38 = vpop.f32.mrf.mxu0  ;;  %v3685_v18 = vpop.f32.mrf.mxu2 }
 0x4b9   : > { %7468 = vmatmul.msk.bf16.gmra.mxu1 %vm2373_vm2, %v6389_v49  ;;  %v4293_v47 = vadd.f32 %v4292_v52, %v3303_v38  ;;  %v6992_v52 = vld [vmem:[%s8066_s24 + $0x960] sm:$0xf] }
 0x4ba   : > { %v4674_v9 = vpop.f32.mrf.mxu3 }
 0x4bb   : > { %v5077_v42 = vmax.f32 %v4293_v47, 0.0  ;;  %3342 = vmatmul.bf16.gmra.mxu0 %v6377_v51  ;;  %v8889_v49 = vadd.f32 %v4674_v9, %v3685_v18  ;;  %v6993_v51 = vor.u32 %v7893_v8, %v6992_v52  ;;  %v6994_v47 = vld [vmem:[%s8066_s24 + $0x968] sm:$0xf0] }
 0x4bc   : > { %v6997_v48 = vor.u32 %v7892_v30, %v6994_v47 }
 0x4bd   : > { %v5468_v56 = vadd.f32 %v5467_v16, %v5077_v42  ;;  %9725 = vst [vmem:[#allocation60_spill] sm:$0xff] %v8889_v49  ;;  %v6397_v16 = vor.u32 %v7742_v15, %v6394_v39  ;;  %v6384_v42 = vld [vmem:[%s8066_s24 + $0x4a0] sm:$0xf]  ;;  %3727 = vmatmul.bf16.gmra.mxu2 %v6993_v51  ;;  %v6402_v51 = vld [vmem:[%s8066_s24 + $0x4c8] sm:$0xf0] }
 0x4be   : > { %v4299_v0 = vpop.f32.mrf.mxu1  ;;  %v7743_v49 = vld [vmem:[%s8066_s24 + $0x4b4] sm:$0xf0] }
 0x4bf   : > { %7544 = vmatmul.msk.bf16.gmra.mxu3 %vm2373_vm2, %v6997_v48  ;;  %v7894_v48 = vld [vmem:[%s8066_s24 + $0x974] sm:$0xf] }
 0x4c0   : > { %v3305_v58 = vpop.f32.mrf.mxu0  ;;  %v3688_v18 = vpop.f32.mrf.mxu2 }
 0x4c1   : > { %v4295_v7 = vadd.f32 %v4294_v35, %v3305_v58  ;;  %v6385_v35 = vor.u32 %v7741_v36, %v6384_v42  ;;  %v7895_v42 = vld [vmem:[%s8066_s24 + $0x974] sm:$0xf0] }
 0x4c2   : > { %v4677_v15 = vpop.f32.mrf.mxu3 }
 0x4c3   : > { %v5078_v38 = vmax.f32 %v4295_v7, 0.0  ;;  %v8899_v52 = vadd.f32 %v4677_v15, %v3688_v18 }
 0x4c5   : > { %v5469_v46 = vadd.f32 %v5468_v56, %v5078_v38  ;;  %9726 = vst [vmem:[#allocation61_spill] sm:$0xff] %v8899_v52  ;;  %v7744_v38 = vld [vmem:[%s8066_s24 + $0x4c4] sm:$0xf] }
 0x4c6   : > { %v4302_v24 = vpop.f32.mrf.mxu1 }
 0x4c8   : > { %v3308_v58 = vpop.f32.mrf.mxu0  ;;  %v3690_v36 = vpop.f32.mrf.mxu2 }
 0x4c9   : > { %7469 = vmatmul.msk.bf16.gmra.mxu1 %vm2373_vm2, %v6397_v16  ;;  %v4298_v7 = vadd.f32 %v4297_v59, %v3308_v58  ;;  %v7000_v59 = vld [vmem:[%s8066_s24 + $0x970] sm:$0xf] }
 0x4ca   : > { %v4679_v47 = vpop.f32.mrf.mxu3 }
 0x4cb   : > { %v5079_v39 = vmax.f32 %v4298_v7, 0.0  ;;  %3347 = vmatmul.bf16.gmra.mxu0 %v6385_v35  ;;  %v8903_v16 = vadd.f32 %v4679_v47, %v3690_v36  ;;  %v7001_v35 = vor.u32 %v7895_v42, %v7000_v59  ;;  %v7002_v7 = vld [vmem:[%s8066_s24 + $0x978] sm:$0xf0] }
 0x4cc   : > { %v7005_v18 = vor.u32 %v7894_v48, %v7002_v7 }
 0x4cd   : > { %v5470_v56 = vadd.f32 %v5469_v46, %v5079_v39  ;;  %9727 = vst [vmem:[#allocation62_spill] sm:$0xff] %v8903_v16  ;;  %v6405_v46 = vor.u32 %v7744_v38, %v6402_v51  ;;  %v6392_v39 = vld [vmem:[%s8066_s24 + $0x4b0] sm:$0xf]  ;;  %3732 = vmatmul.bf16.gmra.mxu2 %v7001_v35  ;;  %v6410_v35 = vld [vmem:[%s8066_s24 + $0x4d8] sm:$0xf0] }
 0x4ce   : > { %v4304_v9 = vpop.f32.mrf.mxu1  ;;  %v7745_v16 = vld [vmem:[%s8066_s24 + $0x4c4] sm:$0xf0] }
 0x4cf   : > { %7545 = vmatmul.msk.bf16.gmra.mxu3 %vm2373_vm2, %v7005_v18  ;;  %v7896_v18 = vld [vmem:[%s8066_s24 + $0x984] sm:$0xf] }
 0x4d0   : > { %v3310_v8 = vpop.f32.mrf.mxu0  ;;  %v3693_v36 = vpop.f32.mrf.mxu2 }
 0x4d1   : > { %v4300_v30 = vadd.f32 %v4299_v0, %v3310_v8  ;;  %v6393_v0 = vor.u32 %v7743_v49, %v6392_v39  ;;  %v7897_v39 = vld [vmem:[%s8066_s24 + $0x984] sm:$0xf0] }
 0x4d2   : > { %v4682_v38 = vpop.f32.mrf.mxu3 }
 0x4d3   : > { %v5080_v58 = vmax.f32 %v4300_v30, 0.0  ;;  %v8913_v59 = vadd.f32 %v4682_v38, %v3693_v36 }
 0x4d5   : > { %v5471_v15 = vadd.f32 %v5470_v56, %v5080_v58  ;;  %9728 = vst [vmem:[#allocation63_spill] sm:$0xff] %v8913_v59  ;;  %v7746_v58 = vld [vmem:[%s8066_s24 + $0x4d4] sm:$0xf] }
 0x4d6   : > { %v4307_v52 = vpop.f32.mrf.mxu1 }
 0x4d8   : > { %v3313_v8 = vpop.f32.mrf.mxu0  ;;  %v3695_v49 = vpop.f32.mrf.mxu2 }
 0x4d9   : > { %7470 = vmatmul.msk.bf16.gmra.mxu1 %vm2373_vm2, %v6405_v46  ;;  %v4303_v30 = vadd.f32 %v4302_v24, %v3313_v8  ;;  %v7008_v24 = vld [vmem:[%s8066_s24 + $0x980] sm:$0xf] }
 0x4da   : > { %v4684_v7 = vpop.f32.mrf.mxu3 }
 0x4db   : > { %v5081_v51 = vmax.f32 %v4303_v30, 0.0  ;;  %3352 = vmatmul.bf16.gmra.mxu0 %v6393_v0  ;;  %v8917_v46 = vadd.f32 %v4684_v7, %v3695_v49  ;;  %v7009_v0 = vor.u32 %v7897_v39, %v7008_v24  ;;  %v7010_v30 = vld [vmem:[%s8066_s24 + $0x988] sm:$0xf0] }
 0x4dc   : > { %v7013_v36 = vor.u32 %v7896_v18, %v7010_v30 }
 0x4dd   : > { %v5472_v56 = vadd.f32 %v5471_v15, %v5081_v51  ;;  %9729 = vst [vmem:[#allocation64_spill] sm:$0xff] %v8917_v46  ;;  %v6413_v15 = vor.u32 %v7746_v58, %v6410_v35  ;;  %v6400_v51 = vld [vmem:[%s8066_s24 + $0x4c0] sm:$0xf]  ;;  %3737 = vmatmul.bf16.gmra.mxu2 %v7009_v0  ;;  %v6418_v0 = vld [vmem:[%s8066_s24 + $0x4e8] sm:$0xf0] }
 0x4de   : > { %v4309_v47 = vpop.f32.mrf.mxu1  ;;  %v7747_v46 = vld [vmem:[%s8066_s24 + $0x4d4] sm:$0xf0] }
 0x4df   : > { %7546 = vmatmul.msk.bf16.gmra.mxu3 %vm2373_vm2, %v7013_v36  ;;  %v7898_v36 = vld [vmem:[%s8066_s24 + $0x994] sm:$0xf] }
 0x4e0   : > { %v3315_v42 = vpop.f32.mrf.mxu0  ;;  %v3698_v49 = vpop.f32.mrf.mxu2 }
 0x4e1   : > { %v4305_v48 = vadd.f32 %v4304_v9, %v3315_v42  ;;  %v6401_v9 = vor.u32 %v7745_v16, %v6400_v51  ;;  %v7899_v51 = vld [vmem:[%s8066_s24 + $0x994] sm:$0xf0] }
 0x4e2   : > { %v4687_v58 = vpop.f32.mrf.mxu3 }
 0x4e3   : > { %v5082_v8 = vmax.f32 %v4305_v48, 0.0  ;;  %v8927_v24 = vadd.f32 %v4687_v58, %v3698_v49 }
 0x4e5   : > { %v5473_v38 = vadd.f32 %v5472_v56, %v5082_v8  ;;  %9730 = vst [vmem:[#allocation65_spill] sm:$0xff] %v8927_v24  ;;  %v7748_v8 = vld [vmem:[%s8066_s24 + $0x4e4] sm:$0xf] }
 0x4e6   : > { %v4312_v59 = vpop.f32.mrf.mxu1 }
 0x4e8   : > { %v3318_v42 = vpop.f32.mrf.mxu0  ;;  %v3700_v16 = vpop.f32.mrf.mxu2 }
 0x4e9   : > { %7471 = vmatmul.msk.bf16.gmra.mxu1 %vm2373_vm2, %v6413_v15  ;;  %v4308_v48 = vadd.f32 %v4307_v52, %v3318_v42  ;;  %v7016_v52 = vld [vmem:[%s8066_s24 + $0x990] sm:$0xf] }
 0x4ea   : > { %v4689_v30 = vpop.f32.mrf.mxu3 }
 0x4eb   : > { %v5083_v35 = vmax.f32 %v4308_v48, 0.0  ;;  %3357 = vmatmul.bf16.gmra.mxu0 %v6401_v9  ;;  %v8931_v15 = vadd.f32 %v4689_v30, %v3700_v16  ;;  %v7017_v9 = vor.u32 %v7899_v51, %v7016_v52  ;;  %v7018_v48 = vld [vmem:[%s8066_s24 + $0x998] sm:$0xf0] }
 0x4ec   : > { %v7021_v49 = vor.u32 %v7898_v36, %v7018_v48 }
 0x4ed   : > { %v5474_v56 = vadd.f32 %v5473_v38, %v5083_v35  ;;  %9731 = vst [vmem:[#allocation66_spill] sm:$0xff] %v8931_v15  ;;  %v6421_v38 = vor.u32 %v7748_v8, %v6418_v0  ;;  %v6408_v35 = vld [vmem:[%s8066_s24 + $0x4d0] sm:$0xf]  ;;  %3742 = vmatmul.bf16.gmra.mxu2 %v7017_v9  ;;  %v6426_v9 = vld [vmem:[%s8066_s24 + $0x4f8] sm:$0xf0] }
 0x4ee   : > { %v4314_v7 = vpop.f32.mrf.mxu1  ;;  %v7749_v15 = vld [vmem:[%s8066_s24 + $0x4e4] sm:$0xf0] }
 0x4ef   : > { %7547 = vmatmul.msk.bf16.gmra.mxu3 %vm2373_vm2, %v7021_v49  ;;  %v7900_v49 = vld [vmem:[%s8066_s24 + $0x9a4] sm:$0xf] }
 0x4f0   : > { %v3320_v39 = vpop.f32.mrf.mxu0  ;;  %v3703_v16 = vpop.f32.mrf.mxu2 }
 0x4f1   : > { %v4310_v18 = vadd.f32 %v4309_v47, %v3320_v39  ;;  %v6409_v47 = vor.u32 %v7747_v46, %v6408_v35  ;;  %v7901_v35 = vld [vmem:[%s8066_s24 + $0x9a4] sm:$0xf0] }
 0x4f2   : > { %v4692_v8 = vpop.f32.mrf.mxu3 }
 0x4f3   : > { %v5084_v42 = vmax.f32 %v4310_v18, 0.0  ;;  %v8941_v52 = vadd.f32 %v4692_v8, %v3703_v16 }
 0x4f5   : > { %v5475_v58 = vadd.f32 %v5474_v56, %v5084_v42  ;;  %9732 = vst [vmem:[#allocation67_spill] sm:$0xff] %v8941_v52  ;;  %v7750_v42 = vld [vmem:[%s8066_s24 + $0x4f4] sm:$0xf] }
 0x4f6   : > { %v4317_v24 = vpop.f32.mrf.mxu1 }
 0x4f8   : > { %v3323_v39 = vpop.f32.mrf.mxu0  ;;  %v3705_v46 = vpop.f32.mrf.mxu2 }
 0x4f9   : > { %7472 = vmatmul.msk.bf16.gmra.mxu1 %vm2373_vm2, %v6421_v38  ;;  %v4313_v18 = vadd.f32 %v4312_v59, %v3323_v39  ;;  %v7024_v59 = vld [vmem:[%s8066_s24 + $0x9a0] sm:$0xf] }
 0x4fa   : > { %v4694_v48 = vpop.f32.mrf.mxu3 }
 0x4fb   : > { %v5085_v0 = vmax.f32 %v4313_v18, 0.0  ;;  %3362 = vmatmul.bf16.gmra.mxu0 %v6409_v47  ;;  %v8945_v38 = vadd.f32 %v4694_v48, %v3705_v46  ;;  %v7025_v47 = vor.u32 %v7901_v35, %v7024_v59  ;;  %v7026_v18 = vld [vmem:[%s8066_s24 + $0x9a8] sm:$0xf0] }
 0x4fc   : > { %v7029_v16 = vor.u32 %v7900_v49, %v7026_v18 }
 0x4fd   : > { %v5476_v56 = vadd.f32 %v5475_v58, %v5085_v0  ;;  %9733 = vst [vmem:[#allocation68_spill] sm:$0xff] %v8945_v38  ;;  %v6429_v58 = vor.u32 %v7750_v42, %v6426_v9  ;;  %v6416_v0 = vld [vmem:[%s8066_s24 + $0x4e0] sm:$0xf]  ;;  %3747 = vmatmul.bf16.gmra.mxu2 %v7025_v47  ;;  %v6434_v47 = vld [vmem:[%s8066_s24 + $0x508] sm:$0xf0] }
 0x4fe   : > { %v4319_v30 = vpop.f32.mrf.mxu1  ;;  %v7751_v38 = vld [vmem:[%s8066_s24 + $0x4f4] sm:$0xf0] }
 0x4ff   : > { %7548 = vmatmul.msk.bf16.gmra.mxu3 %vm2373_vm2, %v7029_v16  ;;  %v7902_v16 = vld [vmem:[%s8066_s24 + $0x9b4] sm:$0xf] }
 0x500   : > { %v3325_v51 = vpop.f32.mrf.mxu0  ;;  %v3708_v46 = vpop.f32.mrf.mxu2 }
 0x501   : > { %v4315_v36 = vadd.f32 %v4314_v7, %v3325_v51  ;;  %v6417_v7 = vor.u32 %v7749_v15, %v6416_v0  ;;  %v7903_v0 = vld [vmem:[%s8066_s24 + $0x9b4] sm:$0xf0] }
 0x502   : > { %v4697_v42 = vpop.f32.mrf.mxu3 }
 0x503   : > { %v5086_v39 = vmax.f32 %v4315_v36, 0.0  ;;  %v8955_v59 = vadd.f32 %v4697_v42, %v3708_v46 }
 0x505   : > { %v5477_v8 = vadd.f32 %v5476_v56, %v5086_v39  ;;  %9734 = vst [vmem:[#allocation69_spill] sm:$0xff] %v8955_v59  ;;  %v7752_v39 = vld [vmem:[%s8066_s24 + $0x504] sm:$0xf] }
 0x506   : > { %v4322_v52 = vpop.f32.mrf.mxu1 }
 0x508   : > { %v3328_v51 = vpop.f32.mrf.mxu0  ;;  %v3710_v15 = vpop.f32.mrf.mxu2 }
 0x509   : > { %7473 = vmatmul.msk.bf16.gmra.mxu1 %vm2373_vm2, %v6429_v58  ;;  %v4318_v36 = vadd.f32 %v4317_v24, %v3328_v51  ;;  %v7032_v24 = vld [vmem:[%s8066_s24 + $0x9b0] sm:$0xf] }
 0x50a   : > { %v4699_v18 = vpop.f32.mrf.mxu3 }
 0x50b   : > { %v5087_v9 = vmax.f32 %v4318_v36, 0.0  ;;  %3367 = vmatmul.bf16.gmra.mxu0 %v6417_v7  ;;  %v8959_v58 = vadd.f32 %v4699_v18, %v3710_v15  ;;  %v7033_v7 = vor.u32 %v7903_v0, %v7032_v24  ;;  %v7034_v36 = vld [vmem:[%s8066_s24 + $0x9b8] sm:$0xf0] }
 0x50c   : > { %v7037_v46 = vor.u32 %v7902_v16, %v7034_v36 }
 0x50d   : > { %v5478_v56 = vadd.f32 %v5477_v8, %v5087_v9  ;;  %9735 = vst [vmem:[#allocation70_spill] sm:$0xff] %v8959_v58  ;;  %v6437_v8 = vor.u32 %v7752_v39, %v6434_v47  ;;  %v6424_v9 = vld [vmem:[%s8066_s24 + $0x4f0] sm:$0xf]  ;;  %3752 = vmatmul.bf16.gmra.mxu2 %v7033_v7  ;;  %v6442_v7 = vld [vmem:[%s8066_s24 + $0x518] sm:$0xf0] }
 0x50e   : > { %v4324_v48 = vpop.f32.mrf.mxu1  ;;  %v7753_v58 = vld [vmem:[%s8066_s24 + $0x504] sm:$0xf0] }
 0x50f   : > { %7549 = vmatmul.msk.bf16.gmra.mxu3 %vm2373_vm2, %v7037_v46  ;;  %v7904_v46 = vld [vmem:[%s8066_s24 + $0x9c4] sm:$0xf] }
 0x510   : > { %v3330_v35 = vpop.f32.mrf.mxu0  ;;  %v3713_v15 = vpop.f32.mrf.mxu2 }
 0x511   : > { %v4320_v49 = vadd.f32 %v4319_v30, %v3330_v35  ;;  %v6425_v30 = vor.u32 %v7751_v38, %v6424_v9  ;;  %v7905_v9 = vld [vmem:[%s8066_s24 + $0x9c4] sm:$0xf0] }
 0x512   : > { %v4702_v39 = vpop.f32.mrf.mxu3 }
 0x513   : > { %v5088_v51 = vmax.f32 %v4320_v49, 0.0  ;;  %v8969_v24 = vadd.f32 %v4702_v39, %v3713_v15 }
 0x515   : > { %v5479_v42 = vadd.f32 %v5478_v56, %v5088_v51  ;;  %9736 = vst [vmem:[#allocation71_spill] sm:$0xff] %v8969_v24  ;;  %v7754_v51 = vld [vmem:[%s8066_s24 + $0x514] sm:$0xf] }
 0x516   : > { %v4327_v59 = vpop.f32.mrf.mxu1 }
 0x518   : > { %v3333_v35 = vpop.f32.mrf.mxu0  ;;  %v3715_v38 = vpop.f32.mrf.mxu2 }
 0x519   : > { %7474 = vmatmul.msk.bf16.gmra.mxu1 %vm2373_vm2, %v6437_v8  ;;  %v4323_v49 = vadd.f32 %v4322_v52, %v3333_v35  ;;  %v7040_v52 = vld [vmem:[%s8066_s24 + $0x9c0] sm:$0xf] }
 0x51a   : > { %v4704_v36 = vpop.f32.mrf.mxu3 }
 0x51b   : > { %v5089_v47 = vmax.f32 %v4323_v49, 0.0  ;;  %3372 = vmatmul.bf16.gmra.mxu0 %v6425_v30  ;;  %v8973_v8 = vadd.f32 %v4704_v36, %v3715_v38  ;;  %v7041_v30 = vor.u32 %v7905_v9, %v7040_v52  ;;  %v7042_v49 = vld [vmem:[%s8066_s24 + $0x9c8] sm:$0xf0] }
 0x51c   : > { %v7045_v15 = vor.u32 %v7904_v46, %v7042_v49 }
 0x51d   : > { %v5480_v56 = vadd.f32 %v5479_v42, %v5089_v47  ;;  %9737 = vst [vmem:[#allocation72_spill] sm:$0xff] %v8973_v8  ;;  %v6445_v42 = vor.u32 %v7754_v51, %v6442_v7  ;;  %v6432_v47 = vld [vmem:[%s8066_s24 + $0x500] sm:$0xf]  ;;  %3757 = vmatmul.bf16.gmra.mxu2 %v7041_v30  ;;  %v6450_v30 = vld [vmem:[%s8066_s24 + $0x528] sm:$0xf0] }
 0x51e   : > { %v4329_v18 = vpop.f32.mrf.mxu1  ;;  %v7755_v8 = vld [vmem:[%s8066_s24 + $0x514] sm:$0xf0] }
 0x51f   : > { %7550 = vmatmul.msk.bf16.gmra.mxu3 %vm2373_vm2, %v7045_v15  ;;  %v7906_v15 = vld [vmem:[%s8066_s24 + $0x9d4] sm:$0xf] }
 0x520   : > { %v3335_v0 = vpop.f32.mrf.mxu0  ;;  %v3718_v38 = vpop.f32.mrf.mxu2 }
 0x521   : > { %v4325_v16 = vadd.f32 %v4324_v48, %v3335_v0  ;;  %v6433_v48 = vor.u32 %v7753_v58, %v6432_v47  ;;  %v7907_v47 = vld [vmem:[%s8066_s24 + $0x9d4] sm:$0xf0] }
 0x522   : > { %v4707_v51 = vpop.f32.mrf.mxu3 }
 0x523   : > { %v5090_v35 = vmax.f32 %v4325_v16, 0.0  ;;  %v8983_v52 = vadd.f32 %v4707_v51, %v3718_v38 }
 0x525   : > { %v5481_v39 = vadd.f32 %v5480_v56, %v5090_v35  ;;  %9738 = vst [vmem:[#allocation73_spill] sm:$0xff] %v8983_v52  ;;  %v7756_v35 = vld [vmem:[%s8066_s24 + $0x524] sm:$0xf] }
 0x526   : > { %v4332_v24 = vpop.f32.mrf.mxu1 }
 0x528   : > { %v3338_v0 = vpop.f32.mrf.mxu0  ;;  %v3720_v58 = vpop.f32.mrf.mxu2 }
 0x529   : > { %7475 = vmatmul.msk.bf16.gmra.mxu1 %vm2373_vm2, %v6445_v42  ;;  %v4328_v16 = vadd.f32 %v4327_v59, %v3338_v0  ;;  %v7048_v59 = vld [vmem:[%s8066_s24 + $0x9d0] sm:$0xf] }
 0x52a   : > { %v4709_v49 = vpop.f32.mrf.mxu3 }
 0x52b   : > { %v5091_v7 = vmax.f32 %v4328_v16, 0.0  ;;  %3377 = vmatmul.bf16.gmra.mxu0 %v6433_v48  ;;  %v8987_v42 = vadd.f32 %v4709_v49, %v3720_v58  ;;  %v7049_v48 = vor.u32 %v7907_v47, %v7048_v59  ;;  %v7050_v16 = vld [vmem:[%s8066_s24 + $0x9d8] sm:$0xf0] }
 0x52c   : > { %v7053_v38 = vor.u32 %v7906_v15, %v7050_v16 }
 0x52d   : > { %v5482_v56 = vadd.f32 %v5481_v39, %v5091_v7  ;;  %9739 = vst [vmem:[#allocation74_spill] sm:$0xff] %v8987_v42  ;;  %v6453_v39 = vor.u32 %v7756_v35, %v6450_v30  ;;  %v6440_v7 = vld [vmem:[%s8066_s24 + $0x510] sm:$0xf]  ;;  %3762 = vmatmul.bf16.gmra.mxu2 %v7049_v48  ;;  %v6458_v48 = vld [vmem:[%s8066_s24 + $0x538] sm:$0xf0] }
 0x52e   : > { %v4334_v36 = vpop.f32.mrf.mxu1  ;;  %v7757_v42 = vld [vmem:[%s8066_s24 + $0x524] sm:$0xf0] }
 0x52f   : > { %7551 = vmatmul.msk.bf16.gmra.mxu3 %vm2373_vm2, %v7053_v38  ;;  %v7908_v38 = vld [vmem:[%s8066_s24 + $0x9e4] sm:$0xf] }
 0x530   : > { %v3340_v9 = vpop.f32.mrf.mxu0  ;;  %v3723_v58 = vpop.f32.mrf.mxu2 }
 0x531   : > { %v4330_v46 = vadd.f32 %v4329_v18, %v3340_v9  ;;  %v6441_v18 = vor.u32 %v7755_v8, %v6440_v7  ;;  %v7909_v7 = vld [vmem:[%s8066_s24 + $0x9e4] sm:$0xf0] }
 0x532   : > { %v4712_v35 = vpop.f32.mrf.mxu3 }
 0x533   : > { %v5092_v0 = vmax.f32 %v4330_v46, 0.0  ;;  %v8997_v59 = vadd.f32 %v4712_v35, %v3723_v58 }
 0x535   : > { %v5483_v51 = vadd.f32 %v5482_v56, %v5092_v0  ;;  %9740 = vst [vmem:[#allocation75_spill] sm:$0xff] %v8997_v59  ;;  %v7758_v0 = vld [vmem:[%s8066_s24 + $0x534] sm:$0xf] }
 0x536   : > { %v4337_v52 = vpop.f32.mrf.mxu1 }
 0x538   : > { %v3343_v9 = vpop.f32.mrf.mxu0  ;;  %v3725_v8 = vpop.f32.mrf.mxu2 }
 0x539   : > { %7476 = vmatmul.msk.bf16.gmra.mxu1 %vm2373_vm2, %v6453_v39  ;;  %v4333_v46 = vadd.f32 %v4332_v24, %v3343_v9  ;;  %v7056_v24 = vld [vmem:[%s8066_s24 + $0x9e0] sm:$0xf] }
 0x53a   : > { %v4714_v16 = vpop.f32.mrf.mxu3 }
 0x53b   : > { %v5093_v30 = vmax.f32 %v4333_v46, 0.0  ;;  %3382 = vmatmul.bf16.gmra.mxu0 %v6441_v18  ;;  %v9001_v39 = vadd.f32 %v4714_v16, %v3725_v8  ;;  %v7057_v18 = vor.u32 %v7909_v7, %v7056_v24  ;;  %v7058_v46 = vld [vmem:[%s8066_s24 + $0x9e8] sm:$0xf0] }
 0x53c   : > { %v7061_v58 = vor.u32 %v7908_v38, %v7058_v46 }
 0x53d   : > { %v5484_v56 = vadd.f32 %v5483_v51, %v5093_v30  ;;  %9741 = vst [vmem:[#allocation76_spill] sm:$0xff] %v9001_v39  ;;  %v6461_v51 = vor.u32 %v7758_v0, %v6458_v48  ;;  %v6448_v30 = vld [vmem:[%s8066_s24 + $0x520] sm:$0xf]  ;;  %3767 = vmatmul.bf16.gmra.mxu2 %v7057_v18  ;;  %v6466_v18 = vld [vmem:[%s8066_s24 + $0x548] sm:$0xf0] }
 0x53e   : > { %v4339_v49 = vpop.f32.mrf.mxu1  ;;  %v7759_v39 = vld [vmem:[%s8066_s24 + $0x534] sm:$0xf0] }
 0x53f   : > { %7552 = vmatmul.msk.bf16.gmra.mxu3 %vm2373_vm2, %v7061_v58  ;;  %v7910_v58 = vld [vmem:[%s8066_s24 + $0x9f4] sm:$0xf] }
 0x540   : > { %v3345_v47 = vpop.f32.mrf.mxu0  ;;  %v3728_v8 = vpop.f32.mrf.mxu2 }
 0x541   : > { %v4335_v15 = vadd.f32 %v4334_v36, %v3345_v47  ;;  %v6449_v36 = vor.u32 %v7757_v42, %v6448_v30  ;;  %v7911_v30 = vld [vmem:[%s8066_s24 + $0x9f4] sm:$0xf0] }
 0x542   : > { %v4717_v0 = vpop.f32.mrf.mxu3 }
 0x543   : > { %v5094_v9 = vmax.f32 %v4335_v15, 0.0  ;;  %v9011_v24 = vadd.f32 %v4717_v0, %v3728_v8 }
 0x545   : > { %v5485_v35 = vadd.f32 %v5484_v56, %v5094_v9  ;;  %9742 = vst [vmem:[#allocation77_spill] sm:$0xff] %v9011_v24  ;;  %v7760_v9 = vld [vmem:[%s8066_s24 + $0x544] sm:$0xf] }
 0x546   : > { %v4342_v59 = vpop.f32.mrf.mxu1 }
 0x548   : > { %v3348_v47 = vpop.f32.mrf.mxu0  ;;  %v3730_v42 = vpop.f32.mrf.mxu2 }
 0x549   : > { %7477 = vmatmul.msk.bf16.gmra.mxu1 %vm2373_vm2, %v6461_v51  ;;  %v4338_v15 = vadd.f32 %v4337_v52, %v3348_v47  ;;  %v7064_v52 = vld [vmem:[%s8066_s24 + $0x9f0] sm:$0xf] }
 0x54a   : > { %v4719_v46 = vpop.f32.mrf.mxu3 }
 0x54b   : > { %v5095_v48 = vmax.f32 %v4338_v15, 0.0  ;;  %3387 = vmatmul.bf16.gmra.mxu0 %v6449_v36  ;;  %v9015_v51 = vadd.f32 %v4719_v46, %v3730_v42  ;;  %v7065_v36 = vor.u32 %v7911_v30, %v7064_v52  ;;  %v7066_v15 = vld [vmem:[%s8066_s24 + $0x9f8] sm:$0xf0] }
 0x54c   : > { %v7069_v8 = vor.u32 %v7910_v58, %v7066_v15 }
 0x54d   : > { %v5486_v56 = vadd.f32 %v5485_v35, %v5095_v48  ;;  %9743 = vst [vmem:[#allocation78_spill] sm:$0xff] %v9015_v51  ;;  %v6469_v35 = vor.u32 %v7760_v9, %v6466_v18  ;;  %v6456_v48 = vld [vmem:[%s8066_s24 + $0x530] sm:$0xf]  ;;  %3772 = vmatmul.bf16.gmra.mxu2 %v7065_v36  ;;  %v6474_v36 = vld [vmem:[%s8066_s24 + $0x558] sm:$0xf0] }
 0x54e   : > { %v4344_v16 = vpop.f32.mrf.mxu1  ;;  %v7761_v51 = vld [vmem:[%s8066_s24 + $0x544] sm:$0xf0] }
 0x54f   : > { %7553 = vmatmul.msk.bf16.gmra.mxu3 %vm2373_vm2, %v7069_v8  ;;  %v7912_v8 = vld [vmem:[%s8066_s24 + $0xa04] sm:$0xf] }
 0x550   : > { %v3350_v7 = vpop.f32.mrf.mxu0  ;;  %v3733_v42 = vpop.f32.mrf.mxu2 }
 0x551   : > { %v4340_v38 = vadd.f32 %v4339_v49, %v3350_v7  ;;  %v6457_v49 = vor.u32 %v7759_v39, %v6456_v48  ;;  %v7913_v48 = vld [vmem:[%s8066_s24 + $0xa04] sm:$0xf0] }
 0x552   : > { %v4722_v9 = vpop.f32.mrf.mxu3 }
 0x553   : > { %v5096_v47 = vmax.f32 %v4340_v38, 0.0  ;;  %v9025_v52 = vadd.f32 %v4722_v9, %v3733_v42 }
 0x555   : > { %v5487_v0 = vadd.f32 %v5486_v56, %v5096_v47  ;;  %9744 = vst [vmem:[#allocation79_spill] sm:$0xff] %v9025_v52  ;;  %v7762_v47 = vld [vmem:[%s8066_s24 + $0x554] sm:$0xf] }
 0x556   : > { %v4347_v24 = vpop.f32.mrf.mxu1 }
 0x558   : > { %v3353_v7 = vpop.f32.mrf.mxu0  ;;  %v3735_v39 = vpop.f32.mrf.mxu2 }
 0x559   : > { %7478 = vmatmul.msk.bf16.gmra.mxu1 %vm2373_vm2, %v6469_v35  ;;  %v4343_v38 = vadd.f32 %v4342_v59, %v3353_v7  ;;  %v7072_v59 = vld [vmem:[%s8066_s24 + $0xa00] sm:$0xf] }
 0x55a   : > { %v4724_v15 = vpop.f32.mrf.mxu3 }
 0x55b   : > { %v5097_v18 = vmax.f32 %v4343_v38, 0.0  ;;  %3392 = vmatmul.bf16.gmra.mxu0 %v6457_v49  ;;  %v9029_v35 = vadd.f32 %v4724_v15, %v3735_v39  ;;  %v7073_v49 = vor.u32 %v7913_v48, %v7072_v59  ;;  %v7074_v38 = vld [vmem:[%s8066_s24 + $0xa08] sm:$0xf0] }
 0x55c   : > { %v7077_v42 = vor.u32 %v7912_v8, %v7074_v38 }
 0x55d   : > { %v5488_v56 = vadd.f32 %v5487_v0, %v5097_v18  ;;  %9745 = vst [vmem:[#allocation80_spill] sm:$0xff] %v9029_v35  ;;  %v6477_v0 = vor.u32 %v7762_v47, %v6474_v36  ;;  %v6464_v18 = vld [vmem:[%s8066_s24 + $0x540] sm:$0xf]  ;;  %3777 = vmatmul.bf16.gmra.mxu2 %v7073_v49  ;;  %v6482_v49 = vld [vmem:[%s8066_s24 + $0x568] sm:$0xf0] }
 0x55e   : > { %v4349_v46 = vpop.f32.mrf.mxu1  ;;  %v7763_v35 = vld [vmem:[%s8066_s24 + $0x554] sm:$0xf0] }
 0x55f   : > { %7554 = vmatmul.msk.bf16.gmra.mxu3 %vm2373_vm2, %v7077_v42  ;;  %v7914_v42 = vld [vmem:[%s8066_s24 + $0xa14] sm:$0xf] }
 0x560   : > { %v3355_v30 = vpop.f32.mrf.mxu0  ;;  %v3738_v39 = vpop.f32.mrf.mxu2 }
 0x561   : > { %v4345_v58 = vadd.f32 %v4344_v16, %v3355_v30  ;;  %v6465_v16 = vor.u32 %v7761_v51, %v6464_v18  ;;  %v7915_v18 = vld [vmem:[%s8066_s24 + $0xa14] sm:$0xf0] }
 0x562   : > { %v4727_v47 = vpop.f32.mrf.mxu3 }
 0x563   : > { %v5098_v7 = vmax.f32 %v4345_v58, 0.0  ;;  %v9039_v59 = vadd.f32 %v4727_v47, %v3738_v39 }
 0x565   : > { %v5489_v9 = vadd.f32 %v5488_v56, %v5098_v7  ;;  %9746 = vst [vmem:[#allocation81_spill] sm:$0xff] %v9039_v59  ;;  %v7764_v7 = vld [vmem:[%s8066_s24 + $0x564] sm:$0xf] }
 0x566   : > { %v4352_v52 = vpop.f32.mrf.mxu1 }
 0x568   : > { %v3358_v30 = vpop.f32.mrf.mxu0  ;;  %v3740_v51 = vpop.f32.mrf.mxu2 }
 0x569   : > { %7479 = vmatmul.msk.bf16.gmra.mxu1 %vm2373_vm2, %v6477_v0  ;;  %v4348_v58 = vadd.f32 %v4347_v24, %v3358_v30  ;;  %v7080_v24 = vld [vmem:[%s8066_s24 + $0xa10] sm:$0xf] }
 0x56a   : > { %v4729_v38 = vpop.f32.mrf.mxu3 }
 0x56b   : > { %v5099_v36 = vmax.f32 %v4348_v58, 0.0  ;;  %3397 = vmatmul.bf16.gmra.mxu0 %v6465_v16  ;;  %v9043_v0 = vadd.f32 %v4729_v38, %v3740_v51  ;;  %v7081_v16 = vor.u32 %v7915_v18, %v7080_v24  ;;  %v7082_v58 = vld [vmem:[%s8066_s24 + $0xa18] sm:$0xf0] }
 0x56c   : > { %v7085_v39 = vor.u32 %v7914_v42, %v7082_v58 }
 0x56d   : > { %v5490_v56 = vadd.f32 %v5489_v9, %v5099_v36  ;;  %9747 = vst [vmem:[#allocation82_spill] sm:$0xff] %v9043_v0  ;;  %v6485_v9 = vor.u32 %v7764_v7, %v6482_v49  ;;  %v6472_v36 = vld [vmem:[%s8066_s24 + $0x550] sm:$0xf]  ;;  %3782 = vmatmul.bf16.gmra.mxu2 %v7081_v16  ;;  %v6490_v16 = vld [vmem:[%s8066_s24 + $0x578] sm:$0xf0] }
 0x56e   : > { %v4354_v15 = vpop.f32.mrf.mxu1  ;;  %v7765_v0 = vld [vmem:[%s8066_s24 + $0x564] sm:$0xf0] }
 0x56f   : > { %7555 = vmatmul.msk.bf16.gmra.mxu3 %vm2373_vm2, %v7085_v39  ;;  %v7916_v39 = vld [vmem:[%s8066_s24 + $0xa24] sm:$0xf] }
 0x570   : > { %v3360_v48 = vpop.f32.mrf.mxu0  ;;  %v3743_v51 = vpop.f32.mrf.mxu2 }
 0x571   : > { %v4350_v8 = vadd.f32 %v4349_v46, %v3360_v48  ;;  %v6473_v46 = vor.u32 %v7763_v35, %v6472_v36  ;;  %v7917_v36 = vld [vmem:[%s8066_s24 + $0xa24] sm:$0xf0] }
 0x572   : > { %v4732_v7 = vpop.f32.mrf.mxu3 }
 0x573   : > { %v5100_v30 = vmax.f32 %v4350_v8, 0.0  ;;  %v9053_v24 = vadd.f32 %v4732_v7, %v3743_v51 }
 0x575   : > { %v5491_v47 = vadd.f32 %v5490_v56, %v5100_v30  ;;  %9748 = vst [vmem:[#allocation83_spill] sm:$0xff] %v9053_v24  ;;  %v7766_v30 = vld [vmem:[%s8066_s24 + $0x574] sm:$0xf] }
 0x576   : > { %v4357_v59 = vpop.f32.mrf.mxu1 }
 0x578   : > { %v3363_v48 = vpop.f32.mrf.mxu0  ;;  %v3745_v35 = vpop.f32.mrf.mxu2 }
 0x579   : > { %7480 = vmatmul.msk.bf16.gmra.mxu1 %vm2373_vm2, %v6485_v9  ;;  %v4353_v8 = vadd.f32 %v4352_v52, %v3363_v48  ;;  %v7088_v52 = vld [vmem:[%s8066_s24 + $0xa20] sm:$0xf] }
 0x57a   : > { %v4734_v58 = vpop.f32.mrf.mxu3 }
 0x57b   : > { %v5101_v49 = vmax.f32 %v4353_v8, 0.0  ;;  %3402 = vmatmul.bf16.gmra.mxu0 %v6473_v46  ;;  %v9057_v9 = vadd.f32 %v4734_v58, %v3745_v35  ;;  %v7089_v46 = vor.u32 %v7917_v36, %v7088_v52  ;;  %v7090_v8 = vld [vmem:[%s8066_s24 + $0xa28] sm:$0xf0] }
 0x57c   : > { %v7093_v51 = vor.u32 %v7916_v39, %v7090_v8 }
 0x57d   : > { %v5492_v56 = vadd.f32 %v5491_v47, %v5101_v49  ;;  %9749 = vst [vmem:[#allocation84_spill] sm:$0xff] %v9057_v9  ;;  %v6493_v47 = vor.u32 %v7766_v30, %v6490_v16  ;;  %v6480_v49 = vld [vmem:[%s8066_s24 + $0x560] sm:$0xf]  ;;  %3787 = vmatmul.bf16.gmra.mxu2 %v7089_v46  ;;  %v6498_v46 = vld [vmem:[%s8066_s24 + $0x588] sm:$0xf0] }
 0x57e   : > { %v4359_v38 = vpop.f32.mrf.mxu1  ;;  %v7767_v9 = vld [vmem:[%s8066_s24 + $0x574] sm:$0xf0] }
 0x57f   : > { %7556 = vmatmul.msk.bf16.gmra.mxu3 %vm2373_vm2, %v7093_v51  ;;  %v7918_v51 = vld [vmem:[%s8066_s24 + $0xa34] sm:$0xf] }
 0x580   : > { %v3365_v18 = vpop.f32.mrf.mxu0  ;;  %v3748_v35 = vpop.f32.mrf.mxu2 }
 0x581   : > { %v4355_v42 = vadd.f32 %v4354_v15, %v3365_v18  ;;  %v6481_v15 = vor.u32 %v7765_v0, %v6480_v49  ;;  %v7919_v49 = vld [vmem:[%s8066_s24 + $0xa34] sm:$0xf0] }
 0x582   : > { %v4737_v30 = vpop.f32.mrf.mxu3 }
 0x583   : > { %v5102_v48 = vmax.f32 %v4355_v42, 0.0  ;;  %v9067_v52 = vadd.f32 %v4737_v30, %v3748_v35 }
 0x585   : > { %v5493_v7 = vadd.f32 %v5492_v56, %v5102_v48  ;;  %9750 = vst [vmem:[#allocation85_spill] sm:$0xff] %v9067_v52  ;;  %v7768_v48 = vld [vmem:[%s8066_s24 + $0x584] sm:$0xf] }
 0x586   : > { %v4362_v24 = vpop.f32.mrf.mxu1 }
 0x588   : > { %v3368_v18 = vpop.f32.mrf.mxu0  ;;  %v3750_v0 = vpop.f32.mrf.mxu2 }
 0x589   : > { %7481 = vmatmul.msk.bf16.gmra.mxu1 %vm2373_vm2, %v6493_v47  ;;  %v4358_v42 = vadd.f32 %v4357_v59, %v3368_v18  ;;  %v7096_v59 = vld [vmem:[%s8066_s24 + $0xa30] sm:$0xf] }
 0x58a   : > { %v4739_v8 = vpop.f32.mrf.mxu3 }
 0x58b   : > { %v5103_v16 = vmax.f32 %v4358_v42, 0.0  ;;  %3407 = vmatmul.bf16.gmra.mxu0 %v6481_v15  ;;  %v9071_v47 = vadd.f32 %v4739_v8, %v3750_v0  ;;  %v7097_v15 = vor.u32 %v7919_v49, %v7096_v59  ;;  %v7098_v42 = vld [vmem:[%s8066_s24 + $0xa38] sm:$0xf0] }
 0x58c   : > { %v7101_v35 = vor.u32 %v7918_v51, %v7098_v42 }
 0x58d   : > { %v5494_v56 = vadd.f32 %v5493_v7, %v5103_v16  ;;  %9751 = vst [vmem:[#allocation86_spill] sm:$0xff] %v9071_v47  ;;  %v6501_v7 = vor.u32 %v7768_v48, %v6498_v46  ;;  %v6488_v16 = vld [vmem:[%s8066_s24 + $0x570] sm:$0xf]  ;;  %3792 = vmatmul.bf16.gmra.mxu2 %v7097_v15  ;;  %v6506_v15 = vld [vmem:[%s8066_s24 + $0x598] sm:$0xf0] }
 0x58e   : > { %v4364_v58 = vpop.f32.mrf.mxu1  ;;  %v7769_v47 = vld [vmem:[%s8066_s24 + $0x584] sm:$0xf0] }
 0x58f   : > { %7557 = vmatmul.msk.bf16.gmra.mxu3 %vm2373_vm2, %v7101_v35  ;;  %v7920_v35 = vld [vmem:[%s8066_s24 + $0xa44] sm:$0xf] }
 0x590   : > { %v3370_v36 = vpop.f32.mrf.mxu0  ;;  %v3753_v0 = vpop.f32.mrf.mxu2 }
 0x591   : > { %v4360_v39 = vadd.f32 %v4359_v38, %v3370_v36  ;;  %v6489_v38 = vor.u32 %v7767_v9, %v6488_v16  ;;  %v7921_v16 = vld [vmem:[%s8066_s24 + $0xa44] sm:$0xf0] }
 0x592   : > { %v4742_v48 = vpop.f32.mrf.mxu3 }
 0x593   : > { %v5104_v18 = vmax.f32 %v4360_v39, 0.0  ;;  %v9081_v59 = vadd.f32 %v4742_v48, %v3753_v0 }
 0x595   : > { %v5495_v30 = vadd.f32 %v5494_v56, %v5104_v18  ;;  %9752 = vst [vmem:[#allocation87_spill] sm:$0xff] %v9081_v59  ;;  %v7770_v18 = vld [vmem:[%s8066_s24 + $0x594] sm:$0xf] }
 0x596   : > { %v4367_v52 = vpop.f32.mrf.mxu1 }
 0x598   : > { %v3373_v36 = vpop.f32.mrf.mxu0  ;;  %v3755_v9 = vpop.f32.mrf.mxu2 }
 0x599   : > { %7482 = vmatmul.msk.bf16.gmra.mxu1 %vm2373_vm2, %v6501_v7  ;;  %v4363_v39 = vadd.f32 %v4362_v24, %v3373_v36  ;;  %v7104_v24 = vld [vmem:[%s8066_s24 + $0xa40] sm:$0xf] }
 0x59a   : > { %v4744_v42 = vpop.f32.mrf.mxu3 }
 0x59b   : > { %v5105_v46 = vmax.f32 %v4363_v39, 0.0  ;;  %3412 = vmatmul.bf16.gmra.mxu0 %v6489_v38  ;;  %v9085_v7 = vadd.f32 %v4744_v42, %v3755_v9  ;;  %v7105_v38 = vor.u32 %v7921_v16, %v7104_v24  ;;  %v7106_v39 = vld [vmem:[%s8066_s24 + $0xa48] sm:$0xf0] }
 0x59c   : > { %v7109_v0 = vor.u32 %v7920_v35, %v7106_v39 }
 0x59d   : > { %v5496_v56 = vadd.f32 %v5495_v30, %v5105_v46  ;;  %9753 = vst [vmem:[#allocation88_spill] sm:$0xff] %v9085_v7  ;;  %v6509_v30 = vor.u32 %v7770_v18, %v6506_v15  ;;  %v6496_v46 = vld [vmem:[%s8066_s24 + $0x580] sm:$0xf]  ;;  %3797 = vmatmul.bf16.gmra.mxu2 %v7105_v38  ;;  %v6514_v38 = vld [vmem:[%s8066_s24 + $0x5a8] sm:$0xf0] }
 0x59e   : > { %v4369_v8 = vpop.f32.mrf.mxu1  ;;  %v7771_v7 = vld [vmem:[%s8066_s24 + $0x594] sm:$0xf0] }
 0x59f   : > { %7558 = vmatmul.msk.bf16.gmra.mxu3 %vm2373_vm2, %v7109_v0  ;;  %v7922_v0 = vld [vmem:[%s8066_s24 + $0xa54] sm:$0xf] }
 0x5a0   : > { %v3375_v49 = vpop.f32.mrf.mxu0  ;;  %v3758_v9 = vpop.f32.mrf.mxu2 }
 0x5a1   : > { %v4365_v51 = vadd.f32 %v4364_v58, %v3375_v49  ;;  %v6497_v58 = vor.u32 %v7769_v47, %v6496_v46  ;;  %v7923_v46 = vld [vmem:[%s8066_s24 + $0xa54] sm:$0xf0] }
 0x5a2   : > { %v4747_v18 = vpop.f32.mrf.mxu3 }
 0x5a3   : > { %v5106_v36 = vmax.f32 %v4365_v51, 0.0  ;;  %v9095_v24 = vadd.f32 %v4747_v18, %v3758_v9 }
 0x5a5   : > { %v5497_v48 = vadd.f32 %v5496_v56, %v5106_v36  ;;  %9754 = vst [vmem:[#allocation89_spill] sm:$0xff] %v9095_v24  ;;  %v7772_v36 = vld [vmem:[%s8066_s24 + $0x5a4] sm:$0xf] }
 0x5a6   : > { %v4372_v59 = vpop.f32.mrf.mxu1 }
 0x5a8   : > { %v3378_v49 = vpop.f32.mrf.mxu0  ;;  %v3760_v47 = vpop.f32.mrf.mxu2 }
 0x5a9   : > { %7483 = vmatmul.msk.bf16.gmra.mxu1 %vm2373_vm2, %v6509_v30  ;;  %v4368_v51 = vadd.f32 %v4367_v52, %v3378_v49  ;;  %v7112_v52 = vld [vmem:[%s8066_s24 + $0xa50] sm:$0xf] }
 0x5aa   : > { %v4749_v39 = vpop.f32.mrf.mxu3 }
 0x5ab   : > { %v5107_v15 = vmax.f32 %v4368_v51, 0.0  ;;  %3417 = vmatmul.bf16.gmra.mxu0 %v6497_v58  ;;  %v9099_v30 = vadd.f32 %v4749_v39, %v3760_v47  ;;  %v7113_v58 = vor.u32 %v7923_v46, %v7112_v52  ;;  %v7114_v51 = vld [vmem:[%s8066_s24 + $0xa58] sm:$0xf0] }
 0x5ac   : > { %v7117_v9 = vor.u32 %v7922_v0, %v7114_v51 }
 0x5ad   : > { %v5498_v56 = vadd.f32 %v5497_v48, %v5107_v15  ;;  %9755 = vst [vmem:[#allocation90_spill] sm:$0xff] %v9099_v30  ;;  %v6517_v48 = vor.u32 %v7772_v36, %v6514_v38  ;;  %v6504_v15 = vld [vmem:[%s8066_s24 + $0x590] sm:$0xf]  ;;  %3802 = vmatmul.bf16.gmra.mxu2 %v7113_v58  ;;  %v6522_v58 = vld [vmem:[%s8066_s24 + $0x5b8] sm:$0xf0] }
 0x5ae   : > { %v4374_v42 = vpop.f32.mrf.mxu1  ;;  %v7773_v30 = vld [vmem:[%s8066_s24 + $0x5a4] sm:$0xf0] }
 0x5af   : > { %7559 = vmatmul.msk.bf16.gmra.mxu3 %vm2373_vm2, %v7117_v9  ;;  %v7924_v9 = vld [vmem:[%s8066_s24 + $0xa64] sm:$0xf] }
 0x5b0   : > { %v3380_v16 = vpop.f32.mrf.mxu0  ;;  %v3763_v47 = vpop.f32.mrf.mxu2 }
 0x5b1   : > { %v4370_v35 = vadd.f32 %v4369_v8, %v3380_v16  ;;  %v6505_v8 = vor.u32 %v7771_v7, %v6504_v15  ;;  %v7925_v15 = vld [vmem:[%s8066_s24 + $0xa64] sm:$0xf0] }
 0x5b2   : > { %v4752_v36 = vpop.f32.mrf.mxu3 }
 0x5b3   : > { %v5108_v49 = vmax.f32 %v4370_v35, 0.0  ;;  %v9109_v52 = vadd.f32 %v4752_v36, %v3763_v47 }
 0x5b5   : > { %v5499_v18 = vadd.f32 %v5498_v56, %v5108_v49  ;;  %9756 = vst [vmem:[#allocation91_spill] sm:$0xff] %v9109_v52  ;;  %v7774_v49 = vld [vmem:[%s8066_s24 + $0x5b4] sm:$0xf] }
 0x5b6   : > { %v4377_v24 = vpop.f32.mrf.mxu1 }
 0x5b8   : > { %v3383_v16 = vpop.f32.mrf.mxu0  ;;  %v3765_v7 = vpop.f32.mrf.mxu2 }
 0x5b9   : > { %7484 = vmatmul.msk.bf16.gmra.mxu1 %vm2373_vm2, %v6517_v48  ;;  %v4373_v35 = vadd.f32 %v4372_v59, %v3383_v16  ;;  %v7120_v59 = vld [vmem:[%s8066_s24 + $0xa60] sm:$0xf] }
 0x5ba   : > { %v4754_v51 = vpop.f32.mrf.mxu3 }
 0x5bb   : > { %v5109_v38 = vmax.f32 %v4373_v35, 0.0  ;;  %3422 = vmatmul.bf16.gmra.mxu0 %v6505_v8  ;;  %v9113_v48 = vadd.f32 %v4754_v51, %v3765_v7  ;;  %v7121_v8 = vor.u32 %v7925_v15, %v7120_v59  ;;  %v7122_v35 = vld [vmem:[%s8066_s24 + $0xa68] sm:$0xf0] }
 0x5bc   : > { %v7125_v47 = vor.u32 %v7924_v9, %v7122_v35 }
 0x5bd   : > { %v5500_v56 = vadd.f32 %v5499_v18, %v5109_v38  ;;  %9757 = vst [vmem:[#allocation92_spill] sm:$0xff] %v9113_v48  ;;  %v6525_v18 = vor.u32 %v7774_v49, %v6522_v58  ;;  %v6512_v38 = vld [vmem:[%s8066_s24 + $0x5a0] sm:$0xf]  ;;  %3807 = vmatmul.bf16.gmra.mxu2 %v7121_v8  ;;  %v6530_v8 = vld [vmem:[%s8066_s24 + $0x5c8] sm:$0xf0] }
 0x5be   : > { %v4379_v39 = vpop.f32.mrf.mxu1  ;;  %v7775_v48 = vld [vmem:[%s8066_s24 + $0x5b4] sm:$0xf0] }
 0x5bf   : > { %7560 = vmatmul.msk.bf16.gmra.mxu3 %vm2373_vm2, %v7125_v47  ;;  %v7926_v47 = vld [vmem:[%s8066_s24 + $0xa74] sm:$0xf] }
 0x5c0   : > { %v3385_v46 = vpop.f32.mrf.mxu0  ;;  %v3768_v7 = vpop.f32.mrf.mxu2 }
 0x5c1   : > { %v4375_v0 = vadd.f32 %v4374_v42, %v3385_v46  ;;  %v6513_v42 = vor.u32 %v7773_v30, %v6512_v38  ;;  %v7927_v38 = vld [vmem:[%s8066_s24 + $0xa74] sm:$0xf0] }
 0x5c2   : > { %v4757_v49 = vpop.f32.mrf.mxu3 }
 0x5c3   : > { %v5110_v16 = vmax.f32 %v4375_v0, 0.0  ;;  %v9123_v59 = vadd.f32 %v4757_v49, %v3768_v7 }
 0x5c5   : > { %v5501_v36 = vadd.f32 %v5500_v56, %v5110_v16  ;;  %9758 = vst [vmem:[#allocation93_spill] sm:$0xff] %v9123_v59  ;;  %v7776_v16 = vld [vmem:[%s8066_s24 + $0x5c4] sm:$0xf] }
 0x5c6   : > { %v4382_v52 = vpop.f32.mrf.mxu1 }
 0x5c8   : > { %v3388_v46 = vpop.f32.mrf.mxu0  ;;  %v3770_v30 = vpop.f32.mrf.mxu2 }
 0x5c9   : > { %7485 = vmatmul.msk.bf16.gmra.mxu1 %vm2373_vm2, %v6525_v18  ;;  %v4378_v0 = vadd.f32 %v4377_v24, %v3388_v46  ;;  %v7128_v24 = vld [vmem:[%s8066_s24 + $0xa70] sm:$0xf] }
 0x5ca   : > { %v4759_v35 = vpop.f32.mrf.mxu3 }
 0x5cb   : > { %v5111_v58 = vmax.f32 %v4378_v0, 0.0  ;;  %3427 = vmatmul.bf16.gmra.mxu0 %v6513_v42  ;;  %v9127_v18 = vadd.f32 %v4759_v35, %v3770_v30  ;;  %v7129_v42 = vor.u32 %v7927_v38, %v7128_v24  ;;  %v7130_v0 = vld [vmem:[%s8066_s24 + $0xa78] sm:$0xf0] }
 0x5cc   : > { %v7133_v7 = vor.u32 %v7926_v47, %v7130_v0 }
 0x5cd   : > { %v5502_v56 = vadd.f32 %v5501_v36, %v5111_v58  ;;  %9759 = vst [vmem:[#allocation94_spill] sm:$0xff] %v9127_v18  ;;  %v6533_v36 = vor.u32 %v7776_v16, %v6530_v8  ;;  %v6520_v58 = vld [vmem:[%s8066_s24 + $0x5b0] sm:$0xf]  ;;  %3812 = vmatmul.bf16.gmra.mxu2 %v7129_v42  ;;  %v6538_v42 = vld [vmem:[%s8066_s24 + $0x5d8] sm:$0xf0] }
 0x5ce   : > { %v4384_v51 = vpop.f32.mrf.mxu1  ;;  %v7777_v18 = vld [vmem:[%s8066_s24 + $0x5c4] sm:$0xf0] }
 0x5cf   : > { %7561 = vmatmul.msk.bf16.gmra.mxu3 %vm2373_vm2, %v7133_v7  ;;  %v7928_v7 = vld [vmem:[%s8066_s24 + $0xa84] sm:$0xf] }
 0x5d0   : > { %v3390_v15 = vpop.f32.mrf.mxu0  ;;  %v3773_v30 = vpop.f32.mrf.mxu2 }
 0x5d1   : > { %v4380_v9 = vadd.f32 %v4379_v39, %v3390_v15  ;;  %v6521_v39 = vor.u32 %v7775_v48, %v6520_v58  ;;  %v7929_v58 = vld [vmem:[%s8066_s24 + $0xa84] sm:$0xf0] }
 0x5d2   : > { %v4762_v16 = vpop.f32.mrf.mxu3 }
 0x5d3   : > { %v5112_v46 = vmax.f32 %v4380_v9, 0.0  ;;  %v9137_v24 = vadd.f32 %v4762_v16, %v3773_v30 }
 0x5d5   : > { %v5503_v49 = vadd.f32 %v5502_v56, %v5112_v46  ;;  %9760 = vst [vmem:[#allocation95_spill] sm:$0xff] %v9137_v24  ;;  %v7778_v46 = vld [vmem:[%s8066_s24 + $0x5d4] sm:$0xf] }
 0x5d6   : > { %v4387_v59 = vpop.f32.mrf.mxu1 }
 0x5d8   : > { %v3393_v15 = vpop.f32.mrf.mxu0  ;;  %v3775_v48 = vpop.f32.mrf.mxu2 }
 0x5d9   : > { %7486 = vmatmul.msk.bf16.gmra.mxu1 %vm2373_vm2, %v6533_v36  ;;  %v4383_v9 = vadd.f32 %v4382_v52, %v3393_v15  ;;  %v7136_v52 = vld [vmem:[%s8066_s24 + $0xa80] sm:$0xf] }
 0x5da   : > { %v4764_v0 = vpop.f32.mrf.mxu3 }
 0x5db   : > { %v5113_v8 = vmax.f32 %v4383_v9, 0.0  ;;  %3432 = vmatmul.bf16.gmra.mxu0 %v6521_v39  ;;  %v9141_v36 = vadd.f32 %v4764_v0, %v3775_v48  ;;  %v7137_v39 = vor.u32 %v7929_v58, %v7136_v52  ;;  %v7138_v9 = vld [vmem:[%s8066_s24 + $0xa88] sm:$0xf0] }
 0x5dc   : > { %v7141_v30 = vor.u32 %v7928_v7, %v7138_v9 }
 0x5dd   : > { %v5504_v56 = vadd.f32 %v5503_v49, %v5113_v8  ;;  %9761 = vst [vmem:[#allocation96_spill] sm:$0xff] %v9141_v36  ;;  %v6541_v49 = vor.u32 %v7778_v46, %v6538_v42  ;;  %v6528_v8 = vld [vmem:[%s8066_s24 + $0x5c0] sm:$0xf]  ;;  %3817 = vmatmul.bf16.gmra.mxu2 %v7137_v39  ;;  %v6546_v39 = vld [vmem:[%s8066_s24 + $0x5e8] sm:$0xf0] }
 0x5de   : > { %v4389_v35 = vpop.f32.mrf.mxu1  ;;  %v7779_v36 = vld [vmem:[%s8066_s24 + $0x5d4] sm:$0xf0] }
 0x5df   : > { %7562 = vmatmul.msk.bf16.gmra.mxu3 %vm2373_vm2, %v7141_v30  ;;  %v7930_v30 = vld [vmem:[%s8066_s24 + $0xa94] sm:$0xf] }
 0x5e0   : > { %v3395_v38 = vpop.f32.mrf.mxu0  ;;  %v3778_v48 = vpop.f32.mrf.mxu2 }
 0x5e1   : > { %v4385_v47 = vadd.f32 %v4384_v51, %v3395_v38  ;;  %v6529_v51 = vor.u32 %v7777_v18, %v6528_v8  ;;  %v7931_v8 = vld [vmem:[%s8066_s24 + $0xa94] sm:$0xf0] }
 0x5e2   : > { %v4767_v46 = vpop.f32.mrf.mxu3 }
 0x5e3   : > { %v5114_v15 = vmax.f32 %v4385_v47, 0.0  ;;  %v9151_v52 = vadd.f32 %v4767_v46, %v3778_v48 }
 0x5e5   : > { %v5505_v16 = vadd.f32 %v5504_v56, %v5114_v15  ;;  %9762 = vst [vmem:[#allocation97_spill] sm:$0xff] %v9151_v52  ;;  %v7780_v15 = vld [vmem:[%s8066_s24 + $0x5e4] sm:$0xf] }
 0x5e6   : > { %v4392_v24 = vpop.f32.mrf.mxu1 }
 0x5e8   : > { %v3398_v38 = vpop.f32.mrf.mxu0  ;;  %v3780_v18 = vpop.f32.mrf.mxu2 }
 0x5e9   : > { %7487 = vmatmul.msk.bf16.gmra.mxu1 %vm2373_vm2, %v6541_v49  ;;  %v4388_v47 = vadd.f32 %v4387_v59, %v3398_v38  ;;  %v7144_v59 = vld [vmem:[%s8066_s24 + $0xa90] sm:$0xf] }
 0x5ea   : > { %v4769_v9 = vpop.f32.mrf.mxu3 }
 0x5eb   : > { %v5115_v42 = vmax.f32 %v4388_v47, 0.0  ;;  %3437 = vmatmul.bf16.gmra.mxu0 %v6529_v51  ;;  %v9155_v49 = vadd.f32 %v4769_v9, %v3780_v18  ;;  %v7145_v51 = vor.u32 %v7931_v8, %v7144_v59  ;;  %v7146_v47 = vld [vmem:[%s8066_s24 + $0xa98] sm:$0xf0] }
 0x5ec   : > { %v7149_v48 = vor.u32 %v7930_v30, %v7146_v47 }
 0x5ed   : > { %v5506_v56 = vadd.f32 %v5505_v16, %v5115_v42  ;;  %9763 = vst [vmem:[#allocation98_spill] sm:$0xff] %v9155_v49  ;;  %v6549_v16 = vor.u32 %v7780_v15, %v6546_v39  ;;  %v6536_v42 = vld [vmem:[%s8066_s24 + $0x5d0] sm:$0xf]  ;;  %3822 = vmatmul.bf16.gmra.mxu2 %v7145_v51  ;;  %v6554_v51 = vld [vmem:[%s8066_s24 + $0x5f8] sm:$0xf0] }
 0x5ee   : > { %v4394_v0 = vpop.f32.mrf.mxu1  ;;  %v7781_v49 = vld [vmem:[%s8066_s24 + $0x5e4] sm:$0xf0] }
 0x5ef   : > { %7563 = vmatmul.msk.bf16.gmra.mxu3 %vm2373_vm2, %v7149_v48  ;;  %v7932_v48 = vld [vmem:[%s8066_s24 + $0xaa4] sm:$0xf] }
 0x5f0   : > { %v3400_v58 = vpop.f32.mrf.mxu0  ;;  %v3783_v18 = vpop.f32.mrf.mxu2 }
 0x5f1   : > { %v4390_v7 = vadd.f32 %v4389_v35, %v3400_v58  ;;  %v6537_v35 = vor.u32 %v7779_v36, %v6536_v42  ;;  %v7933_v42 = vld [vmem:[%s8066_s24 + $0xaa4] sm:$0xf0] }
 0x5f2   : > { %v4772_v15 = vpop.f32.mrf.mxu3 }
 0x5f3   : > { %v5116_v38 = vmax.f32 %v4390_v7, 0.0  ;;  %v9165_v59 = vadd.f32 %v4772_v15, %v3783_v18 }
 0x5f5   : > { %v5507_v46 = vadd.f32 %v5506_v56, %v5116_v38  ;;  %9764 = vst [vmem:[#allocation99_spill] sm:$0xff] %v9165_v59  ;;  %v7782_v38 = vld [vmem:[%s8066_s24 + $0x5f4] sm:$0xf] }
 0x5f6   : > { %v4397_v52 = vpop.f32.mrf.mxu1 }
 0x5f8   : > { %v3403_v58 = vpop.f32.mrf.mxu0  ;;  %v3785_v36 = vpop.f32.mrf.mxu2 }
 0x5f9   : > { %7488 = vmatmul.msk.bf16.gmra.mxu1 %vm2373_vm2, %v6549_v16  ;;  %v4393_v7 = vadd.f32 %v4392_v24, %v3403_v58  ;;  %v7152_v24 = vld [vmem:[%s8066_s24 + $0xaa0] sm:$0xf] }
 0x5fa   : > { %v4774_v47 = vpop.f32.mrf.mxu3 }
 0x5fb   : > { %v5117_v39 = vmax.f32 %v4393_v7, 0.0  ;;  %3442 = vmatmul.bf16.gmra.mxu0 %v6537_v35  ;;  %v9169_v16 = vadd.f32 %v4774_v47, %v3785_v36  ;;  %v7153_v35 = vor.u32 %v7933_v42, %v7152_v24  ;;  %v7154_v7 = vld [vmem:[%s8066_s24 + $0xaa8] sm:$0xf0] }
 0x5fc   : > { %v7157_v18 = vor.u32 %v7932_v48, %v7154_v7 }
 0x5fd   : > { %v5508_v56 = vadd.f32 %v5507_v46, %v5117_v39  ;;  %9765 = vst [vmem:[#allocation100_spill] sm:$0xff] %v9169_v16  ;;  %v6557_v46 = vor.u32 %v7782_v38, %v6554_v51  ;;  %v6544_v39 = vld [vmem:[%s8066_s24 + $0x5e0] sm:$0xf]  ;;  %3827 = vmatmul.bf16.gmra.mxu2 %v7153_v35  ;;  %v6562_v35 = vld [vmem:[%s8066_s24 + $0x608] sm:$0xf0] }
 0x5fe   : > { %v4399_v9 = vpop.f32.mrf.mxu1  ;;  %v7783_v16 = vld [vmem:[%s8066_s24 + $0x5f4] sm:$0xf0] }
 0x5ff   : > { %7564 = vmatmul.msk.bf16.gmra.mxu3 %vm2373_vm2, %v7157_v18  ;;  %v7934_v18 = vld [vmem:[%s8066_s24 + $0xab4] sm:$0xf] }
 0x600   : > { %v3405_v8 = vpop.f32.mrf.mxu0  ;;  %v3788_v36 = vpop.f32.mrf.mxu2 }
 0x601   : > { %v4395_v30 = vadd.f32 %v4394_v0, %v3405_v8  ;;  %v6545_v0 = vor.u32 %v7781_v49, %v6544_v39  ;;  %v7935_v39 = vld [vmem:[%s8066_s24 + $0xab4] sm:$0xf0] }
 0x602   : > { %v4777_v38 = vpop.f32.mrf.mxu3 }
 0x603   : > { %v5118_v58 = vmax.f32 %v4395_v30, 0.0  ;;  %v9179_v24 = vadd.f32 %v4777_v38, %v3788_v36 }
 0x605   : > { %v5509_v15 = vadd.f32 %v5508_v56, %v5118_v58  ;;  %9766 = vst [vmem:[#allocation101_spill] sm:$0xff] %v9179_v24  ;;  %v7784_v58 = vld [vmem:[%s8066_s24 + $0x604] sm:$0xf] }
 0x606   : > { %v4402_v59 = vpop.f32.mrf.mxu1 }
 0x608   : > { %v3408_v8 = vpop.f32.mrf.mxu0  ;;  %v3790_v49 = vpop.f32.mrf.mxu2 }
 0x609   : > { %7489 = vmatmul.msk.bf16.gmra.mxu1 %vm2373_vm2, %v6557_v46  ;;  %v4398_v30 = vadd.f32 %v4397_v52, %v3408_v8  ;;  %v7160_v52 = vld [vmem:[%s8066_s24 + $0xab0] sm:$0xf] }
 0x60a   : > { %v4779_v7 = vpop.f32.mrf.mxu3 }
 0x60b   : > { %v5119_v51 = vmax.f32 %v4398_v30, 0.0  ;;  %3447 = vmatmul.bf16.gmra.mxu0 %v6545_v0  ;;  %v9183_v46 = vadd.f32 %v4779_v7, %v3790_v49  ;;  %v7161_v0 = vor.u32 %v7935_v39, %v7160_v52  ;;  %v7162_v30 = vld [vmem:[%s8066_s24 + $0xab8] sm:$0xf0] }
 0x60c   : > { %v7165_v36 = vor.u32 %v7934_v18, %v7162_v30 }
 0x60d   : > { %v5510_v56 = vadd.f32 %v5509_v15, %v5119_v51  ;;  %9767 = vst [vmem:[#allocation102_spill] sm:$0xff] %v9183_v46  ;;  %v6565_v15 = vor.u32 %v7784_v58, %v6562_v35  ;;  %v6552_v51 = vld [vmem:[%s8066_s24 + $0x5f0] sm:$0xf]  ;;  %3832 = vmatmul.bf16.gmra.mxu2 %v7161_v0  ;;  %v6570_v0 = vld [vmem:[%s8066_s24 + $0x618] sm:$0xf0] }
 0x60e   : > { %v4404_v47 = vpop.f32.mrf.mxu1  ;;  %v7785_v46 = vld [vmem:[%s8066_s24 + $0x604] sm:$0xf0] }
 0x60f   : > { %7565 = vmatmul.msk.bf16.gmra.mxu3 %vm2373_vm2, %v7165_v36  ;;  %v7936_v36 = vld [vmem:[%s8066_s24 + $0xac4] sm:$0xf] }
 0x610   : > { %v3410_v42 = vpop.f32.mrf.mxu0  ;;  %v3793_v49 = vpop.f32.mrf.mxu2 }
 0x611   : > { %v4400_v48 = vadd.f32 %v4399_v9, %v3410_v42  ;;  %v6553_v9 = vor.u32 %v7783_v16, %v6552_v51  ;;  %v7937_v51 = vld [vmem:[%s8066_s24 + $0xac4] sm:$0xf0] }
 0x612   : > { %v4782_v58 = vpop.f32.mrf.mxu3 }
 0x613   : > { %v5120_v8 = vmax.f32 %v4400_v48, 0.0  ;;  %v9193_v52 = vadd.f32 %v4782_v58, %v3793_v49 }
 0x615   : > { %v5511_v38 = vadd.f32 %v5510_v56, %v5120_v8  ;;  %9768 = vst [vmem:[#allocation103_spill] sm:$0xff] %v9193_v52  ;;  %v7786_v8 = vld [vmem:[%s8066_s24 + $0x614] sm:$0xf] }
 0x616   : > { %v4407_v24 = vpop.f32.mrf.mxu1 }
 0x618   : > { %v3413_v42 = vpop.f32.mrf.mxu0  ;;  %v3795_v16 = vpop.f32.mrf.mxu2 }
 0x619   : > { %7490 = vmatmul.msk.bf16.gmra.mxu1 %vm2373_vm2, %v6565_v15  ;;  %v4403_v48 = vadd.f32 %v4402_v59, %v3413_v42  ;;  %v7168_v59 = vld [vmem:[%s8066_s24 + $0xac0] sm:$0xf] }
 0x61a   : > { %v4784_v30 = vpop.f32.mrf.mxu3 }
 0x61b   : > { %v5121_v35 = vmax.f32 %v4403_v48, 0.0  ;;  %3452 = vmatmul.bf16.gmra.mxu0 %v6553_v9  ;;  %v9197_v15 = vadd.f32 %v4784_v30, %v3795_v16  ;;  %v7169_v9 = vor.u32 %v7937_v51, %v7168_v59  ;;  %v7170_v48 = vld [vmem:[%s8066_s24 + $0xac8] sm:$0xf0] }
 0x61c   : > { %v7173_v49 = vor.u32 %v7936_v36, %v7170_v48 }
 0x61d   : > { %v5512_v56 = vadd.f32 %v5511_v38, %v5121_v35  ;;  %9769 = vst [vmem:[#allocation104_spill] sm:$0xff] %v9197_v15  ;;  %v6573_v38 = vor.u32 %v7786_v8, %v6570_v0  ;;  %v6560_v35 = vld [vmem:[%s8066_s24 + $0x600] sm:$0xf]  ;;  %3837 = vmatmul.bf16.gmra.mxu2 %v7169_v9  ;;  %v6578_v9 = vld [vmem:[%s8066_s24 + $0x628] sm:$0xf0] }
 0x61e   : > { %v4409_v7 = vpop.f32.mrf.mxu1  ;;  %v7787_v15 = vld [vmem:[%s8066_s24 + $0x614] sm:$0xf0] }
 0x61f   : > { %7566 = vmatmul.msk.bf16.gmra.mxu3 %vm2373_vm2, %v7173_v49  ;;  %v7938_v49 = vld [vmem:[%s8066_s24 + $0xad4] sm:$0xf] }
 0x620   : > { %v3415_v39 = vpop.f32.mrf.mxu0  ;;  %v3798_v16 = vpop.f32.mrf.mxu2 }
 0x621   : > { %v4405_v18 = vadd.f32 %v4404_v47, %v3415_v39  ;;  %v6561_v47 = vor.u32 %v7785_v46, %v6560_v35  ;;  %v7939_v35 = vld [vmem:[%s8066_s24 + $0xad4] sm:$0xf0] }
 0x622   : > { %v4787_v8 = vpop.f32.mrf.mxu3 }
 0x623   : > { %v5122_v42 = vmax.f32 %v4405_v18, 0.0  ;;  %v9207_v59 = vadd.f32 %v4787_v8, %v3798_v16 }
 0x625   : > { %v5513_v58 = vadd.f32 %v5512_v56, %v5122_v42  ;;  %9770 = vst [vmem:[#allocation105_spill] sm:$0xff] %v9207_v59  ;;  %v7788_v42 = vld [vmem:[%s8066_s24 + $0x624] sm:$0xf] }
 0x626   : > { %v4412_v52 = vpop.f32.mrf.mxu1 }
 0x628   : > { %v3418_v39 = vpop.f32.mrf.mxu0  ;;  %v3800_v46 = vpop.f32.mrf.mxu2 }
 0x629   : > { %7491 = vmatmul.msk.bf16.gmra.mxu1 %vm2373_vm2, %v6573_v38  ;;  %v4408_v18 = vadd.f32 %v4407_v24, %v3418_v39  ;;  %v7176_v24 = vld [vmem:[%s8066_s24 + $0xad0] sm:$0xf] }
 0x62a   : > { %v4789_v48 = vpop.f32.mrf.mxu3 }
 0x62b   : > { %v5123_v0 = vmax.f32 %v4408_v18, 0.0  ;;  %3457 = vmatmul.bf16.gmra.mxu0 %v6561_v47  ;;  %v9211_v38 = vadd.f32 %v4789_v48, %v3800_v46  ;;  %v7177_v47 = vor.u32 %v7939_v35, %v7176_v24  ;;  %v7178_v18 = vld [vmem:[%s8066_s24 + $0xad8] sm:$0xf0] }
 0x62c   : > { %v7181_v16 = vor.u32 %v7938_v49, %v7178_v18  ;;  %v7184_v18 = vld [vmem:[%s8066_s24 + $0xae0] sm:$0xf] }
 0x62d   : > { %v5514_v56 = vadd.f32 %v5513_v58, %v5123_v0  ;;  %9771 = vst [vmem:[#allocation106_spill] sm:$0xff] %v9211_v38  ;;  %v6581_v58 = vor.u32 %v7788_v42, %v6578_v9  ;;  %v6568_v0 = vld [vmem:[%s8066_s24 + $0x610] sm:$0xf]  ;;  %3842 = vmatmul.bf16.gmra.mxu2 %v7177_v47 }
 0x62e   : > { %v4414_v30 = vpop.f32.mrf.mxu1 }
 0x62f   : > { %7567 = vmatmul.msk.bf16.gmra.mxu3 %vm2373_vm2, %v7181_v16 }
 0x630   : > { %v3420_v51 = vpop.f32.mrf.mxu0  ;;  %v3803_v46 = vpop.f32.mrf.mxu2 }
 0x631   : > { %v4410_v36 = vadd.f32 %v4409_v7, %v3420_v51  ;;  %v6569_v7 = vor.u32 %v7787_v15, %v6568_v0  ;;  %v7940_v0 = vld [vmem:[%s8066_s24 + $0xae4] sm:$0xf] }
 0x632   : > { %v4792_v48 = vpop.f32.mrf.mxu3 }
 0x633   : > { %v5124_v39 = vmax.f32 %v4410_v36, 0.0 }
 0x635   : > { %v5515_v8 = vadd.f32 %v5514_v56, %v5124_v39  ;;  %v9221_v56 = vadd.f32 %v4792_v48, %v3803_v46 }
 0x636   : > { %v4417_v59 = vpop.f32.mrf.mxu1 }
 0x637   : > { %9772 = vst [vmem:[#allocation107_spill] sm:$0xff] %v9221_v56 }
 0x638   : > { %v3423_v51 = vpop.f32.mrf.mxu0  ;;  %v3805_v49 = vpop.f32.mrf.mxu2 }
 0x639   : > { %7492 = vmatmul.msk.bf16.gmra.mxu1 %vm2373_vm2, %v6581_v58  ;;  %v4413_v36 = vadd.f32 %v4412_v52, %v3423_v51  ;;  %v7941_v58 = vld [vmem:[%s8066_s24 + $0xae4] sm:$0xf0]  ;;  %v7186_v52 = vld [vmem:[%s8066_s24 + $0xae8] sm:$0xf0] }
 0x63a   : > { %v4794_v15 = vpop.f32.mrf.mxu3  ;;  %v7185_v38 = vor.u32 %v7941_v58, %v7184_v18  ;;  %v7189_v51 = vor.u32 %v7940_v0, %v7186_v52  ;;  %v7943_v0 = vld [vmem:[%s8066_s24 + $0xaf4] sm:$0xf0] }
 0x63b   : > { %v5125_v42 = vmax.f32 %v4413_v36, 0.0  ;;  %3462 = vmatmul.bf16.gmra.mxu0 %v6569_v7  ;;  %v9223_v47 = vadd.f32 %v4794_v15, %v3805_v49 }
 0x63d   : > { %v5516_v9 = vadd.f32 %v5515_v8, %v5125_v42  ;;  %9773 = vst [vmem:[#allocation108_spill] sm:$0xff] %v9223_v47  ;;  %3847 = vmatmul.bf16.gmra.mxu2 %v7185_v38  ;;  %v7192_v38 = vld [vmem:[%s8066_s24 + $0xaf0] sm:$0xf]  ;;  %v7194_v47 = vld [vmem:[%s8066_s24 + $0xaf8] sm:$0xf0] }
 0x63e   : > { %v4419_v24 = vpop.f32.mrf.mxu1 }
 0x63f   : > { %7568 = vmatmul.msk.bf16.gmra.mxu3 %vm2373_vm2, %v7189_v51  ;;  %v7193_v51 = vor.u32 %v7943_v0, %v7192_v38  ;;  %v7200_v0 = vld [vmem:[%s8066_s24 + $0xb00] sm:$0xf] }
 0x640   : > { %v3425_v35 = vpop.f32.mrf.mxu0 }
 0x641   : > { %v4415_v39 = vadd.f32 %v4414_v30, %v3425_v35  ;;  %v3808_v30 = vpop.f32.mrf.mxu2 }
 0x642   : > { %v4797_v46 = vpop.f32.mrf.mxu3 }
 0x643   : > { %v5126_v16 = vmax.f32 %v4415_v39, 0.0  ;;  %v9230_v49 = vadd.f32 %v4797_v46, %v3808_v30 }
 0x645   : > { %v5517_v23 = vadd.f32 %v5516_v9, %v5126_v16  ;;  %9774 = vst [vmem:[#allocation109_spill] sm:$0xff] %v9230_v49  ;;  %v7942_v16 = vld [vmem:[%s8066_s24 + $0xaf4] sm:$0xf] }
 0x646   : > { %v4422_v36 = vpop.f32.mrf.mxu1 }
 0x648   : > { %v3428_v8 = vpop.f32.mrf.mxu0 }
 0x649   : > { %v4418_v7 = vadd.f32 %v4417_v59, %v3428_v8  ;;  %v3810_v15 = vpop.f32.mrf.mxu2  ;;  %v7197_v59 = vor.u32 %v7942_v16, %v7194_v47  ;;  %v7945_v16 = vld [vmem:[%s8066_s24 + $0xb04] sm:$0xf0] }
 0x64a   : > { %v4799_v18 = vpop.f32.mrf.mxu3 }
 0x64b   : > { %v5127_v48 = vmax.f32 %v4418_v7, 0.0  ;;  %v9232_v58 = vadd.f32 %v4799_v18, %v3810_v15 }
 0x64d   : > { %v5518_v42 = vadd.f32 %v5517_v23, %v5127_v48  ;;  %9775 = vst [vmem:[#allocation110_spill] sm:$0xff] %v9232_v58  ;;  %3852 = vmatmul.bf16.gmra.mxu2 %v7193_v51  ;;  %v7202_v58 = vld [vmem:[%s8066_s24 + $0xb08] sm:$0xf0] }
 0x64e   : > { %v4424_v35 = vpop.f32.mrf.mxu1 }
 0x64f   : > { %7569 = vmatmul.msk.bf16.gmra.mxu3 %vm2373_vm2, %v7197_v59  ;;  %v7201_v59 = vor.u32 %v7945_v16, %v7200_v0  ;;  %v7208_v16 = vld [vmem:[%s8066_s24 + $0xb10] sm:$0xf] }
 0x650   : > { %v3430_v39 = vpop.f32.mrf.mxu0 }
 0x651   : > { %v4420_v9 = vadd.f32 %v4419_v24, %v3430_v39  ;;  %v3813_v24 = vpop.f32.mrf.mxu2 }
 0x652   : > { %v4802_v7 = vpop.f32.mrf.mxu3 }
 0x653   : > { %v5128_v52 = vmax.f32 %v4420_v9, 0.0  ;;  %v9239_v15 = vadd.f32 %v4802_v7, %v3813_v24 }
 0x655   : > { %v5519_v8 = vadd.f32 %v5518_v42, %v5128_v52  ;;  %9776 = vst [vmem:[#allocation111_spill] sm:$0xff] %v9239_v15  ;;  %v7944_v52 = vld [vmem:[%s8066_s24 + $0xb04] sm:$0xf] }
 0x656   : > { %v4427_v56 = vpop.f32.mrf.mxu1 }
 0x658   : > { %v3433_v23 = vpop.f32.mrf.mxu0 }
 0x659   : > { %v4423_v30 = vadd.f32 %v4422_v36, %v3433_v23  ;;  %v3815_v47 = vpop.f32.mrf.mxu2  ;;  %v7205_v36 = vor.u32 %v7944_v52, %v7202_v58  ;;  %v7947_v52 = vld [vmem:[%s8066_s24 + $0xb14] sm:$0xf0] }
 0x65a   : > { %v4804_v18 = vpop.f32.mrf.mxu3 }
 0x65b   : > { %v5129_v46 = vmax.f32 %v4423_v30, 0.0  ;;  %v9241_v38 = vadd.f32 %v4804_v18, %v3815_v47 }
 0x65d   : > { %v5520_v48 = vadd.f32 %v5519_v8, %v5129_v46  ;;  %9777 = vst [vmem:[#allocation112_spill] sm:$0xff] %v9241_v38  ;;  %3857 = vmatmul.bf16.gmra.mxu2 %v7201_v59 }
 0x65e   : > { %v4429_v39 = vpop.f32.mrf.mxu1 }
 0x65f   : > { %7570 = vmatmul.msk.bf16.gmra.mxu3 %vm2373_vm2, %v7205_v36  ;;  %v7209_v36 = vor.u32 %v7947_v52, %v7208_v16 }
 0x660   : > { %v3435_v9 = vpop.f32.mrf.mxu0 }
 0x661   : > { %v4425_v42 = vadd.f32 %v4424_v35, %v3435_v9  ;;  %v3818_v35 = vpop.f32.mrf.mxu2 }
 0x662   : > { %v4807_v30 = vpop.f32.mrf.mxu3 }
 0x663   : > { %v5130_v51 = vmax.f32 %v4425_v42, 0.0  ;;  %v9250_v47 = vadd.f32 %v4807_v30, %v3818_v35 }
 0x665   : > { %v5521_v23 = vadd.f32 %v5520_v48, %v5130_v51  ;;  %9778 = vst [vmem:[#allocation113_spill] sm:$0xff] %v9250_v47  ;;  %v7946_v51 = vld [vmem:[%s8066_s24 + $0xb14] sm:$0xf] }
 0x666   : > { %v4432_v49 = vpop.f32.mrf.mxu1 }
 0x668   : > { %v3438_v8 = vpop.f32.mrf.mxu0 }
 0x669   : > { %v4428_v24 = vadd.f32 %v4427_v56, %v3438_v8  ;;  %v3820_v48 = vpop.f32.mrf.mxu2  ;;  %v7210_v56 = vld [vmem:[%s8066_s24 + $0xb18] sm:$0xf0] }
 0x66a   : > { %v4809_v18 = vpop.f32.mrf.mxu3  ;;  %v7213_v8 = vor.u32 %v7946_v51, %v7210_v56  ;;  %v7216_v51 = vld [vmem:[%s8066_s24 + $0xb20] sm:$0xf] }
 0x66b   : > { %v5131_v7 = vmax.f32 %v4428_v24, 0.0  ;;  %v9252_v0 = vadd.f32 %v4809_v18, %v3820_v48 }
 0x66d   : > { %v5522_v46 = vadd.f32 %v5521_v23, %v5131_v7  ;;  %9779 = vst [vmem:[#allocation114_spill] sm:$0xff] %v9252_v0  ;;  %3862 = vmatmul.bf16.gmra.mxu2 %v7209_v36  ;;  %v7948_v36 = vld [vmem:[%s8066_s24 + $0xb24] sm:$0xf]  ;;  %v7950_v0 = vld [vmem:[%s8066_s24 + $0xb34] sm:$0xf] }
 0x66e   : > { %v9248_v9 = vpop.f32.mrf.mxu1 }
 0x66f   : > { %7571 = vmatmul.msk.bf16.gmra.mxu3 %vm2373_vm2, %v7213_v8  ;;  %v7218_v8 = vld [vmem:[%s8066_s24 + $0xb28] sm:$0xf0] }
 0x670   : > { %v3440_v58 = vpop.f32.mrf.mxu0 }
 0x671   : > { %v4430_v42 = vadd.f32 %v4429_v39, %v3440_v58  ;;  %v3823_v35 = vpop.f32.mrf.mxu2 }
 0x672   : > { %v4812_v30 = vpop.f32.mrf.mxu3 }
 0x673   : > { %v5132_v59 = vmax.f32 %v4430_v42, 0.0  ;;  %v9263_v42 = vadd.f32 %v4812_v30, %v3823_v35 }
 0x675   : > { %v5523_v38 = vadd.f32 %v5522_v46, %v5132_v59  ;;  %9780 = vst [vmem:[#allocation115_spill] sm:$0xff] %v9263_v42  ;;  %v7949_v59 = vld [vmem:[%s8066_s24 + $0xb24] sm:$0xf0] }
 0x676   : > { %v9258_v23 = vpop.f32.mrf.mxu1  ;;  %v7217_v56 = vor.u32 %v7949_v59, %v7216_v51  ;;  %v7224_v51 = vld [vmem:[%s8066_s24 + $0xb30] sm:$0xf]  ;;  %v7951_v59 = vld [vmem:[%s8066_s24 + $0xb34] sm:$0xf0] }
 0x678   : > { %v3443_v39 = vpop.f32.mrf.mxu0 }
 0x679   : > { %v4433_v24 = vadd.f32 %v4432_v49, %v3443_v39  ;;  %v3825_v18 = vpop.f32.mrf.mxu2  ;;  %v7221_v49 = vor.u32 %v7948_v36, %v7218_v8  ;;  %v7225_v36 = vor.u32 %v7951_v59, %v7224_v51  ;;  %v7232_v51 = vld [vmem:[%s8066_s24 + $0xb40] sm:$0xf]  ;;  %v7953_v59 = vld [vmem:[%s8066_s24 + $0xb44] sm:$0xf0] }
 0x67a   : > { %v4814_v16 = vpop.f32.mrf.mxu3 }
 0x67b   : > { %v5133_v7 = vmax.f32 %v4433_v24, 0.0  ;;  %v9265_v52 = vadd.f32 %v4814_v16, %v3825_v18 }
 0x67d   : > { %v9261_v58 = vadd.f32 %v5523_v38, %v5133_v7  ;;  %9781 = vst [vmem:[#allocation116_spill] sm:$0xff] %v9265_v52  ;;  %3867 = vmatmul.bf16.gmra.mxu2 %v7217_v56  ;;  %v7226_v56 = vld [vmem:[%s8066_s24 + $0xb38] sm:$0xf0] }
 0x67e   : > { %v4439_v48 = vpop.f32.mrf.mxu1  ;;  %v7229_v8 = vor.u32 %v7950_v0, %v7226_v56  ;;  %v7233_v0 = vor.u32 %v7953_v59, %v7232_v51  ;;  %v7234_v56 = vld [vmem:[%s8066_s24 + $0xb48] sm:$0xf0] }
 0x67f   : > { %7572 = vmatmul.msk.bf16.gmra.mxu3 %vm2373_vm2, %v7221_v49  ;;  %v7237_v1 = vor.u32 %v7952_v11, %v7234_v56 }
 0x680   : > { %v3445_v46 = vpop.f32.mrf.mxu0 }
 0x681   : > { %v3828_v35 = vpop.f32.mrf.mxu2 }
 0x682   : > { %v4817_v24 = vpop.f32.mrf.mxu3 }
 0x683   : > { %v9272_v7 = vadd.f32 %v4817_v24, %v3828_v35 }
 0x685   : > { %9782 = vst [vmem:[#allocation117_spill] sm:$0xff] %v9272_v7 }
 0x686   : > { %v4442_v39 = vpop.f32.mrf.mxu1 }
 0x688   : > { %v3448_v38 = vpop.f32.mrf.mxu0 }
 0x689   : > { %v3830_v16 = vpop.f32.mrf.mxu2 }
 0x68a   : > { %v4819_v52 = vpop.f32.mrf.mxu3 }
 0x68b   : > { %v9274_v42 = vadd.f32 %v4819_v52, %v3830_v16 }
 0x68d   : > { %9783 = vst [vmem:[#allocation118_spill] sm:$0xff] %v9274_v42  ;;  %3872 = vmatmul.bf16.gmra.mxu2 %v7225_v36 }
 0x68e   : > { %v4444_v30 = vpop.f32.mrf.mxu1 }
 0x68f   : > { %7573 = vmatmul.msk.bf16.gmra.mxu3 %vm2373_vm2, %v7229_v8 }
 0x690   : > { %v3450_v18 = vpop.f32.mrf.mxu0 }
 0x691   : > { %v3833_v24 = vpop.f32.mrf.mxu2  ;;  %v4440_v11 = vadd.f32 %v4439_v48, %v3450_v18 }
 0x692   : > { %v4822_v7 = vpop.f32.mrf.mxu3 }
 0x693   : > { %v9281_v52 = vadd.f32 %v4822_v7, %v3833_v24 }
 0x695   : > { %9784 = vst [vmem:[#allocation119_spill] sm:$0xff] %v9281_v52  ;;  %v4435_v52 = vadd.f32 %v9248_v9, %v3445_v46  ;;  %v7242_v9 = vld [vmem:[%s8066_s24 + $0xb58] sm:$0xf0] }
 0x696   : > { %v4447_v49 = vpop.f32.mrf.mxu1  ;;  %v7245_v46 = vor.u32 %v7954_v44, %v7242_v9  ;;  %v7956_v9 = vld [vmem:[%s8066_s24 + $0xb64] sm:$0xf] }
 0x697   : > { %v5134_v59 = vmax.f32 %v4435_v52, 0.0 }
 0x698   : > { %v3453_v35 = vpop.f32.mrf.mxu0 }
 0x699   : > { %v3835_v42 = vpop.f32.mrf.mxu2  ;;  %v4443_v2 = vadd.f32 %v4442_v39, %v3453_v35  ;;  %v5525_v14 = vadd.f32 %v9261_v58, %v5134_v59 }
 0x69a   : > { %v4824_v15 = vpop.f32.mrf.mxu3 }
 0x69b   : > { %v9283_v13 = vadd.f32 %v4824_v15, %v3835_v42  ;;  %v4438_v42 = vadd.f32 %v9258_v23, %v3448_v38  ;;  %v5136_v23 = vmax.f32 %v4440_v11, 0.0  ;;  %v5137_v18 = vmax.f32 %v4443_v2, 0.0 }
 0x69d   : > { %9785 = vst [vmem:[#allocation120_spill] sm:$0xff] %v9283_v13  ;;  %3877 = vmatmul.bf16.gmra.mxu2 %v7233_v0  ;;  %v5135_v20 = vmax.f32 %v4438_v42, 0.0 }
 0x69e   : > { %v4449_v47 = vpop.f32.mrf.mxu1 }
 0x69f   : > { %7574 = vmatmul.msk.bf16.gmra.mxu3 %vm2373_vm2, %v7237_v1  ;;  %v7240_v1 = vld [vmem:[%s8066_s24 + $0xb50] sm:$0xf]  ;;  %v5526_v48 = vadd.f32 %v5525_v14, %v5135_v20 }
 0x6a0   : > { %v3455_v16 = vpop.f32.mrf.mxu0  ;;  %v7241_v34 = vor.u32 %v7955_v19, %v7240_v1  ;;  %v7248_v1 = vld [vmem:[%s8066_s24 + $0xb60] sm:$0xf] }
 0x6a1   : > { %v3838_v8 = vpop.f32.mrf.mxu2  ;;  %v4445_v38 = vadd.f32 %v4444_v30, %v3455_v16 }
 0x6a2   : > { %v4827_v24 = vpop.f32.mrf.mxu3 }
 0x6a3   : > { %v9292_v56 = vadd.f32 %v4827_v24, %v3838_v8 }
 0x6a6   : > { %v4452_v36 = vpop.f32.mrf.mxu1 }
 0x6a8   : > { %v3458_v7 = vpop.f32.mrf.mxu0 }
 0x6a9   : > { %v3840_v51 = vpop.f32.mrf.mxu2  ;;  %v4448_v52 = vadd.f32 %v4447_v49, %v3458_v7 }
 0x6aa   : > { %v4829_v0 = vpop.f32.mrf.mxu3 }
 0x6ab   : > { %v9294_v6 = vadd.f32 %v4829_v0, %v3840_v51  ;;  %v5527_v51 = vadd.f32 %v5526_v48, %v5136_v23  ;;  %v5138_v0 = vmax.f32 %v4445_v38, 0.0  ;;  %v5139_v44 = vmax.f32 %v4448_v52, 0.0 }
 0x6ad   : > { %3882 = vmatmul.bf16.gmra.mxu2 %v7241_v34  ;;  %v5528_v19 = vadd.f32 %v5527_v51, %v5137_v18  ;;  %v7250_v18 = vld [vmem:[%s8066_s24 + $0xb68] sm:$0xf0] }
 0x6ae   : > { %v4454_v15 = vpop.f32.mrf.mxu1  ;;  %v7253_v52 = vor.u32 %v7956_v9, %v7250_v18 }
 0x6af   : > { %7575 = vmatmul.msk.bf16.gmra.mxu3 %vm2373_vm2, %v7245_v46  ;;  %v5529_v30 = vadd.f32 %v5528_v19, %v5138_v0  ;;  %v5147_v19 = vmax.f32 %v8311_v25, 0.0 }
 0x6b0   : > { %v3460_v13 = vpop.f32.mrf.mxu0 }
 0x6b1   : > { %v3843_v24 = vpop.f32.mrf.mxu2  ;;  %v4450_v42 = vadd.f32 %v4449_v47, %v3460_v13  ;;  %v5530_v34 = vadd.f32 %v5529_v30, %v5139_v44 }
 0x6b2   : > { %v4832_v39 = vpop.f32.mrf.mxu3 }
 0x6b3   : > { %v5140_v35 = vmax.f32 %v4450_v42, 0.0  ;;  %v9303_v13 = vadd.f32 %v4832_v39, %v3843_v24  ;;  %v5145_v24 = vmax.f32 %v8297_v61, 0.0 }
 0x6b5   : > { %v5531_v20 = vadd.f32 %v5530_v34, %v5140_v35  ;;  %v5149_v34 = vmax.f32 %v8325_v55, 0.0  ;;  %v5152_v55 = vmax.f32 %v8343_v29, 0.0 }
 0x6b6   : > { %v4457_v41 = vpop.f32.mrf.mxu1 }
 0x6b7   : > { %v4458_v49 = vadd.f32 %v4457_v41, %v8283_v31 }
 0x6b8   : > { %v3463_v8 = vpop.f32.mrf.mxu0 }
 0x6b9   : > { %v4453_v58 = vadd.f32 %v4452_v36, %v3463_v8  ;;  %v3845_v2 = vpop.f32.mrf.mxu2  ;;  %v7957_v36 = vld [vmem:[%s8066_s24 + $0xb64] sm:$0xf0]  ;;  %v5143_v8 = vmax.f32 %v4458_v49, 0.0  ;;  %v5150_v49 = vmax.f32 %v8329_v63, 0.0 }
 0x6ba   : > { %v4834_v47 = vpop.f32.mrf.mxu3  ;;  %v7249_v48 = vor.u32 %v7957_v36, %v7248_v1 }
 0x6bb   : > { %v5141_v16 = vmax.f32 %v4453_v58, 0.0  ;;  %v9305_v11 = vadd.f32 %v4834_v47, %v3845_v2  ;;  %v5148_v58 = vmax.f32 %v8315_v33, 0.0  ;;  %v7256_v2 = vld [vmem:[%s8066_s24 + $0xb70] sm:$0xf]  ;;  %v7258_v47 = vld [vmem:[%s8066_s24 + $0xb78] sm:$0xf0] }
 0x6bc   : > { %v5151_v33 = vmax.f32 %v8339_v21, 0.0  ;;  %v5155_v21 = vmax.f32 %v8367_v22, 0.0 }
 0x6bd   : > { %v5532_v46 = vadd.f32 %v5531_v20, %v5141_v16  ;;  %3887 = vmatmul.bf16.gmra.mxu2 %v7249_v48  ;;  %v7959_v20 = vld [vmem:[%s8066_s24 + $0xb74] sm:$0xf0]  ;;  %v5154_v48 = vmax.f32 %v8357_v62, 0.0  ;;  %v7960_v62 = vld [vmem:[%s8066_s24 + $0xb84] sm:$0xf] }
 0x6be   : > { %v4459_v59 = vpop.f32.mrf.mxu1 }
 0x6bf   : > { %v4460_v23 = vadd.f32 %v4459_v59, %v8285_v37  ;;  %7576 = vmatmul.msk.bf16.gmra.mxu3 %vm2373_vm2, %v7253_v52  ;;  %v5146_v37 = vmax.f32 %v8301_v4, 0.0  ;;  %v7958_v4 = vld [vmem:[%s8066_s24 + $0xb74] sm:$0xf] }
 0x6c0   : > { %v3465_v14 = vpop.f32.mrf.mxu0  ;;  %v7261_v1 = vor.u32 %v7958_v4, %v7258_v47  ;;  %v5164_v4 = vmax.f32 %v8427_v50, 0.0  ;;  %v5167_v50 = vmax.f32 %v8451_v60, 0.0  ;;  %v5171_v60 = vmax.f32 %v8479_v26, 0.0 }
 0x6c1   : > { %v4455_v7 = vadd.f32 %v4454_v15, %v3465_v14  ;;  %v5144_v31 = vmax.f32 %v4460_v23, 0.0  ;;  %v3848_v15 = vpop.f32.mrf.mxu2  ;;  %v5153_v23 = vmax.f32 %v8353_v53, 0.0 }
 0x6c2   : > { %v4837_v42 = vpop.f32.mrf.mxu3 }
 0x6c3   : > { %v5142_v38 = vmax.f32 %v4455_v7, 0.0  ;;  %v9318_v59 = vadd.f32 %v4837_v42, %v3848_v15  ;;  %v7257_v7 = vor.u32 %v7959_v20, %v7256_v2  ;;  %v7961_v42 = vld [vmem:[%s8066_s24 + $0xb84] sm:$0xf0] }
 0x6c5   : > { %v5533_v51 = vadd.f32 %v5532_v46, %v5142_v38 }
 0x6c7   : > { %v5534_v41 = vadd.f32 %v5533_v51, %v5143_v8  ;;  %v5156_v8 = vmax.f32 %v8371_v32, 0.0  ;;  %v5159_v32 = vmax.f32 %v8395_v28, 0.0  ;;  %v5163_v28 = vmax.f32 %v8423_v43, 0.0 }
 0x6c9   : > { %v5535_v0 = vadd.f32 %v5534_v41, %v5144_v31  ;;  %v3850_v35 = vpop.f32.mrf.mxu2  ;;  %v5157_v31 = vmax.f32 %v8381_v57, 0.0  ;;  %v5160_v57 = vmax.f32 %v8399_v40, 0.0 }
 0x6ca   : > { %v4839_v61 = vpop.f32.mrf.mxu3 }
 0x6cb   : > { %v5536_v39 = vadd.f32 %v5535_v0, %v5145_v24  ;;  %v9320_v14 = vadd.f32 %v4839_v61, %v3850_v35  ;;  %v7264_v0 = vld [vmem:[%s8066_s24 + $0xb80] sm:$0xf]  ;;  %v5162_v61 = vmax.f32 %v8413_v12, 0.0  ;;  %v7962_v12 = vld [vmem:[%s8066_s24 + $0xb94] sm:$0xf] }
 0x6cd   : > { %v5537_v44 = vadd.f32 %v5536_v39, %v5146_v37  ;;  %3892 = vmatmul.bf16.gmra.mxu2 %v7257_v7  ;;  %v5158_v37 = vmax.f32 %v8385_v3, 0.0  ;;  %v7265_v39 = vor.u32 %v7961_v42, %v7264_v0 }
 0x6cf   : > { %v5538_v30 = vadd.f32 %v5537_v44, %v5147_v19  ;;  %7577 = vmatmul.msk.bf16.gmra.mxu3 %vm2373_vm2, %v7261_v1  ;;  %v7266_v19 = vld [vmem:[%s8066_s24 + $0xb88] sm:$0xf0] }
 0x6d0   : > { %v7269_v44 = vor.u32 %v7960_v62, %v7266_v19  ;;  %v9788_v19 = vld [vmem:[#allocation4_spill] sm:$0xff] }
 0x6d1   : > { %v5539_v16 = vadd.f32 %v5538_v30, %v5148_v58  ;;  %v3853_v46 = vpop.f32.mrf.mxu2 }
 0x6d2   : > { %v4842_v63 = vpop.f32.mrf.mxu3 }
 0x6d3   : > { %v5540_v25 = vadd.f32 %v5539_v16, %v5149_v34  ;;  %v9335_v15 = vadd.f32 %v4842_v63, %v3853_v46  ;;  %v5161_v34 = vmax.f32 %v8409_v5, 0.0  ;;  %v7274_v46 = vld [vmem:[%s8066_s24 + $0xb98] sm:$0xf0] }
 0x6d5   : > { %v5541_v36 = vadd.f32 %v5540_v25, %v5150_v49  ;;  %v5165_v25 = vmax.f32 %v8437_v17, 0.0  ;;  %v5168_v17 = vmax.f32 %v8455_v10, 0.0 }
 0x6d7   : > { %v5542_v9 = vadd.f32 %v5541_v36, %v5151_v33  ;;  %v7272_v33 = vld [vmem:[%s8066_s24 + $0xb90] sm:$0xf]  ;;  %v7963_v36 = vld [vmem:[%s8066_s24 + $0xb94] sm:$0xf0] }
 0x6d9   : > { %v5543_v38 = vadd.f32 %v5542_v9, %v5152_v55  ;;  %v3855_v29 = vpop.f32.mrf.mxu2  ;;  %v5166_v55 = vmax.f32 %v8441_v27, 0.0  ;;  %v7273_v9 = vor.u32 %v7963_v36, %v7272_v33 }
 0x6da   : > { %v4844_v53 = vpop.f32.mrf.mxu3 }
 0x6db   : > { %v5544_v18 = vadd.f32 %v5543_v38, %v5153_v23  ;;  %v9337_v24 = vadd.f32 %v4844_v53, %v3855_v29  ;;  %v7277_v23 = vor.u32 %v7962_v12, %v7274_v46  ;;  %v9786_v29 = vld [vmem:[#allocation2_spill] sm:$0xff]  ;;  %v9787_v53 = vld [vmem:[#allocation3_spill] sm:$0xff] }
 0x6dc   : > { %v5173_v0 = vmax.f32 %v9787_v53, 0.0  ;;  %v9794_v12 = vld [vmem:[#allocation10_spill] sm:$0xff]  ;;  %v9795_v46 = vld [vmem:[#allocation11_spill] sm:$0xff] }
 0x6dd   : > { %v5545_v52 = vadd.f32 %v5544_v18, %v5154_v48  ;;  %3897 = vmatmul.bf16.gmra.mxu2 %v7265_v39  ;;  %v5169_v18 = vmax.f32 %v8465_v45, 0.0  ;;  %v7965_v39 = vld [vmem:[%s8066_s24 + $0xba4] sm:$0xf0]  ;;  %v9798_v53 = vld [vmem:[#allocation14_spill] sm:$0xff] }
 0x6df   : > { %v5546_v51 = vadd.f32 %v5545_v52, %v5155_v21  ;;  %7578 = vmatmul.msk.bf16.gmra.mxu3 %vm2373_vm2, %v7269_v44  ;;  %v5170_v52 = vmax.f32 %v8469_v54, 0.0  ;;  %v7964_v54 = vld [vmem:[%s8066_s24 + $0xba4] sm:$0xf]  ;;  %v5174_v44 = vmax.f32 %v9788_v19, 0.0 }
 0x6e1   : > { %v5547_v41 = vadd.f32 %v5546_v51, %v5156_v8  ;;  %v3858_v35 = vpop.f32.mrf.mxu2 }
 0x6e2   : > { %v4847_v3 = vpop.f32.mrf.mxu3 }
 0x6e3   : > { %v5548_v22 = vadd.f32 %v5547_v41, %v5157_v31  ;;  %v9352_v47 = vadd.f32 %v4847_v3, %v3858_v35  ;;  %v5172_v31 = vmax.f32 %v9786_v29, 0.0 }
 0x6e5   : > { %v5549_v58 = vadd.f32 %v5548_v22, %v5158_v37  ;;  %v7280_v22 = vld [vmem:[%s8066_s24 + $0xba0] sm:$0xf] }
 0x6e7   : > { %v5550_v30 = vadd.f32 %v5549_v58, %v5159_v32  ;;  %v7281_v32 = vor.u32 %v7965_v39, %v7280_v22  ;;  %v7282_v58 = vld [vmem:[%s8066_s24 + $0xba8] sm:$0xf0] }
 0x6e8   : > { %v9799_v22 = vld [vmem:[#allocation15_spill] sm:$0xff] }
 0x6e9   : > { %v5551_v16 = vadd.f32 %v5550_v30, %v5160_v57  ;;  %v3860_v40 = vpop.f32.mrf.mxu2  ;;  %v7285_v57 = vor.u32 %v7964_v54, %v7282_v58  ;;  %v9789_v30 = vld [vmem:[#allocation5_spill] sm:$0xff]  ;;  %v5185_v39 = vmax.f32 %v9799_v22, 0.0  ;;  %v9811_v22 = vld [vmem:[#allocation27_spill] sm:$0xff] }
 0x6ea   : > { %v4849_v5 = vpop.f32.mrf.mxu3  ;;  %v5175_v35 = vmax.f32 %v9789_v30, 0.0  ;;  %v9801_v58 = vld [vmem:[#allocation17_spill] sm:$0xff] }
 0x6eb   : > { %v5552_v2 = vadd.f32 %v5551_v16, %v5161_v34  ;;  %v9354_v1 = vadd.f32 %v4849_v5, %v3860_v40  ;;  %v9790_v16 = vld [vmem:[#allocation6_spill] sm:$0xff]  ;;  %v9792_v40 = vld [vmem:[#allocation8_spill] sm:$0xff]  ;;  %v9793_v5 = vld [vmem:[#allocation9_spill] sm:$0xff] }
 0x6ec   : > { %v5176_v3 = vmax.f32 %v9790_v16, 0.0  ;;  %v5179_v33 = vmax.f32 %v9793_v5, 0.0  ;;  %v9804_v5 = vld [vmem:[#allocation20_spill] sm:$0xff] }
 0x6ed   : > { %v5553_v20 = vadd.f32 %v5552_v2, %v5162_v61  ;;  %3902 = vmatmul.bf16.gmra.mxu2 %v7273_v9 }
 0x6ef   : > { %v5554_v49 = vadd.f32 %v5553_v20, %v5163_v28  ;;  %7579 = vmatmul.msk.bf16.gmra.mxu3 %vm2373_vm2, %v7277_v23  ;;  %v9791_v28 = vld [vmem:[#allocation7_spill] sm:$0xff]  ;;  %v5181_v23 = vmax.f32 %v9795_v46, 0.0 }
 0x6f0   : > { %v5177_v20 = vmax.f32 %v9791_v28, 0.0 }
 0x6f1   : > { %v5555_v7 = vadd.f32 %v5554_v49, %v5164_v4  ;;  %v3863_v48 = vpop.f32.mrf.mxu2 }
 0x6f2   : > { %v4852_v27 = vpop.f32.mrf.mxu3 }
 0x6f3   : > { %v5556_v43 = vadd.f32 %v5555_v7, %v5165_v25  ;;  %v9369_v62 = vadd.f32 %v4852_v27, %v3863_v48  ;;  %v5178_v25 = vmax.f32 %v9792_v40, 0.0  ;;  %v7288_v48 = vld [vmem:[%s8066_s24 + $0xbb0] sm:$0xf]  ;;  %v7296_v40 = vld [vmem:[%s8066_s24 + $0xbc0] sm:$0xf] }
 0x6f4   : > { %v9796_v27 = vld [vmem:[#allocation12_spill] sm:$0xff] }
 0x6f5   : > { %v5557_v38 = vadd.f32 %v5556_v43, %v5166_v55  ;;  %v5180_v55 = vmax.f32 %v9794_v12, 0.0 }
 0x6f7   : > { %v5558_v63 = vadd.f32 %v5557_v38, %v5167_v50 }
 0x6f9   : > { %v5559_v21 = vadd.f32 %v5558_v63, %v5168_v17  ;;  %v3865_v10 = vpop.f32.mrf.mxu2 }
 0x6fa   : > { %v4854_v45 = vpop.f32.mrf.mxu3 }
 0x6fb   : > { %v5560_v8 = vadd.f32 %v5559_v21, %v5169_v18  ;;  %v9371_v37 = vadd.f32 %v4854_v45, %v3865_v10  ;;  %v7967_v18 = vld [vmem:[%s8066_s24 + $0xbb4] sm:$0xf0]  ;;  %v7966_v21 = vld [vmem:[%s8066_s24 + $0xbb4] sm:$0xf] }
 0x6fd   : > { %v5561_v51 = vadd.f32 %v5560_v8, %v5170_v52  ;;  %3907 = vmatmul.bf16.gmra.mxu2 %v7281_v32  ;;  %v5182_v52 = vmax.f32 %v9796_v27, 0.0 }
 0x6ff   : > { %v5562_v41 = vadd.f32 %v5561_v51, %v5171_v60  ;;  %7580 = vmatmul.msk.bf16.gmra.mxu3 %vm2373_vm2, %v7285_v57  ;;  %v7289_v60 = vor.u32 %v7967_v18, %v7288_v48  ;;  %v7290_v51 = vld [vmem:[%s8066_s24 + $0xbb8] sm:$0xf0]  ;;  %v5187_v57 = vmax.f32 %v9801_v58, 0.0  ;;  %v7971_v58 = vld [vmem:[%s8066_s24 + $0xbd4] sm:$0xf0] }
 0x700   : > { %v7293_v29 = vor.u32 %v7966_v21, %v7290_v51  ;;  %v9807_v21 = vld [vmem:[#allocation23_spill] sm:$0xff] }
 0x701   : > { %v5563_v42 = vadd.f32 %v5562_v41, %v5172_v31  ;;  %v3868_v2 = vpop.f32.mrf.mxu2  ;;  %v9797_v31 = vld [vmem:[#allocation13_spill] sm:$0xff]  ;;  %v5193_v27 = vmax.f32 %v9807_v21, 0.0 }
 0x702   : > { %v4857_v49 = vpop.f32.mrf.mxu3  ;;  %v5183_v41 = vmax.f32 %v9797_v31, 0.0  ;;  %v9809_v31 = vld [vmem:[#allocation25_spill] sm:$0xff] }
 0x703   : > { %v5564_v26 = vadd.f32 %v5563_v42, %v5173_v0  ;;  %v9386_v38 = vadd.f32 %v4857_v49, %v3868_v2  ;;  %v5184_v0 = vmax.f32 %v9798_v53, 0.0  ;;  %v9810_v53 = vld [vmem:[#allocation26_spill] sm:$0xff] }
 0x705   : > { %v5565_v34 = vadd.f32 %v5564_v26, %v5174_v44  ;;  %v9800_v44 = vld [vmem:[#allocation16_spill] sm:$0xff] }
 0x706   : > { %v5186_v26 = vmax.f32 %v9800_v44, 0.0 }
 0x707   : > { %v5566_v61 = vadd.f32 %v5565_v34, %v5175_v35  ;;  %v9802_v35 = vld [vmem:[#allocation18_spill] sm:$0xff] }
 0x708   : > { %v5188_v34 = vmax.f32 %v9802_v35, 0.0 }
 0x709   : > { %v5567_v4 = vadd.f32 %v5566_v61, %v5176_v3  ;;  %v3870_v9 = vpop.f32.mrf.mxu2  ;;  %v9803_v61 = vld [vmem:[#allocation19_spill] sm:$0xff] }
 0x70a   : > { %v4859_v17 = vpop.f32.mrf.mxu3  ;;  %v5189_v2 = vmax.f32 %v9803_v61, 0.0 }
 0x70b   : > { %v5568_v7 = vadd.f32 %v5567_v4, %v5177_v20  ;;  %v9388_v63 = vadd.f32 %v4859_v17, %v3870_v9  ;;  %v9805_v9 = vld [vmem:[#allocation21_spill] sm:$0xff] }
 0x70c   : > { %v5191_v46 = vmax.f32 %v9805_v9, 0.0 }
 0x70d   : > { %v5569_v36 = vadd.f32 %v5568_v7, %v5178_v25  ;;  %3912 = vmatmul.bf16.gmra.mxu2 %v7289_v60  ;;  %v7969_v25 = vld [vmem:[%s8066_s24 + $0xbc4] sm:$0xf0]  ;;  %v7968_v7 = vld [vmem:[%s8066_s24 + $0xbc4] sm:$0xf]  ;;  %v9808_v60 = vld [vmem:[#allocation24_spill] sm:$0xff] }
 0x70e   : > { %v7297_v12 = vor.u32 %v7969_v25, %v7296_v40  ;;  %v5194_v51 = vmax.f32 %v9808_v60, 0.0  ;;  %v9814_v40 = vld [vmem:[#allocation30_spill] sm:$0xff] }
 0x70f   : > { %v5570_v43 = vadd.f32 %v5569_v36, %v5179_v33  ;;  %7581 = vmatmul.msk.bf16.gmra.mxu3 %vm2373_vm2, %v7293_v29  ;;  %v5190_v33 = vmax.f32 %v9804_v5, 0.0  ;;  %v5200_v25 = vmax.f32 %v9814_v40, 0.0 }
 0x711   : > { %v5571_v50 = vadd.f32 %v5570_v43, %v5180_v55  ;;  %v3873_v45 = vpop.f32.mrf.mxu2  ;;  %v7298_v55 = vld [vmem:[%s8066_s24 + $0xbc8] sm:$0xf0] }
 0x712   : > { %v4862_v19 = vpop.f32.mrf.mxu3  ;;  %v7301_v43 = vor.u32 %v7968_v7, %v7298_v55 }
 0x713   : > { %v5572_v8 = vadd.f32 %v5571_v50, %v5181_v23  ;;  %v9403_v20 = vadd.f32 %v4862_v19, %v3873_v45  ;;  %v9806_v50 = vld [vmem:[#allocation22_spill] sm:$0xff] }
 0x714   : > { %v5192_v17 = vmax.f32 %v9806_v50, 0.0 }
 0x715   : > { %v5573_v10 = vadd.f32 %v5572_v8, %v5182_v52 }
 0x717   : > { %v5574_v42 = vadd.f32 %v5573_v10, %v5183_v41  ;;  %v5195_v41 = vmax.f32 %v9809_v31, 0.0 }
 0x719   : > { %v5575_v54 = vadd.f32 %v5574_v42, %v5184_v0  ;;  %v3875_v3 = vpop.f32.mrf.mxu2  ;;  %v5196_v0 = vmax.f32 %v9810_v53, 0.0  ;;  %v7972_v53 = vld [vmem:[%s8066_s24 + $0xbe4] sm:$0xf] }
 0x71a   : > { %v4864_v4 = vpop.f32.mrf.mxu3 }
 0x71b   : > { %v5576_v32 = vadd.f32 %v5575_v54, %v5185_v39  ;;  %v9405_v49 = vadd.f32 %v4864_v4, %v3875_v3  ;;  %v5197_v39 = vmax.f32 %v9811_v22, 0.0  ;;  %v7306_v3 = vld [vmem:[%s8066_s24 + $0xbd8] sm:$0xf0] }
 0x71d   : > { %v5577_v30 = vadd.f32 %v5576_v32, %v5186_v26  ;;  %3917 = vmatmul.bf16.gmra.mxu2 %v7297_v12  ;;  %v7304_v32 = vld [vmem:[%s8066_s24 + $0xbd0] sm:$0xf] }
 0x71f   : > { %v5578_v16 = vadd.f32 %v5577_v30, %v5187_v57  ;;  %7582 = vmatmul.msk.bf16.gmra.mxu3 %vm2373_vm2, %v7301_v43  ;;  %v7970_v57 = vld [vmem:[%s8066_s24 + $0xbd4] sm:$0xf] }
 0x720   : > { %v9812_v30 = vld [vmem:[#allocation28_spill] sm:$0xff]  ;;  %v7309_v61 = vor.u32 %v7970_v57, %v7306_v3  ;;  %v9822_v57 = vld [vmem:[#allocation38_spill] sm:$0xff] }
 0x721   : > { %v5579_v28 = vadd.f32 %v5578_v16, %v5188_v34  ;;  %v3878_v18 = vpop.f32.mrf.mxu2  ;;  %v5198_v35 = vmax.f32 %v9812_v30, 0.0  ;;  %v7305_v16 = vor.u32 %v7971_v58, %v7304_v32  ;;  %v9816_v43 = vld [vmem:[#allocation32_spill] sm:$0xff]  ;;  %v5208_v30 = vmax.f32 %v9822_v57, 0.0 }
 0x722   : > { %v4867_v8 = vpop.f32.mrf.mxu3  ;;  %v5202_v9 = vmax.f32 %v9816_v43, 0.0  ;;  %v9827_v43 = vld [vmem:[#allocation43_spill] sm:$0xff]  ;;  %v9832_v57 = vld [vmem:[#allocation48_spill] sm:$0xff] }
 0x723   : > { %v5580_v36 = vadd.f32 %v5579_v28, %v5189_v2  ;;  %v9420_v19 = vadd.f32 %v4867_v8, %v3878_v18  ;;  %v9813_v2 = vld [vmem:[#allocation29_spill] sm:$0xff] }
 0x724   : > { %v5199_v28 = vmax.f32 %v9813_v2, 0.0 }
 0x725   : > { %v5581_v23 = vadd.f32 %v5580_v36, %v5190_v33  ;;  %v9815_v33 = vld [vmem:[#allocation31_spill] sm:$0xff] }
 0x726   : > { %v5201_v36 = vmax.f32 %v9815_v33, 0.0  ;;  %v9826_v33 = vld [vmem:[#allocation42_spill] sm:$0xff] }
 0x727   : > { %v5582_v48 = vadd.f32 %v5581_v23, %v5191_v46  ;;  %v9817_v23 = vld [vmem:[#allocation33_spill] sm:$0xff] }
 0x728   : > { %v5203_v50 = vmax.f32 %v9817_v23, 0.0 }
 0x729   : > { %v5583_v52 = vadd.f32 %v5582_v48, %v5192_v17  ;;  %v3880_v45 = vpop.f32.mrf.mxu2  ;;  %v9818_v48 = vld [vmem:[#allocation34_spill] sm:$0xff] }
 0x72a   : > { %v4869_v44 = vpop.f32.mrf.mxu3  ;;  %v5204_v18 = vmax.f32 %v9818_v48, 0.0  ;;  %v7320_v48 = vld [vmem:[%s8066_s24 + $0xbf0] sm:$0xf] }
 0x72b   : > { %v5584_v29 = vadd.f32 %v5583_v52, %v5193_v27  ;;  %v9422_v26 = vadd.f32 %v4869_v44, %v3880_v45  ;;  %v9819_v52 = vld [vmem:[#allocation35_spill] sm:$0xff]  ;;  %v9821_v44 = vld [vmem:[#allocation37_spill] sm:$0xff] }
 0x72c   : > { %v5205_v8 = vmax.f32 %v9819_v52, 0.0  ;;  %v5207_v32 = vmax.f32 %v9821_v44, 0.0 }
 0x72d   : > { %v5585_v10 = vadd.f32 %v5584_v29, %v5194_v51  ;;  %3922 = vmatmul.bf16.gmra.mxu2 %v7305_v16  ;;  %v9823_v16 = vld [vmem:[#allocation39_spill] sm:$0xff] }
 0x72e   : > { %v5209_v3 = vmax.f32 %v9823_v16, 0.0 }
 0x72f   : > { %v5586_v42 = vadd.f32 %v5585_v10, %v5195_v41  ;;  %7583 = vmatmul.msk.bf16.gmra.mxu3 %vm2373_vm2, %v7309_v61  ;;  %v7312_v41 = vld [vmem:[%s8066_s24 + $0xbe0] sm:$0xf]  ;;  %v7973_v10 = vld [vmem:[%s8066_s24 + $0xbe4] sm:$0xf0] }
 0x730   : > { %v7313_v22 = vor.u32 %v7973_v10, %v7312_v41  ;;  %v9829_v10 = vld [vmem:[#allocation45_spill] sm:$0xff] }
 0x731   : > { %v5587_v54 = vadd.f32 %v5586_v42, %v5196_v0  ;;  %v3883_v5 = vpop.f32.mrf.mxu2  ;;  %v9820_v0 = vld [vmem:[#allocation36_spill] sm:$0xff] }
 0x732   : > { %v4872_v55 = vpop.f32.mrf.mxu3  ;;  %v5206_v42 = vmax.f32 %v9820_v0, 0.0 }
 0x733   : > { %v5588_v34 = vadd.f32 %v5587_v54, %v5197_v39  ;;  %v9437_v51 = vadd.f32 %v4872_v55, %v3883_v5  ;;  %v7314_v39 = vld [vmem:[%s8066_s24 + $0xbe8] sm:$0xf0] }
 0x734   : > { %v7317_v54 = vor.u32 %v7972_v53, %v7314_v39  ;;  %v5215_v53 = vmax.f32 %v9829_v10, 0.0 }
 0x735   : > { %v5589_v4 = vadd.f32 %v5588_v34, %v5198_v35 }
 0x737   : > { %v5590_v7 = vadd.f32 %v5589_v4, %v5199_v28  ;;  %v9824_v28 = vld [vmem:[#allocation40_spill] sm:$0xff] }
 0x738   : > { %v5210_v4 = vmax.f32 %v9824_v28, 0.0 }
 0x739   : > { %v5591_v12 = vadd.f32 %v5590_v7, %v5200_v25  ;;  %v3885_v27 = vpop.f32.mrf.mxu2  ;;  %v9825_v25 = vld [vmem:[#allocation41_spill] sm:$0xff] }
 0x73a   : > { %v4874_v29 = vpop.f32.mrf.mxu3  ;;  %v5211_v7 = vmax.f32 %v9825_v25, 0.0 }
 0x73b   : > { %v5592_v46 = vadd.f32 %v5591_v12, %v5201_v36  ;;  %v9439_v31 = vadd.f32 %v4874_v29, %v3885_v27  ;;  %v5212_v36 = vmax.f32 %v9826_v33, 0.0  ;;  %v9828_v27 = vld [vmem:[#allocation44_spill] sm:$0xff]  ;;  %v7322_v29 = vld [vmem:[%s8066_s24 + $0xbf8] sm:$0xf0] }
 0x73c   : > { %v5214_v52 = vmax.f32 %v9828_v27, 0.0  ;;  %v9837_v27 = vld [vmem:[#allocation53_spill] sm:$0xff] }
 0x73d   : > { %v5593_v17 = vadd.f32 %v5592_v46, %v5202_v9  ;;  %3927 = vmatmul.bf16.gmra.mxu2 %v7313_v22  ;;  %v5213_v9 = vmax.f32 %v9827_v43, 0.0  ;;  %v7976_v43 = vld [vmem:[%s8066_s24 + $0xc04] sm:$0xf] }
 0x73f   : > { %v5594_v21 = vadd.f32 %v5593_v17, %v5203_v50  ;;  %7584 = vmatmul.msk.bf16.gmra.mxu3 %vm2373_vm2, %v7317_v54  ;;  %v9831_v54 = vld [vmem:[#allocation47_spill] sm:$0xff] }
 0x740   : > { %v5217_v44 = vmax.f32 %v9831_v54, 0.0 }
 0x741   : > { %v5595_v60 = vadd.f32 %v5594_v21, %v5204_v18  ;;  %v3888_v34 = vpop.f32.mrf.mxu2  ;;  %v7975_v18 = vld [vmem:[%s8066_s24 + $0xbf4] sm:$0xf0]  ;;  %v7974_v21 = vld [vmem:[%s8066_s24 + $0xbf4] sm:$0xf] }
 0x742   : > { %v4877_v2 = vpop.f32.mrf.mxu3  ;;  %v7325_v41 = vor.u32 %v7974_v21, %v7322_v29 }
 0x743   : > { %v5596_v45 = vadd.f32 %v5595_v60, %v5205_v8  ;;  %v9454_v23 = vadd.f32 %v4877_v2, %v3888_v34  ;;  %v7321_v60 = vor.u32 %v7975_v18, %v7320_v48  ;;  %v9833_v34 = vld [vmem:[#allocation49_spill] sm:$0xff]  ;;  %v7330_v18 = vld [vmem:[%s8066_s24 + $0xc08] sm:$0xf0] }
 0x744   : > { %v5219_v16 = vmax.f32 %v9833_v34, 0.0  ;;  %v7333_v21 = vor.u32 %v7976_v43, %v7330_v18 }
 0x745   : > { %v5597_v58 = vadd.f32 %v5596_v45, %v5206_v42  ;;  %v9830_v42 = vld [vmem:[#allocation46_spill] sm:$0xff] }
 0x746   : > { %v5216_v45 = vmax.f32 %v9830_v42, 0.0 }
 0x747   : > { %v5598_v35 = vadd.f32 %v5597_v58, %v5207_v32 }
 0x749   : > { %v5599_v61 = vadd.f32 %v5598_v35, %v5208_v30  ;;  %v3890_v55 = vpop.f32.mrf.mxu2  ;;  %v5218_v30 = vmax.f32 %v9832_v57, 0.0  ;;  %v9842_v57 = vld [vmem:[#allocation58_spill] sm:$0xff] }
 0x74a   : > { %v4879_v50 = vpop.f32.mrf.mxu3 }
 0x74b   : > { %v5600_v40 = vadd.f32 %v5599_v61, %v5209_v3  ;;  %v9456_v17 = vadd.f32 %v4879_v50, %v3890_v55  ;;  %v9834_v61 = vld [vmem:[#allocation50_spill] sm:$0xff]  ;;  %v7977_v55 = vld [vmem:[%s8066_s24 + $0xc04] sm:$0xf0] }
 0x74c   : > { %v5220_v2 = vmax.f32 %v9834_v61, 0.0 }
 0x74d   : > { %v5601_v5 = vadd.f32 %v5600_v40, %v5210_v4  ;;  %3932 = vmatmul.bf16.gmra.mxu2 %v7321_v60  ;;  %v9835_v40 = vld [vmem:[#allocation51_spill] sm:$0xff]  ;;  %v9838_v60 = vld [vmem:[#allocation54_spill] sm:$0xff] }
 0x74e   : > { %v5221_v25 = vmax.f32 %v9835_v40, 0.0  ;;  %v5224_v29 = vmax.f32 %v9838_v60, 0.0  ;;  %v7336_v40 = vld [vmem:[%s8066_s24 + $0xc10] sm:$0xf]  ;;  %v9847_v60 = vld [vmem:[#allocation63_spill] sm:$0xff] }
 0x74f   : > { %v5602_v12 = vadd.f32 %v5601_v5, %v5211_v7  ;;  %7585 = vmatmul.msk.bf16.gmra.mxu3 %vm2373_vm2, %v7325_v41 }
 0x751   : > { %v5603_v46 = vadd.f32 %v5602_v12, %v5212_v36  ;;  %v3893_v39 = vpop.f32.mrf.mxu2  ;;  %v7328_v12 = vld [vmem:[%s8066_s24 + $0xc00] sm:$0xf] }
 0x752   : > { %v4882_v58 = vpop.f32.mrf.mxu3  ;;  %v7329_v48 = vor.u32 %v7977_v55, %v7328_v12 }
 0x753   : > { %v5604_v8 = vadd.f32 %v5603_v46, %v5213_v9  ;;  %v9471_v5 = vadd.f32 %v4882_v58, %v3893_v39  ;;  %v9836_v9 = vld [vmem:[#allocation52_spill] sm:$0xff] }
 0x754   : > { %v5222_v46 = vmax.f32 %v9836_v9, 0.0  ;;  %v7338_v9 = vld [vmem:[%s8066_s24 + $0xc18] sm:$0xf0] }
 0x755   : > { %v5605_v0 = vadd.f32 %v5604_v8, %v5214_v52  ;;  %v5223_v52 = vmax.f32 %v9837_v27, 0.0 }
 0x757   : > { %v5606_v22 = vadd.f32 %v5605_v0, %v5215_v53  ;;  %v9839_v53 = vld [vmem:[#allocation55_spill] sm:$0xff] }
 0x758   : > { %v5225_v0 = vmax.f32 %v9839_v53, 0.0  ;;  %v9848_v53 = vld [vmem:[#allocation64_spill] sm:$0xff] }
 0x759   : > { %v5607_v32 = vadd.f32 %v5606_v22, %v5216_v45  ;;  %v3895_v4 = vpop.f32.mrf.mxu2  ;;  %v9840_v22 = vld [vmem:[#allocation56_spill] sm:$0xff] }
 0x75a   : > { %v4884_v33 = vpop.f32.mrf.mxu3  ;;  %v5226_v39 = vmax.f32 %v9840_v22, 0.0 }
 0x75b   : > { %v5608_v35 = vadd.f32 %v5607_v32, %v5217_v44  ;;  %v9473_v36 = vadd.f32 %v4884_v33, %v3895_v4  ;;  %v9841_v44 = vld [vmem:[#allocation57_spill] sm:$0xff]  ;;  %v9844_v33 = vld [vmem:[#allocation60_spill] sm:$0xff] }
 0x75c   : > { %v5227_v32 = vmax.f32 %v9841_v44, 0.0  ;;  %v5230_v12 = vmax.f32 %v9844_v33, 0.0 }
 0x75d   : > { %v5609_v3 = vadd.f32 %v5608_v35, %v5218_v30  ;;  %3937 = vmatmul.bf16.gmra.mxu2 %v7329_v48  ;;  %v5228_v30 = vmax.f32 %v9842_v57, 0.0  ;;  %v9851_v57 = vld [vmem:[#allocation67_spill] sm:$0xff] }
 0x75f   : > { %v5610_v28 = vadd.f32 %v5609_v3, %v5219_v16  ;;  %7586 = vmatmul.msk.bf16.gmra.mxu3 %vm2373_vm2, %v7333_v21  ;;  %v9843_v16 = vld [vmem:[#allocation59_spill] sm:$0xff]  ;;  %v9846_v21 = vld [vmem:[#allocation62_spill] sm:$0xff] }
 0x760   : > { %v5229_v3 = vmax.f32 %v9843_v16, 0.0  ;;  %v5232_v27 = vmax.f32 %v9846_v21, 0.0 }
 0x761   : > { %v5611_v7 = vadd.f32 %v5610_v28, %v5220_v2  ;;  %v3898_v10 = vpop.f32.mrf.mxu2 }
 0x762   : > { %v4887_v45 = vpop.f32.mrf.mxu3 }
 0x763   : > { %v5612_v50 = vadd.f32 %v5611_v7, %v5221_v25  ;;  %v9488_v2 = vadd.f32 %v4887_v45, %v3898_v10  ;;  %v7979_v25 = vld [vmem:[%s8066_s24 + $0xc14] sm:$0xf0]  ;;  %v7978_v7 = vld [vmem:[%s8066_s24 + $0xc14] sm:$0xf] }
 0x764   : > { %v7337_v43 = vor.u32 %v7979_v25, %v7336_v40  ;;  %v9849_v45 = vld [vmem:[#allocation65_spill] sm:$0xff]  ;;  %v7980_v40 = vld [vmem:[%s8066_s24 + $0xc24] sm:$0xf]  ;;  %v9852_v25 = vld [vmem:[#allocation68_spill] sm:$0xff] }
 0x765   : > { %v5613_v8 = vadd.f32 %v5612_v50, %v5222_v46  ;;  %v7341_v46 = vor.u32 %v7978_v7, %v7338_v9  ;;  %v9845_v50 = vld [vmem:[#allocation61_spill] sm:$0xff]  ;;  %v5235_v22 = vmax.f32 %v9849_v45, 0.0  ;;  %v5238_v7 = vmax.f32 %v9852_v25, 0.0  ;;  %v9860_v25 = vld [vmem:[#allocation76_spill] sm:$0xff] }
 0x766   : > { %v5231_v48 = vmax.f32 %v9845_v50, 0.0  ;;  %v9853_v9 = vld [vmem:[#allocation69_spill] sm:$0xff] }
 0x767   : > { %v5614_v41 = vadd.f32 %v5613_v8, %v5223_v52 }
 0x769   : > { %v5615_v42 = vadd.f32 %v5614_v41, %v5224_v29  ;;  %v3900_v34 = vpop.f32.mrf.mxu2  ;;  %v5233_v29 = vmax.f32 %v9847_v60, 0.0 }
 0x76a   : > { %v4889_v28 = vpop.f32.mrf.mxu3 }
 0x76b   : > { %v5616_v54 = vadd.f32 %v5615_v42, %v5225_v0  ;;  %v9490_v4 = vadd.f32 %v4889_v28, %v3900_v34  ;;  %v5234_v0 = vmax.f32 %v9848_v53, 0.0  ;;  %v7981_v28 = vld [vmem:[%s8066_s24 + $0xc24] sm:$0xf0] }
 0x76d   : > { %v5617_v58 = vadd.f32 %v5616_v54, %v5226_v39  ;;  %3942 = vmatmul.bf16.gmra.mxu2 %v7337_v43  ;;  %v9850_v54 = vld [vmem:[#allocation66_spill] sm:$0xff] }
 0x76e   : > { %v5236_v44 = vmax.f32 %v9850_v54, 0.0 }
 0x76f   : > { %v5618_v35 = vadd.f32 %v5617_v58, %v5227_v32  ;;  %7587 = vmatmul.msk.bf16.gmra.mxu3 %vm2373_vm2, %v7341_v46  ;;  %v5239_v46 = vmax.f32 %v9853_v9, 0.0  ;;  %v9861_v9 = vld [vmem:[#allocation77_spill] sm:$0xff] }
 0x771   : > { %v5619_v61 = vadd.f32 %v5618_v35, %v5228_v30  ;;  %v3903_v8 = vpop.f32.mrf.mxu2  ;;  %v5237_v30 = vmax.f32 %v9851_v57, 0.0 }
 0x772   : > { %v4892_v10 = vpop.f32.mrf.mxu3 }
 0x773   : > { %v5620_v55 = vadd.f32 %v5619_v61, %v5229_v3  ;;  %v9505_v34 = vadd.f32 %v4892_v10, %v3903_v8  ;;  %v7344_v61 = vld [vmem:[%s8066_s24 + $0xc20] sm:$0xf] }
 0x775   : > { %v5621_v18 = vadd.f32 %v5620_v55, %v5230_v12  ;;  %v7345_v12 = vor.u32 %v7981_v28, %v7344_v61  ;;  %v7346_v55 = vld [vmem:[%s8066_s24 + $0xc28] sm:$0xf0]  ;;  %v7352_v61 = vld [vmem:[%s8066_s24 + $0xc30] sm:$0xf]  ;;  %v7983_v28 = vld [vmem:[%s8066_s24 + $0xc34] sm:$0xf0] }
 0x776   : > { %v7349_v43 = vor.u32 %v7980_v40, %v7346_v55  ;;  %v7982_v40 = vld [vmem:[%s8066_s24 + $0xc34] sm:$0xf]  ;;  %v7354_v55 = vld [vmem:[%s8066_s24 + $0xc38] sm:$0xf0] }
 0x777   : > { %v5622_v52 = vadd.f32 %v5621_v18, %v5231_v48  ;;  %v9854_v48 = vld [vmem:[#allocation70_spill] sm:$0xff] }
 0x778   : > { %v5240_v18 = vmax.f32 %v9854_v48, 0.0  ;;  %v9862_v48 = vld [vmem:[#allocation78_spill] sm:$0xff] }
 0x779   : > { %v5623_v41 = vadd.f32 %v5622_v52, %v5232_v27  ;;  %v3905_v58 = vpop.f32.mrf.mxu2  ;;  %v9855_v52 = vld [vmem:[#allocation71_spill] sm:$0xff] }
 0x77a   : > { %v4894_v16 = vpop.f32.mrf.mxu3  ;;  %v5241_v8 = vmax.f32 %v9855_v52, 0.0  ;;  %v9863_v52 = vld [vmem:[#allocation79_spill] sm:$0xff] }
 0x77b   : > { %v5624_v42 = vadd.f32 %v5623_v41, %v5233_v29  ;;  %v9507_v3 = vadd.f32 %v4894_v16, %v3905_v58  ;;  %v9856_v41 = vld [vmem:[#allocation72_spill] sm:$0xff] }
 0x77c   : > { %v5242_v10 = vmax.f32 %v9856_v41, 0.0  ;;  %v9864_v41 = vld [vmem:[#allocation80_spill] sm:$0xff] }
 0x77d   : > { %v5625_v39 = vadd.f32 %v5624_v42, %v5234_v0  ;;  %3947 = vmatmul.bf16.gmra.mxu2 %v7345_v12  ;;  %v9857_v0 = vld [vmem:[#allocation73_spill] sm:$0xff]  ;;  %v7353_v12 = vor.u32 %v7983_v28, %v7352_v61 }
 0x77e   : > { %v5243_v42 = vmax.f32 %v9857_v0, 0.0  ;;  %v9865_v0 = vld [vmem:[#allocation81_spill] sm:$0xff] }
 0x77f   : > { %v5626_v32 = vadd.f32 %v5625_v39, %v5235_v22  ;;  %7588 = vmatmul.msk.bf16.gmra.mxu3 %vm2373_vm2, %v7349_v43  ;;  %v9858_v22 = vld [vmem:[#allocation74_spill] sm:$0xff]  ;;  %v7357_v43 = vor.u32 %v7982_v40, %v7354_v55  ;;  %v9868_v40 = vld [vmem:[#allocation84_spill] sm:$0xff] }
 0x780   : > { %v5244_v39 = vmax.f32 %v9858_v22, 0.0  ;;  %v9866_v22 = vld [vmem:[#allocation82_spill] sm:$0xff] }
 0x781   : > { %v5627_v35 = vadd.f32 %v5626_v32, %v5236_v44  ;;  %v3908_v27 = vpop.f32.mrf.mxu2  ;;  %v9859_v32 = vld [vmem:[#allocation75_spill] sm:$0xff] }
 0x782   : > { %v4897_v29 = vpop.f32.mrf.mxu3  ;;  %v5245_v58 = vmax.f32 %v9859_v32, 0.0  ;;  %v9867_v32 = vld [vmem:[#allocation83_spill] sm:$0xff] }
 0x783   : > { %v5628_v33 = vadd.f32 %v5627_v35, %v5237_v30  ;;  %v9522_v30 = vadd.f32 %v4897_v29, %v3908_v27 }
 0x785   : > { %v5629_v50 = vadd.f32 %v5628_v33, %v5238_v7  ;;  %v5246_v7 = vmax.f32 %v9860_v25, 0.0  ;;  %v5254_v25 = vmax.f32 %v9868_v40, 0.0 }
 0x787   : > { %v5630_v21 = vadd.f32 %v5629_v50, %v5239_v46  ;;  %v5247_v46 = vmax.f32 %v9861_v9, 0.0 }
 0x789   : > { %v5631_v60 = vadd.f32 %v5630_v21, %v5240_v18  ;;  %v3910_v44 = vpop.f32.mrf.mxu2  ;;  %v5248_v18 = vmax.f32 %v9862_v48, 0.0  ;;  %v9871_v48 = vld [vmem:[#allocation87_spill] sm:$0xff] }
 0x78a   : > { %v4899_v35 = vpop.f32.mrf.mxu3 }
 0x78b   : > { %v5632_v53 = vadd.f32 %v5631_v60, %v5241_v8  ;;  %v9524_v16 = vadd.f32 %v4899_v35, %v3910_v44  ;;  %v5249_v8 = vmax.f32 %v9863_v52, 0.0 }
 0x78d   : > { %v5633_v45 = vadd.f32 %v5632_v53, %v5242_v10  ;;  %3952 = vmatmul.bf16.gmra.mxu2 %v7353_v12  ;;  %v5250_v10 = vmax.f32 %v9864_v41, 0.0 }
 0x78f   : > { %v5634_v54 = vadd.f32 %v5633_v45, %v5243_v42  ;;  %7589 = vmatmul.msk.bf16.gmra.mxu3 %vm2373_vm2, %v7357_v43  ;;  %v5251_v42 = vmax.f32 %v9865_v0, 0.0  ;;  %v9870_v43 = vld [vmem:[#allocation86_spill] sm:$0xff] }
 0x790   : > { %v5256_v9 = vmax.f32 %v9870_v43, 0.0 }
 0x791   : > { %v5635_v57 = vadd.f32 %v5634_v54, %v5244_v39  ;;  %v3913_v27 = vpop.f32.mrf.mxu2  ;;  %v5252_v39 = vmax.f32 %v9866_v22, 0.0  ;;  %v9875_v22 = vld [vmem:[#allocation91_spill] sm:$0xff] }
 0x792   : > { %v4902_v29 = vpop.f32.mrf.mxu3 }
 0x793   : > { %v5636_v33 = vadd.f32 %v5635_v57, %v5245_v58  ;;  %v5253_v58 = vmax.f32 %v9867_v32, 0.0  ;;  %v9539_v35 = vadd.f32 %v4902_v29, %v3913_v27  ;;  %v9873_v29 = vld [vmem:[#allocation89_spill] sm:$0xff] }
 0x794   : > { %v5259_v41 = vmax.f32 %v9873_v29, 0.0 }
 0x795   : > { %v5637_v50 = vadd.f32 %v5636_v33, %v5246_v7  ;;  %v9869_v33 = vld [vmem:[#allocation85_spill] sm:$0xff] }
 0x796   : > { %v5255_v12 = vmax.f32 %v9869_v33, 0.0 }
 0x797   : > { %v5638_v21 = vadd.f32 %v5637_v50, %v5247_v46 }
 0x799   : > { %v5639_v60 = vadd.f32 %v5638_v21, %v5248_v18  ;;  %v3915_v44 = vpop.f32.mrf.mxu2  ;;  %v5257_v18 = vmax.f32 %v9871_v48, 0.0 }
 0x79a   : > { %v4904_v61 = vpop.f32.mrf.mxu3 }
 0x79b   : > { %v5640_v53 = vadd.f32 %v5639_v60, %v5249_v8  ;;  %v9541_v28 = vadd.f32 %v4904_v61, %v3915_v44  ;;  %v9872_v8 = vld [vmem:[#allocation88_spill] sm:$0xff] }
 0x79c   : > { %v5258_v27 = vmax.f32 %v9872_v8, 0.0  ;;  %v9880_v8 = vld [vmem:[#allocation96_spill] sm:$0xff] }
 0x79d   : > { %v5641_v45 = vadd.f32 %v5640_v53, %v5250_v10  ;;  %v9874_v53 = vld [vmem:[#allocation90_spill] sm:$0xff] }
 0x79e   : > { %v5260_v0 = vmax.f32 %v9874_v53, 0.0 }
 0x79f   : > { %v5642_v54 = vadd.f32 %v5641_v45, %v5251_v42 }
 0x7a1   : > { %v5643_v57 = vadd.f32 %v5642_v54, %v5252_v39  ;;  %v3918_v50 = vpop.f32.mrf.mxu2  ;;  %v5261_v39 = vmax.f32 %v9875_v22, 0.0 }
 0x7a2   : > { %v4907_v52 = vpop.f32.mrf.mxu3 }
 0x7a3   : > { %v5644_v7 = vadd.f32 %v5643_v57, %v5253_v58  ;;  %v9551_v44 = vadd.f32 %v4907_v52, %v3918_v50  ;;  %v9876_v57 = vld [vmem:[#allocation92_spill] sm:$0xff]  ;;  %v5266_v50 = vmax.f32 %v9880_v8, 0.0 }
 0x7a4   : > { %v5262_v61 = vmax.f32 %v9876_v57, 0.0  ;;  %v9884_v57 = vld [vmem:[#allocation100_spill] sm:$0xff] }
 0x7a5   : > { %v5645_v55 = vadd.f32 %v5644_v7, %v5254_v25  ;;  %v9877_v25 = vld [vmem:[#allocation93_spill] sm:$0xff]  ;;  %v9888_v8 = vld [vmem:[#allocation104_spill] sm:$0xff] }
 0x7a6   : > { %v5263_v7 = vmax.f32 %v9877_v25, 0.0  ;;  %v9885_v25 = vld [vmem:[#allocation101_spill] sm:$0xff] }
 0x7a7   : > { %v5646_v46 = vadd.f32 %v5645_v55, %v5255_v12  ;;  %v9878_v12 = vld [vmem:[#allocation94_spill] sm:$0xff] }
 0x7a8   : > { %v5264_v55 = vmax.f32 %v9878_v12, 0.0  ;;  %v9886_v12 = vld [vmem:[#allocation102_spill] sm:$0xff] }
 0x7a9   : > { %v5647_v21 = vadd.f32 %v5646_v46, %v5256_v9  ;;  %v3920_v45 = vpop.f32.mrf.mxu2  ;;  %v9879_v46 = vld [vmem:[#allocation95_spill] sm:$0xff] }
 0x7aa   : > { %v4909_v32 = vpop.f32.mrf.mxu3  ;;  %v5265_v48 = vmax.f32 %v9879_v46, 0.0  ;;  %v9887_v46 = vld [vmem:[#allocation103_spill] sm:$0xff] }
 0x7ab   : > { %v5648_v60 = vadd.f32 %v5647_v21, %v5257_v18  ;;  %v9553_v58 = vadd.f32 %v4909_v32, %v3920_v45 }
 0x7ad   : > { %v5649_v10 = vadd.f32 %v5648_v60, %v5258_v27  ;;  %v9881_v27 = vld [vmem:[#allocation97_spill] sm:$0xff] }
 0x7ae   : > { %v5267_v60 = vmax.f32 %v9881_v27, 0.0 }
 0x7af   : > { %v5650_v42 = vadd.f32 %v5649_v10, %v5259_v41  ;;  %v9882_v41 = vld [vmem:[#allocation98_spill] sm:$0xff] }
 0x7b0   : > { %v5268_v10 = vmax.f32 %v9882_v41, 0.0 }
 0x7b1   : > { %v5651_v54 = vadd.f32 %v5650_v42, %v5260_v0  ;;  %v3923_v9 = vpop.f32.mrf.mxu2  ;;  %v9883_v42 = vld [vmem:[#allocation99_spill] sm:$0xff] }
 0x7b2   : > { %v4912_v21 = vpop.f32.mrf.mxu3  ;;  %v5269_v45 = vmax.f32 %v9883_v42, 0.0 }
 0x7b3   : > { %v5652_v40 = vadd.f32 %v5651_v54, %v5261_v39  ;;  %v9563_v39 = vadd.f32 %v4912_v21, %v3923_v9  ;;  %v9889_v9 = vld [vmem:[#allocation105_spill] sm:$0xff] }
 0x7b4   : > { %v5275_v21 = vmax.f32 %v9889_v9, 0.0 }
 0x7b5   : > { %v5653_v33 = vadd.f32 %v5652_v40, %v5262_v61  ;;  %v5270_v61 = vmax.f32 %v9884_v57, 0.0 }
 0x7b7   : > { %v5654_v43 = vadd.f32 %v5653_v33, %v5263_v7  ;;  %v5271_v7 = vmax.f32 %v9885_v25, 0.0 }
 0x7b9   : > { %v5655_v18 = vadd.f32 %v5654_v43, %v5264_v55  ;;  %v3925_v0 = vpop.f32.mrf.mxu2  ;;  %v5272_v55 = vmax.f32 %v9886_v12, 0.0 }
 0x7ba   : > { %v4914_v54 = vpop.f32.mrf.mxu3 }
 0x7bb   : > { %v5656_v52 = vadd.f32 %v5655_v18, %v5265_v48  ;;  %v9565_v32 = vadd.f32 %v4914_v54, %v3925_v0  ;;  %v5273_v48 = vmax.f32 %v9887_v46, 0.0  ;;  %v9891_v0 = vld [vmem:[#allocation107_spill] sm:$0xff]  ;;  %v9892_v54 = vld [vmem:[#allocation108_spill] sm:$0xff] }
 0x7bc   : > { %v5277_v42 = vmax.f32 %v9891_v0, 0.0  ;;  %v5278_v57 = vmax.f32 %v9892_v54, 0.0 }
 0x7bd   : > { %v5657_v29 = vadd.f32 %v5656_v52, %v5266_v50  ;;  %v5274_v50 = vmax.f32 %v9888_v8, 0.0 }
 0x7bf   : > { %v5658_v53 = vadd.f32 %v5657_v29, %v5267_v60  ;;  %v9890_v60 = vld [vmem:[#allocation106_spill] sm:$0xff] }
 0x7c0   : > { %v5276_v29 = vmax.f32 %v9890_v60, 0.0 }
 0x7c1   : > { %v5659_v22 = vadd.f32 %v5658_v53, %v5268_v10  ;;  %v3928_v10 = vpop.f32.mrf.mxu2 }
 0x7c2   : > { %v4917_v53 = vpop.f32.mrf.mxu3 }
 0x7c3   : > { %v5660_v40 = vadd.f32 %v5659_v22, %v5269_v45  ;;  %v9575_v22 = vadd.f32 %v4917_v53, %v3928_v10  ;;  %v9899_v53 = vld [vmem:[#allocation115_spill] sm:$0xff] }
 0x7c4   : > { %v5285_v0 = vmax.f32 %v9899_v53, 0.0  ;;  %v5293_v53 = vmax.f32 %v9303_v13, 0.0 }
 0x7c5   : > { %v5661_v33 = vadd.f32 %v5660_v40, %v5270_v61  ;;  %v9893_v40 = vld [vmem:[#allocation109_spill] sm:$0xff] }
 0x7c6   : > { %v5279_v25 = vmax.f32 %v9893_v40, 0.0 }
 0x7c7   : > { %v5662_v43 = vadd.f32 %v5661_v33, %v5271_v7  ;;  %v9894_v33 = vld [vmem:[#allocation110_spill] sm:$0xff] }
 0x7c8   : > { %v5280_v12 = vmax.f32 %v9894_v33, 0.0 }
 0x7c9   : > { %v5663_v18 = vadd.f32 %v5662_v43, %v5272_v55  ;;  %v9895_v43 = vld [vmem:[#allocation111_spill] sm:$0xff] }
 0x7ca   : > { %v5281_v46 = vmax.f32 %v9895_v43, 0.0  ;;  %v9586_v10 = vpop.f32.mrf.mxu3 }
 0x7cb   : > { %v5664_v52 = vadd.f32 %v5663_v18, %v5273_v48  ;;  %v9896_v18 = vld [vmem:[#allocation112_spill] sm:$0xff] }
 0x7cc   : > { %v5282_v8 = vmax.f32 %v9896_v18, 0.0 }
 0x7cd   : > { %v5665_v27 = vadd.f32 %v5664_v52, %v5274_v50  ;;  %v9897_v52 = vld [vmem:[#allocation113_spill] sm:$0xff] }
 0x7ce   : > { %v5283_v9 = vmax.f32 %v9897_v52, 0.0 }
 0x7cf   : > { %v5666_v41 = vadd.f32 %v5665_v27, %v5275_v21  ;;  %v9898_v27 = vld [vmem:[#allocation114_spill] sm:$0xff] }
 0x7d0   : > { %v5284_v60 = vmax.f32 %v9898_v27, 0.0 }
 0x7d1   : > { %v5667_v45 = vadd.f32 %v5666_v41, %v5276_v29  ;;  %v9584_v41 = vpop.f32.mrf.mxu2 }
 0x7d2   : > { %v9595_v18 = vpop.f32.mrf.mxu3 }
 0x7d3   : > { %v5668_v61 = vadd.f32 %v5667_v45, %v5277_v42  ;;  %v9900_v45 = vld [vmem:[#allocation116_spill] sm:$0xff] }
 0x7d4   : > { %v5286_v54 = vmax.f32 %v9900_v45, 0.0 }
 0x7d5   : > { %v5669_v7 = vadd.f32 %v5668_v61, %v5278_v57  ;;  %v9901_v61 = vld [vmem:[#allocation117_spill] sm:$0xff] }
 0x7d6   : > { %v5287_v40 = vmax.f32 %v9901_v61, 0.0  ;;  %v5295_v61 = vmax.f32 %v9318_v59, 0.0 }
 0x7d7   : > { %v5670_v55 = vadd.f32 %v5669_v7, %v5279_v25  ;;  %v9902_v7 = vld [vmem:[#allocation118_spill] sm:$0xff] }
 0x7d8   : > { %v5288_v33 = vmax.f32 %v9902_v7, 0.0  ;;  %v5297_v7 = vmax.f32 %v9335_v15, 0.0 }
 0x7d9   : > { %v5671_v48 = vadd.f32 %v5670_v55, %v5280_v12  ;;  %v9903_v55 = vld [vmem:[#allocation119_spill] sm:$0xff] }
 0x7da   : > { %v5289_v43 = vmax.f32 %v9903_v55, 0.0 }
 0x7db   : > { %v5672_v50 = vadd.f32 %v5671_v48, %v5281_v46  ;;  %v9593_v48 = vpop.f32.mrf.mxu2 }
 0x7dd   : > { %v5673_v21 = vadd.f32 %v5672_v50, %v5282_v8  ;;  %v9904_v8 = vld [vmem:[#allocation120_spill] sm:$0xff] }
 0x7de   : > { %v5290_v50 = vmax.f32 %v9904_v8, 0.0  ;;  %v5301_v8 = vmax.f32 %v9369_v62, 0.0 }
 0x7df   : > { %v5674_v29 = vadd.f32 %v5673_v21, %v5283_v9  ;;  %v5291_v21 = vmax.f32 %v9292_v56, 0.0 }
 0x7e1   : > { %v5675_v42 = vadd.f32 %v5674_v29, %v5284_v60  ;;  %v5292_v60 = vmax.f32 %v9294_v6, 0.0 }
 0x7e3   : > { %v5676_v57 = vadd.f32 %v5675_v42, %v5285_v0  ;;  %v5294_v42 = vmax.f32 %v9305_v11, 0.0  ;;  %v9602_v45 = vpop.f32.mrf.mxu2 }
 0x7e5   : > { %v5677_v25 = vadd.f32 %v5676_v57, %v5286_v54  ;;  %v9604_v54 = vpop.f32.mrf.mxu3 }
 0x7e7   : > { %v5678_v12 = vadd.f32 %v5677_v25, %v5287_v40  ;;  %v5296_v25 = vmax.f32 %v9320_v14, 0.0 }
 0x7e9   : > { %v5679_v46 = vadd.f32 %v5678_v12, %v5288_v33  ;;  %v5298_v33 = vmax.f32 %v9337_v24, 0.0  ;;  %v5299_v12 = vmax.f32 %v9352_v47, 0.0 }
 0x7eb   : > { %v5680_v52 = vadd.f32 %v5679_v46, %v5289_v43  ;;  %v9611_v11 = vpop.f32.mrf.mxu2  ;;  %v5300_v46 = vmax.f32 %v9354_v1, 0.0 }
 0x7ed   : > { %v5681_v9 = vadd.f32 %v5680_v52, %v5290_v50  ;;  %v9613_v55 = vpop.f32.mrf.mxu3  ;;  %v5302_v50 = vmax.f32 %v9371_v37, 0.0  ;;  %v5303_v52 = vmax.f32 %v9386_v38, 0.0 }
 0x7ef   : > { %v5682_v27 = vadd.f32 %v5681_v9, %v5291_v21  ;;  %v5304_v9 = vmax.f32 %v9388_v63, 0.0 }
 0x7f1   : > { %v5683_v29 = vadd.f32 %v5682_v27, %v5292_v60  ;;  %v5305_v60 = vmax.f32 %v9403_v20, 0.0  ;;  %v5311_v20 = vmax.f32 %v9454_v23, 0.0  ;;  %v5317_v23 = vmax.f32 %v9505_v34, 0.0 }
 0x7f2   : > { %v5323_v34 = vmax.f32 %v9551_v44, 0.0  ;;  %v4923_v44 = vadd.f32 %v9595_v18, %v9593_v48 }
 0x7f3   : > { %v5684_v0 = vadd.f32 %v5683_v29, %v5293_v53  ;;  %v9620_v47 = vpop.f32.mrf.mxu2  ;;  %v5306_v29 = vmax.f32 %v9405_v49, 0.0  ;;  %v5307_v53 = vmax.f32 %v9420_v19, 0.0  ;;  %v5312_v49 = vmax.f32 %v9456_v17, 0.0 }
 0x7f4   : > { %v5313_v19 = vmax.f32 %v9471_v5, 0.0  ;;  %v5318_v17 = vmax.f32 %v9507_v3, 0.0  ;;  %v5319_v5 = vmax.f32 %v9522_v30, 0.0  ;;  %v5324_v3 = vmax.f32 %v9553_v58, 0.0 }
 0x7f5   : > { %v5685_v57 = vadd.f32 %v5684_v0, %v5294_v42  ;;  %v9622_v21 = vpop.f32.mrf.mxu3  ;;  %v5308_v0 = vmax.f32 %v9422_v26, 0.0  ;;  %v5309_v42 = vmax.f32 %v9437_v51, 0.0  ;;  %v5314_v26 = vmax.f32 %v9473_v36, 0.0 }
 0x7f6   : > { %v4925_v58 = vadd.f32 %v9604_v54, %v9602_v45 }
 0x7f7   : > { %v5686_v40 = vadd.f32 %v5685_v57, %v5295_v61 }
 0x7f9   : > { %v5687_v56 = vadd.f32 %v5686_v40, %v5296_v25  ;;  %v5310_v40 = vmax.f32 %v9439_v31, 0.0  ;;  %v5316_v31 = vmax.f32 %v9490_v4, 0.0  ;;  %v5322_v4 = vmax.f32 %v9541_v28, 0.0 }
 0x7fa   : > { %v5327_v28 = vmax.f32 %v9575_v22, 0.0  ;;  %v4930_v22 = vadd.f32 %v9622_v21, %v9620_v47 }
 0x7fb   : > { %v5688_v6 = vadd.f32 %v5687_v56, %v5297_v7  ;;  %v3943_v63 = vpop.f32.mrf.mxu2 }
 0x7fd   : > { %v5689_v13 = vadd.f32 %v5688_v6, %v5298_v33  ;;  %v4932_v57 = vpop.f32.mrf.mxu3 }
 0x7fe   : > { %v4933_v48 = vadd.f32 %v4932_v57, %v3943_v63 }
 0x7ff   : > { %v5690_v43 = vadd.f32 %v5689_v13, %v5299_v12  ;;  %v5315_v12 = vmax.f32 %v9488_v2, 0.0  ;;  %v5321_v2 = vmax.f32 %v9539_v35, 0.0  ;;  %v4920_v35 = vadd.f32 %v9586_v10, %v9584_v41 }
 0x800   : > { %v5330_v41 = vmax.f32 %v4925_v58, 0.0  ;;  %v5333_v45 = vmax.f32 %v4933_v48, 0.0 }
 0x801   : > { %v5691_v59 = vadd.f32 %v5690_v43, %v5300_v46 }
 0x803   : > { %v5692_v14 = vadd.f32 %v5691_v59, %v5301_v8  ;;  %v3945_v33 = vpop.f32.mrf.mxu2 }
 0x805   : > { %v5693_v15 = vadd.f32 %v5692_v14, %v5302_v50  ;;  %v4934_v13 = vpop.f32.mrf.mxu3 }
 0x807   : > { %v5694_v24 = vadd.f32 %v5693_v15, %v5303_v52  ;;  %v5320_v15 = vmax.f32 %v9524_v16, 0.0  ;;  %v5326_v16 = vmax.f32 %v9565_v32, 0.0 }
 0x809   : > { %v5695_v27 = vadd.f32 %v5694_v24, %v5304_v9 }
 0x80b   : > { %v5696_v1 = vadd.f32 %v5695_v27, %v5305_v60  ;;  %v3948_v14 = vpop.f32.mrf.mxu2 }
 0x80d   : > { %v5697_v62 = vadd.f32 %v5696_v1, %v5306_v29  ;;  %v4937_v50 = vpop.f32.mrf.mxu3  ;;  %v5325_v29 = vmax.f32 %v9563_v39, 0.0  ;;  %v4928_v39 = vadd.f32 %v9613_v55, %v9611_v11 }
 0x80e   : > { %v4938_v54 = vadd.f32 %v4937_v50, %v3948_v14 }
 0x80f   : > { %v5698_v37 = vadd.f32 %v5697_v62, %v5307_v53 }
 0x811   : > { %v5699_v38 = vadd.f32 %v5698_v37, %v5308_v0  ;;  %v5328_v0 = vmax.f32 %v4920_v35, 0.0 }
 0x813   : > { %v5700_v61 = vadd.f32 %v5699_v38, %v5309_v42  ;;  %v3950_v60 = vpop.f32.mrf.mxu2  ;;  %v5329_v42 = vmax.f32 %v4923_v44, 0.0 }
 0x815   : > { %v5701_v25 = vadd.f32 %v5700_v61, %v5310_v40  ;;  %v4939_v1 = vpop.f32.mrf.mxu3 }
 0x817   : > { %v5702_v56 = vadd.f32 %v5701_v25, %v5311_v20  ;;  %v5331_v25 = vmax.f32 %v4928_v39, 0.0  ;;  %v5332_v20 = vmax.f32 %v4930_v22, 0.0 }
 0x819   : > { %v5703_v7 = vadd.f32 %v5702_v56, %v5312_v49  ;;  %v4935_v56 = vadd.f32 %v4934_v13, %v3945_v33 }
 0x81b   : > { %v5704_v6 = vadd.f32 %v5703_v7, %v5313_v19  ;;  %v3953_v32 = vpop.f32.mrf.mxu2  ;;  %v5334_v19 = vmax.f32 %v4935_v56, 0.0 }
 0x81d   : > { %v5705_v51 = vadd.f32 %v5704_v6, %v5314_v26  ;;  %v4942_v61 = vpop.f32.mrf.mxu3  ;;  %v4940_v6 = vadd.f32 %v4939_v1, %v3950_v60 }
 0x81f   : > { %v5706_v43 = vadd.f32 %v5705_v51, %v5315_v12  ;;  %v5335_v51 = vmax.f32 %v4938_v54, 0.0  ;;  %v4943_v12 = vadd.f32 %v4942_v61, %v3953_v32  ;;  %v5336_v47 = vmax.f32 %v4940_v6, 0.0 }
 0x821   : > { %v5707_v46 = vadd.f32 %v5706_v43, %v5316_v31  ;;  %v5337_v63 = vmax.f32 %v4943_v12, 0.0 }
 0x823   : > { %v5708_v59 = vadd.f32 %v5707_v46, %v5317_v23  ;;  %v3955_v11 = vpop.f32.mrf.mxu2 }
 0x825   : > { %v5709_v8 = vadd.f32 %v5708_v59, %v5318_v17  ;;  %v4944_v55 = vpop.f32.mrf.mxu3 }
 0x826   : > { %v4945_v21 = vadd.f32 %v4944_v55, %v3955_v11 }
 0x827   : > { %v5710_v36 = vadd.f32 %v5709_v8, %v5319_v5 }
 0x828   : > { %v5338_v46 = vmax.f32 %v4945_v21, 0.0 }
 0x829   : > { %v5711_v52 = vadd.f32 %v5710_v36, %v5320_v15 }
 0x82b   : > { %v5712_v24 = vadd.f32 %v5711_v52, %v5321_v2 }
 0x82d   : > { %v5713_v9 = vadd.f32 %v5712_v24, %v5322_v4 }
 0x82f   : > { %v5714_v27 = vadd.f32 %v5713_v9, %v5323_v34 }
 0x831   : > { %v5715_v30 = vadd.f32 %v5714_v27, %v5324_v3 }
 0x833   : > { %v5716_v62 = vadd.f32 %v5715_v30, %v5325_v29 }
 0x835   : > { %v5717_v53 = vadd.f32 %v5716_v62, %v5326_v16 }
 0x837   : > { %v5718_v37 = vadd.f32 %v5717_v53, %v5327_v28 }
 0x839   : > { %v5719_v38 = vadd.f32 %v5718_v37, %v5328_v0 }
 0x83b   : > { %v5720_v40 = vadd.f32 %v5719_v38, %v5329_v42 }
 0x83d   : > { %v5721_v10 = vadd.f32 %v5720_v40, %v5330_v41 }
 0x83f   : > { %v5722_v18 = vadd.f32 %v5721_v10, %v5331_v25 }
 0x841   : > { %v5723_v49 = vadd.f32 %v5722_v18, %v5332_v20 }
 0x843   : > { %v5724_v7 = vadd.f32 %v5723_v49, %v5333_v45 }
 0x845   : > { %v5725_v26 = vadd.f32 %v5724_v7, %v5334_v19 }
 0x847   : > { %v5726_v43 = vadd.f32 %v5725_v26, %v5335_v51 }
 0x849   : > { %v5727_v31 = vadd.f32 %v5726_v43, %v5336_v47 }
 0x84b   : > { %v5728_v57 = vadd.f32 %v5727_v31, %v5337_v63 }
 0x84d   : > { %v5729_v33 = vadd.f32 %v5728_v57, %v5338_v46 }
 0x84f   : > { %v5730_v13 = vrot.slane %v5729_v33, 4 }
 0x851   : > { %v5731_v23 = vadd.f32 %v5730_v13, %v5729_v33 }
 0x853   : > { %v5732_v59 = vrot.slane %v5731_v23, 2 }
 0x855   : > { %v5733_v17 = vadd.f32 %v5732_v59, %v5731_v23 }
 0x857   : > { %v5734_v8 = vrot.slane %v5733_v17, 1 }
 0x859   : > { %v5735_v5 = vadd.f32 %v5734_v8, %v5733_v17 }
 0x85b   : > { %5736 = vst [vmem:[%s139_s11] sm:$0x1] %v5735_v5 }
 0x85c PF: > { %s12_s9 = sadd.s32 1, %s8019_s9  }
 0x85d   : > { %p9_p4 = scmp.ge.s32.totalorder %s12_s9, 6  }
 0x85f   :  { %11 = sbr.rel (!%p9_p4) target bundleno = 1 (0x1), region = 58 }

// kernel: id_loss_forward.3
= control target key start
LH: loop header
LB: loop body
LE: loop exit
PB: predicated region body
PF: predicated region fallthrough
CT: control target
= control target key end

     0   :  { %s348_s0 = inlined_call_operand.vmem [shape: f32[4,1,128], index: 0, kind: input, shape index: {}]   ;;  %s349_s1 = inlined_call_operand.vmem [shape: f32[128,256], index: 1, kind: input, shape index: {}]   ;;  %s350_s2 = inlined_call_operand.vmem [shape: f32[1,256], index: 2, kind: input, shape index: {}]   ;;  %s351_s3 = inlined_call_operand.hbm [shape: f32[1,1], index: 3, kind: output, shape index: {}]  }
   0x1   :  { %v49_v0 = vld [vmem:[%s349_s1 + $0xf0] sm:$0xff]  ;;  %v50_v1 = vld [vmem:[%s349_s1 + $0xf8] sm:$0xff]  ;;  %v47_v2 = vld [vmem:[%s349_s1 + $0xe0] sm:$0xff] }
   0x2   :  { %70 = vmatpush.msra.mxu0 %v49_v0  ;;  %90 = vmatpush.msra.mxu1 %v50_v1  ;;  %v48_v3 = vld [vmem:[%s349_s1 + $0xe8] sm:$0xff]  ;;  %v45_v4 = vld [vmem:[%s349_s1 + $0xd0] sm:$0xff]  ;;  %v46_v5 = vld [vmem:[%s349_s1 + $0xd8] sm:$0xff] }
   0x3   :  { %v43_v6 = vld [vmem:[%s349_s1 + $0xc0] sm:$0xff]  ;;  %v44_v7 = vld [vmem:[%s349_s1 + $0xc8] sm:$0xff]  ;;  %v41_v8 = vld [vmem:[%s349_s1 + $0xb0] sm:$0xff] }
   0x4   :  { %71 = vmatpush.msra.mxu0 %v47_v2  ;;  %91 = vmatpush.msra.mxu1 %v48_v3  ;;  %v42_v9 = vld [vmem:[%s349_s1 + $0xb8] sm:$0xff]  ;;  %v39_v10 = vld [vmem:[%s349_s1 + $0xa0] sm:$0xff]  ;;  %v40_v11 = vld [vmem:[%s349_s1 + $0xa8] sm:$0xff] }
   0x5   :  { %v37_v12 = vld [vmem:[%s349_s1 + $0x90] sm:$0xff]  ;;  %v38_v13 = vld [vmem:[%s349_s1 + $0x98] sm:$0xff]  ;;  %v35_v14 = vld [vmem:[%s349_s1 + $0x80] sm:$0xff] }
   0x6   :  { %72 = vmatpush.msra.mxu0 %v45_v4  ;;  %92 = vmatpush.msra.mxu1 %v46_v5  ;;  %v15_v15 = vld [vmem:[%s348_s0] sm:$0x1]  ;;  %v36_v16 = vld [vmem:[%s349_s1 + $0x88] sm:$0xff]  ;;  %v16_v17 = vld [vmem:[%s348_s0 + $0x1] sm:$0x1] }
   0x7   :  { %v17_v18 = vld [vmem:[%s348_s0 + $0x2] sm:$0x1]  ;;  %v18_v19 = vld [vmem:[%s348_s0 + $0x3] sm:$0x1]  ;;  %61 = vst [vmem:[#allocation1] ss:$9 sm:$0xff] %v15_v15 }
   0x8   :  { %73 = vmatpush.msra.mxu0 %v43_v6  ;;  %93 = vmatpush.msra.mxu1 %v44_v7 }
   0xa   :  { %74 = vmatpush.msra.mxu0 %v41_v8  ;;  %94 = vmatpush.msra.mxu1 %v42_v9 }
   0xc   :  { %75 = vmatpush.msra.mxu0 %v39_v10  ;;  %95 = vmatpush.msra.mxu1 %v40_v11 }
   0xd   :  { %8 = vsyncpa [#allocation3], 0  ;;  %63 = vst [vmem:[#allocation1 + $0x1] ss:$9 sm:$0xff] %v16_v17  ;;  %v33_v20 = vld [vmem:[%s349_s1 + $0x70] sm:$0xff]  ;;  %v34_v21 = vld [vmem:[%s349_s1 + $0x78] sm:$0xff] }
   0xe   :  { %76 = vmatpush.msra.mxu0 %v37_v12  ;;  %96 = vmatpush.msra.mxu1 %v38_v13  ;;  %65 = vst [vmem:[#allocation1 + $0x2] ss:$9 sm:$0xff] %v17_v18  ;;  %v31_v22 = vld [vmem:[%s349_s1 + $0x60] sm:$0xff]  ;;  %v32_v23 = vld [vmem:[%s349_s1 + $0x68] sm:$0xff]  ;;  %v29_v24 = vld [vmem:[%s349_s1 + $0x50] sm:$0xff]  ;;  %vm112_vm0 = vcmask 1043456  }
   0xf   :  { %67 = vst [vmem:[#allocation1 + $0x3] ss:$9 sm:$0xff] %v18_v19  ;;  %v30_v25 = vld [vmem:[%s349_s1 + $0x58] sm:$0xff]  ;;  %v27_v26 = vld [vmem:[%s349_s1 + $0x40] sm:$0xff]  ;;  %v28_v27 = vld [vmem:[%s349_s1 + $0x48] sm:$0xff]  ;;  %vm139_vm4 = vcmask 1041408  }
  0x10   :  { %77 = vmatpush.msra.mxu0 %v35_v14  ;;  %97 = vmatpush.msra.mxu1 %v36_v16  ;;  %v25_v28 = vld [vmem:[%s349_s1 + $0x30] sm:$0xff]  ;;  %v26_v29 = vld [vmem:[%s349_s1 + $0x38] sm:$0xff]  ;;  %v23_v30 = vld [vmem:[%s349_s1 + $0x20] sm:$0xff]  ;;  %v212_v3 = vmov 2.0   ;;  %s171_s5 = sshll.u32 %s351_s3, 4  ;;  %vm162_vm6 = vcmask 0   ;;  %s172_s5 = int_to_ptr.hbm [resolvable:$true] %s171_s5 }
  0x11   :  { %v24_v31 = vld [vmem:[%s349_s1 + $0x28] sm:$0xff]  ;;  %v21_v32 = vld [vmem:[%s349_s1 + $0x10] sm:$0xff]  ;;  %v22_v33 = vld [vmem:[%s349_s1 + $0x18] sm:$0xff] }
  0x12   :  { %78 = vmatpush.msra.mxu0 %v33_v20  ;;  %98 = vmatpush.msra.mxu1 %v34_v21  ;;  %v19_v34 = vld [vmem:[%s349_s1] sm:$0xff]  ;;  %v20_v35 = vld [vmem:[%s349_s1 + $0x8] sm:$0xff]  ;;  %s213_s1 = smov [#allocation2]  }
  0x13   :  { %v51_v37 = vld [vmem:[%s350_s2] sm:$0x3]  ;;  %s169_s2 = sshll.u32 %s213_s1, 4  ;;  %s170_s2 = int_to_ptr.vmem [resolvable:$true] %s169_s2 }
  0x14   :  { %79 = vmatpush.msra.mxu0 %v31_v22  ;;  %99 = vmatpush.msra.mxu1 %v32_v23  ;;  %v53_v38 = vperm.slane %v51_v37, 0  ;;  %v54_v39 = vperm.slane %v51_v37, 1 }
  0x16   :  { %80 = vmatpush.msra.mxu0 %v29_v24  ;;  %100 = vmatpush.msra.mxu1 %v30_v25  ;;  %v68_v36 = vld [vmem:[#allocation1] sm:$0xff] }
  0x18   :  { %81 = vmatpush.msra.mxu0 %v27_v26  ;;  %101 = vmatpush.msra.mxu1 %v28_v27 }
  0x1a   :  { %82 = vmatpush.msra.mxu0 %v25_v28  ;;  %102 = vmatpush.msra.mxu1 %v26_v29 }
  0x1c   :  { %83 = vmatpush.msra.mxu0 %v23_v30  ;;  %103 = vmatpush.msra.mxu1 %v24_v31 }
  0x1e   :  { %84 = vmatpush.msra.mxu0 %v21_v32  ;;  %104 = vmatpush.msra.mxu1 %v22_v33 }
  0x20   :  { %85 = vmatpush.msra.mxu0 %v19_v34  ;;  %105 = vmatpush.msra.mxu1 %v20_v35 }
  0x21   :  { %86 = vmatmul.f32.vlgmr.msra.gmra.mxu0 %v68_v36  ;;  %106 = vmatmul.f32.vlgmr.msra.gmra.mxu1 %v68_v36 }
  0x9e   :  { %v87_v40 = vpop.f32.mrf.mxu0  ;;  %v107_v41 = vpop.f32.mrf.mxu1 }
  0x9f   :  { %v88_v42 = vadd.f32 %v87_v40, %v53_v38  ;;  %v108_v43 = vadd.f32 %v107_v41, %v54_v39 }
  0xa1   :  { %v110_v44 = vmul.f32 %v88_v42, %v88_v42  ;;  %v111_v45 = vmul.f32 %v108_v43, %v108_v43 }
  0xa3   :  { %v113_v46 = vsel %vm112_vm0, %v110_v44, 0.0  ;;  %v114_v47 = vsel %vm112_vm0, %v111_v45, 0.0 }
  0xa4   :  { %v115_v48 = vadd.f32 %v114_v47, %v113_v46 }
  0xa6   :  { %116 = vadd.xlane.f32.xlu0 %v115_v48 }
 0x119   :  { %v117_v49 = vpop.xlane.xlu0 %116 }
 0x11a   :  { %v118_v50 = vmax.f32 %v117_v49, 1e-24 }
 0x11c   :  { %182 = vrsqrt.f32 %v118_v50  ;;  %vm125_vm2 = vweird.f32 %v118_v50 }
 0x11d   :  { %184 = vrcp.f32 %v212_v3 }
 0x122   :  { %v183_v51 = vpop.eup %182 }
 0x123   :  { %v120_v52 = vmul.f32 %v183_v51, %v118_v50  ;;  %vm126_vm1 = vweird.f32 %v183_v51  ;;  %v185_v4 = vpop.eup %184 }
 0x124   :  { %vm127_vm3 = vmor %vm125_vm2, %vm126_vm1  ;;  %v155_v5 = vmul.f32 2.0, %v185_v4  ;;  %vm159_vm5 = vweird.f32 %v185_v4 }
 0x125   :  { %v121_v53 = vmul.f32 %v183_v51, %v120_v52 }
 0x126   :  { %v156_v9 = vsub.f32 1.0, %v155_v5 }
 0x127   :  { %v122_v54 = vmul.f32 0.5, %v121_v53 }
 0x128   :  { %v157_v12 = vmul.f32 %v185_v4, %v156_v9 }
 0x129   :  { %v123_v55 = vsub.f32 1.5, %v122_v54 }
 0x12a   :  { %v158_v15 = vadd.f32 %v185_v4, %v157_v12 }
 0x12b   :  { %v124_v56 = vmul.f32 %v183_v51, %v123_v55 }
 0x12c   :  { %v160_v18 = vsel %vm159_vm5, %v185_v4, %v158_v15 }
 0x12d   :  { %v128_v57 = vsel %vm127_vm3, %v183_v51, %v124_v56 }
 0x12e   :  { %v129_v58 = vmul.f32 %v128_v57, %v88_v42  ;;  %v130_v59 = vmul.f32 %v128_v57, %v108_v43 }
 0x130   :  { %v133_v60 = vrot.slane %v129_v58, 2  ;;  %v134_v61 = vrot.slane %v130_v59, 2 }
 0x132   :  { %v137_v62 = vmul.f32 %v133_v60, %v129_v58  ;;  %v138_v63 = vmul.f32 %v134_v61, %v130_v59 }
 0x134   :  { %v140_v0 = vsel %vm139_vm4, %v137_v62, 0.0  ;;  %v141_v1 = vsel %vm139_vm4, %v138_v63, 0.0 }
 0x135   :  { %v142_v2 = vadd.f32 %v141_v1, %v140_v0 }
 0x137   :  { %143 = vadd.xlane.f32.xlu0 %v142_v2 }
 0x1aa   :  { %v144_v6 = vpop.xlane.xlu0 %143 }
 0x1ab   :  { %v145_v7 = vsub.f32 1.0, %v144_v6 }
 0x1ad   :  { %v146_v8 = vand.u32 2147483647, %v145_v7 }
 0x1af   :  { %v147_v10 = vsel %vm139_vm4, %v146_v8, 0.0 }
 0x1b0   :  { %v148_v11 = vrot.slane %v147_v10, 4 }
 0x1b2   :  { %v149_v13 = vadd.f32 %v148_v11, %v147_v10 }
 0x1b4   :  { %v150_v14 = vrot.slane %v149_v13, 2 }
 0x1b6   :  { %v151_v16 = vadd.f32 %v150_v14, %v149_v13 }
 0x1b8   :  { %v152_v17 = vrot.slane %v151_v16, 1 }
 0x1ba   :  { %v153_v19 = vadd.f32 %v152_v17, %v151_v16 }
 0x1bc   :  { %v161_v20 = vmul.f32 %v160_v18, %v153_v19 }
 0x1be   :  { %163 = vst.msk [vmem:[#allocation2] sm:$0x1] %vm162_vm6, %v161_v20 }
 0x1bf   :  { %174 = dma.vmem_to_hbm [thread:$0]  %s170_s2, 16, %s172_s5, [#allocation3]  }
 0x1c0   :  { %210 = dma.done.wait [#allocation3], 16  }
 0x1c1   :  { %211 = vsyncadd [#allocation3], 4294967280 }
 0x1c2   :  { %179 = vsyncpa [#allocation3], 1 }

</bundles_post_ra>
